<compile_context>
chip_gen: v5e
topology: v5e:2x2
jax: 0.10.0
libtpu: 0.0.40
codegen_flags: <defaults>
</compile_context>

<pallas_src>
import jax
import jax.numpy as jnp
import numpy as np
from jax import lax
from jax.experimental import pallas as pl
from jax.experimental.pallas import tpu as pltpu

HIDDEN_SIZE = 64
NUM_LAYERS = 2
OUTPUT_SIZE = 69 * 69      # 4761
OUTPUT_LENGTH = 8
SEQ = 2                    # forward's .repeat(1, 2, 1) => seq-len-2 zero input


def _round_up(x, m):
    return (x + m - 1) // m * m


def _make_kernel(total_steps, h2):
    """total_steps = 2*output_length (even); h2 = 2*hidden_size (packed width)."""
    assert total_steps % 2 == 0
    half = total_steps // 2

    def kernel(hc_ref, wd_ref, wu_ref, b0w_ref, bw_ref, wlin_hbm, blin_ref,
               out_ref, wlin_vmem, dma_sem):
        # Kick off the big head-weight DMA immediately; it is hidden under the
        # serial recurrence and waited on right before the first head matmul.
        wlin_cp = pltpu.make_async_copy(wlin_hbm, wlin_vmem, dma_sem)
        wlin_cp.start()

        wd = wd_ref[...]        # (2H, 2H) bf16: blkdiag(W_hh0^T, W_hh1^T)
        wu = wu_ref[...]        # (2H, 2H) bf16: [[0, W_ih1^T], [0, 0]]
        b0w = b0w_ref[...]      # (1, 2H)  f32 : [b_ih0+b_hh0 | 0]
        bw = bw_ref[...]        # (1, 2H)  f32 : [b_ih0+b_hh0 | b_ih1+b_hh1]
        blin = blin_ref[...]    # (1, out_pad) f32

        hc = hc_ref[...]        # (1, 2H) f32, packed [h0 | h1]
        row_ids = lax.broadcasted_iota(jnp.int32, (half, h2), 0)

        def step(hc):
            # r = [h0 @ W_hh0^T | h1 @ W_hh1^T]        (one full-K matmul)
            r = jnp.dot(hc.astype(jnp.bfloat16), wd,
                        preferred_element_type=jnp.float32)
            # t_low = tanh(r_low + b0) = new h0; t_high is junk but only ever
            # multiplies the zero rows of wu below, so it never leaks.
            t = jnp.tanh(r + b0w)
            # s = [0 | h0_new @ W_ih1^T]               (second full-K matmul)
            s = jnp.dot(t.astype(jnp.bfloat16), wu,
                        preferred_element_type=jnp.float32)
            # [tanh(r_low + b0) | tanh(r_high + h0_new@W_ih1^T + b1)]
            #   = [h0_new | h1_new]
            return jnp.tanh(r + s + bw)

        def run_half(hc):
            # Register-resident collection of the packed per-step states
            # (select-accumulate); no VMEM scratch round-trip.
            acc = jnp.zeros((half, h2), jnp.float32)
            for i in range(half):
                hc = step(hc)
                acc = jnp.where(row_ids == i, hc, acc)
            return hc, acc

        hc, acc_lo = run_half(hc)

        # The 8 steps above gave the DMA ample time; this wait is ~free.
        wlin_cp.wait()
        wlin = wlin_vmem[...]   # (2H, out_pad) bf16; rows 0:H are zero.
        # First half of the head: its MXU pushes / stores overlap steps 9..16.
        out_ref[0:half, :] = (
            jnp.dot(acc_lo.astype(jnp.bfloat16), wlin,
                    preferred_element_type=jnp.float32) + blin)

        _, acc_hi = run_half(hc)
        out_ref[half:total_steps, :] = (
            jnp.dot(acc_hi.astype(jnp.bfloat16), wlin,
                    preferred_element_type=jnp.float32) + blin)

    return kernel


def decoder_rnn_forward(hidden, params, output_length=OUTPUT_LENGTH):
    """hidden: (num_layers, 1, H) f32 -> (2, output_length, output_size) f32."""
    f32, bf16 = jnp.float32, jnp.bfloat16
    H = hidden.shape[-1]
    H2 = 2 * H
    out = params["wlin"].shape[0]
    out_pad = _round_up(out, 128)
    total = SEQ * output_length

    # Packed initial hidden state [h0 | h1] : (1, 2H).
    hc0 = hidden[:, 0, :].astype(f32).reshape(1, H2)

    z = jnp.zeros((H, H), f32)
    # Block-diagonal recurrent weight: hc @ wd = [h0@W_hh0^T | h1@W_hh1^T].
    wd = jnp.block([[params["whh0"].T, z], [z, params["whh1"].T]]).astype(bf16)
    # Layer-1 input weight, zero-padded: t @ wu = [0 | t_low @ W_ih1^T].
    wu = jnp.block([[z, params["wih1"].T], [z, z]]).astype(bf16)

    b0 = (params["bih0"] + params["bhh0"]).astype(f32)   # zero input => W_ih0@x == 0
    b1 = (params["bih1"] + params["bhh1"]).astype(f32)
    b0w = jnp.concatenate([b0, jnp.zeros((H,), f32)])[None, :]   # (1, 2H)
    bw = jnp.concatenate([b0, b1])[None, :]                      # (1, 2H)

    # Head weight: K zero-extended to 2H (packed rows used directly as LHS),
    # N padded to a lane multiple, bf16 MXU operand; bias/accum stay f32.
    wlin_w = (jnp.zeros((H2, out_pad), f32)
              .at[H:, :out].set(params["wlin"].T).astype(bf16))
    blin = (jnp.zeros((1, out_pad), f32)
            .at[:, :out].set(params["blin"][None, :]))

    def const(shape):   # whole-array block, identical for every grid index
        return pl.BlockSpec(shape, lambda i, _n=len(shape): (0,) * _n)

    y = pl.pallas_call(
        _make_kernel(total, H2),
        out_shape=jax.ShapeDtypeStruct((total, out_pad), f32),
        grid_spec=pltpu.PrefetchScalarGridSpec(
            num_scalar_prefetch=0,
            grid=(1,),
            in_specs=[
                const((1, H2)),                      # hc0
                const((H2, H2)),                     # wd (block-diag W_hh)
                const((H2, H2)),                     # wu (padded W_ih1)
                const((1, H2)),                      # b0w
                const((1, H2)),                      # bw
                pl.BlockSpec(memory_space=pl.ANY),   # head weight: stays in HBM
                const((1, out_pad)),                 # head bias
            ],
            out_specs=pl.BlockSpec((total, out_pad), lambda i: (0, 0)),
            scratch_shapes=[
                pltpu.VMEM((H2, out_pad), bf16),     # head-weight landing buffer
                pltpu.SemaphoreType.DMA,             # its DMA semaphore
            ],
        ),
        compiler_params=pltpu.CompilerParams(
            dimension_semantics=("arbitrary",)),
    )(hc0, wd, wu, b0w, bw, wlin_w, blin)

    # y[2t + s, :] == Linear(h_top at step 2t+s) == PyTorch output[s, t, :]
    y = y[:, :out].reshape(output_length, SEQ, out)
    return jnp.transpose(y, (1, 0, 2)).astype(f32)


def init_params(key, H=HIDDEN_SIZE, out=OUTPUT_SIZE):
    """Deterministic PyTorch-style uniform(-1/sqrt(H), 1/sqrt(H)) init."""
    k = 1.0 / float(np.sqrt(H))
    keys = jax.random.split(key, 10)
    u = lambda kk, shape: jax.random.uniform(kk, shape, jnp.float32, -k, k)
    return dict(
        wih0=u(keys[0], (H, H)), whh0=u(keys[1], (H, H)),
        bih0=u(keys[2], (H,)), bhh0=u(keys[3], (H,)),
        wih1=u(keys[4], (H, H)), whh1=u(keys[5], (H, H)),
        bih1=u(keys[6], (H,)), bhh1=u(keys[7], (H,)),
        wlin=u(keys[8], (out, H)), blin=u(keys[9], (out,)),
    )


def reference_forward(hidden, params, output_length=OUTPUT_LENGTH):
    """Pure-JAX f32 mirror of the PyTorch forward (both batch copies identical)."""
    H = hidden.shape[-1]
    h0, h1 = hidden[0, 0], hidden[1, 0]
    x = jnp.zeros((H,), jnp.float32)
    ys = []
    for _ in range(SEQ * output_length):
        h0 = jnp.tanh(x @ params["wih0"].T + params["bih0"] +
                      h0 @ params["whh0"].T + params["bhh0"])
        h1 = jnp.tanh(h0 @ params["wih1"].T + params["bih1"] +
                      h1 @ params["whh1"].T + params["bhh1"])
        ys.append(h1 @ params["wlin"].T + params["blin"])
    ys = jnp.stack(ys)                                    # (2T, out)
    return jnp.transpose(ys.reshape(output_length, SEQ, -1), (1, 0, 2))


if __name__ == "__main__":
    key = jax.random.PRNGKey(0)
    pkey, hkey = jax.random.split(key)
    params = init_params(pkey)
    # hidden state as fed to the module: (num_layers, batch=1, hidden_size)
    hidden = jax.random.normal(hkey, (NUM_LAYERS, 1, HIDDEN_SIZE), jnp.float32)

    out = jax.block_until_ready(decoder_rnn_forward(hidden, params))
    assert out.shape == (2, OUTPUT_LENGTH, OUTPUT_SIZE) and out.dtype == jnp.float32

    ref = jax.block_until_ready(reference_forward(hidden, params))
    np.testing.assert_allclose(np.asarray(out), np.asarray(ref), rtol=1e-2, atol=1e-2)
    print("KERNEL_OK")
</pallas_src>

<mosaic_0001>
module attributes {stable_mosaic.version = 11 : i64} {
  func.func @kernel(%arg0: i32, %arg1: memref<1x128xf32, #tpu.memory_space<vmem>>, %arg2: memref<128x128xbf16, #tpu.memory_space<vmem>>, %arg3: memref<128x128xbf16, #tpu.memory_space<vmem>>, %arg4: memref<1x128xf32, #tpu.memory_space<vmem>>, %arg5: memref<1x128xf32, #tpu.memory_space<vmem>>, %arg6: memref<128x4864xbf16, #tpu.memory_space<any>>, %arg7: memref<1x4864xf32, #tpu.memory_space<vmem>>, %arg8: memref<16x4864xf32, #tpu.memory_space<vmem>>, %arg9: memref<128x4864xbf16, #tpu.memory_space<vmem>>, %arg10: memref<!tpu.dma_semaphore, #tpu.memory_space<semaphore_mem>>) attributes {dimension_semantics = [#tpu.dimension_semantics<arbitrary>], iteration_bounds = array<i64: 1>, scalar_prefetch = 0 : i64, scratch_operands = 2 : i64, tpu.core_type = #tpu.core_type<tc>, window_params = [{pipeline_mode = #tpu.pipeline_mode<synchronous>, transform_indices = @transform_0, window_bounds = array<i64: 1, 128>}, {pipeline_mode = #tpu.pipeline_mode<synchronous>, transform_indices = @transform_1, window_bounds = array<i64: 128, 128>}, {pipeline_mode = #tpu.pipeline_mode<synchronous>, transform_indices = @transform_2, window_bounds = array<i64: 128, 128>}, {pipeline_mode = #tpu.pipeline_mode<synchronous>, transform_indices = @transform_3, window_bounds = array<i64: 1, 128>}, {pipeline_mode = #tpu.pipeline_mode<synchronous>, transform_indices = @transform_4, window_bounds = array<i64: 1, 128>}, {}, {pipeline_mode = #tpu.pipeline_mode<synchronous>, transform_indices = @transform_6, window_bounds = array<i64: 1, 4864>}, {pipeline_mode = #tpu.pipeline_mode<synchronous>, transform_indices = @transform_7, window_bounds = array<i64: 16, 4864>}]} {
    tpu.enqueue_dma source(%arg6 : memref<128x4864xbf16, #tpu.memory_space<any>>) target(%arg9 : memref<128x4864xbf16, #tpu.memory_space<vmem>>) target_semaphore(%arg10 : memref<!tpu.dma_semaphore, #tpu.memory_space<semaphore_mem>>)
    %c0 = arith.constant 0 : index
    %c0_0 = arith.constant 0 : index
    %0 = vector.load %arg2[%c0, %c0_0] : memref<128x128xbf16, #tpu.memory_space<vmem>>, vector<128x128xbf16>
    %c0_1 = arith.constant 0 : index
    %c0_2 = arith.constant 0 : index
    %1 = vector.load %arg3[%c0_1, %c0_2] : memref<128x128xbf16, #tpu.memory_space<vmem>>, vector<128x128xbf16>
    %c0_3 = arith.constant 0 : index
    %c0_4 = arith.constant 0 : index
    %2 = vector.load %arg4[%c0_3, %c0_4] : memref<1x128xf32, #tpu.memory_space<vmem>>, vector<1x128xf32>
    %c0_5 = arith.constant 0 : index
    %c0_6 = arith.constant 0 : index
    %3 = vector.load %arg5[%c0_5, %c0_6] : memref<1x128xf32, #tpu.memory_space<vmem>>, vector<1x128xf32>
    %c0_7 = arith.constant 0 : index
    %c0_8 = arith.constant 0 : index
    %4 = vector.load %arg7[%c0_7, %c0_8] : memref<1x4864xf32, #tpu.memory_space<vmem>>, vector<1x4864xf32>
    %c0_9 = arith.constant 0 : index
    %c0_10 = arith.constant 0 : index
    %5 = vector.load %arg1[%c0_9, %c0_10] : memref<1x128xf32, #tpu.memory_space<vmem>>, vector<1x128xf32>
    %6 = tpu.iota {dimensions = array<i32: 0>} : vector<8x128xi32>
    %cst = arith.constant 0.000000e+00 : f32
    %7 = vector.broadcast %cst : f32 to vector<8x128xf32>
    %8 = arith.truncf %5 : vector<1x128xf32> to vector<1x128xbf16>
    %cst_11 = arith.constant dense<0.000000e+00> : vector<1x128xf32>
    %9 = tpu.matmul %8, %0, %cst_11 {dimension_numbers = #tpu.dot_dimension_numbers<[1], [0], [0], [1], [0, 0, 1, 1], [], []>} : vector<1x128xbf16>, vector<128x128xbf16>, vector<1x128xf32> -> vector<1x128xf32>
    %10 = arith.addf %9, %2 : vector<1x128xf32>
    %11 = math.tanh %10 : vector<1x128xf32>
    %12 = arith.truncf %11 : vector<1x128xf32> to vector<1x128xbf16>
    %cst_12 = arith.constant dense<0.000000e+00> : vector<1x128xf32>
    %13 = tpu.matmul %12, %1, %cst_12 {dimension_numbers = #tpu.dot_dimension_numbers<[1], [0], [0], [1], [0, 0, 1, 1], [], []>} : vector<1x128xbf16>, vector<128x128xbf16>, vector<1x128xf32> -> vector<1x128xf32>
    %14 = arith.addf %9, %13 : vector<1x128xf32>
    %15 = arith.addf %14, %3 : vector<1x128xf32>
    %16 = math.tanh %15 : vector<1x128xf32>
    %c0_i32 = arith.constant 0 : i32
    %17 = vector.broadcast %c0_i32 : i32 to vector<8x128xi32>
    %18 = arith.cmpi eq, %6, %17 : vector<8x128xi32>
    %19 = vector.shape_cast %16 : vector<1x128xf32> to vector<1x128xf32>
    %20 = vector.broadcast %19 : vector<1x128xf32> to vector<8x128xf32>
    %21 = arith.select %18, %20, %7 : vector<8x128xi1>, vector<8x128xf32>
    %22 = arith.truncf %16 : vector<1x128xf32> to vector<1x128xbf16>
    %cst_13 = arith.constant dense<0.000000e+00> : vector<1x128xf32>
    %23 = tpu.matmul %22, %0, %cst_13 {dimension_numbers = #tpu.dot_dimension_numbers<[1], [0], [0], [1], [0, 0, 1, 1], [], []>} : vector<1x128xbf16>, vector<128x128xbf16>, vector<1x128xf32> -> vector<1x128xf32>
    %24 = arith.addf %23, %2 : vector<1x128xf32>
    %25 = math.tanh %24 : vector<1x128xf32>
    %26 = arith.truncf %25 : vector<1x128xf32> to vector<1x128xbf16>
    %cst_14 = arith.constant dense<0.000000e+00> : vector<1x128xf32>
    %27 = tpu.matmul %26, %1, %cst_14 {dimension_numbers = #tpu.dot_dimension_numbers<[1], [0], [0], [1], [0, 0, 1, 1], [], []>} : vector<1x128xbf16>, vector<128x128xbf16>, vector<1x128xf32> -> vector<1x128xf32>
    %28 = arith.addf %23, %27 : vector<1x128xf32>
    %29 = arith.addf %28, %3 : vector<1x128xf32>
    %30 = math.tanh %29 : vector<1x128xf32>
    %c1_i32 = arith.constant 1 : i32
    %31 = vector.broadcast %c1_i32 : i32 to vector<8x128xi32>
    %32 = arith.cmpi eq, %6, %31 : vector<8x128xi32>
    %33 = vector.shape_cast %30 : vector<1x128xf32> to vector<1x128xf32>
    %34 = vector.broadcast %33 : vector<1x128xf32> to vector<8x128xf32>
    %35 = arith.select %32, %34, %21 : vector<8x128xi1>, vector<8x128xf32>
    %36 = arith.truncf %30 : vector<1x128xf32> to vector<1x128xbf16>
    %cst_15 = arith.constant dense<0.000000e+00> : vector<1x128xf32>
    %37 = tpu.matmul %36, %0, %cst_15 {dimension_numbers = #tpu.dot_dimension_numbers<[1], [0], [0], [1], [0, 0, 1, 1], [], []>} : vector<1x128xbf16>, vector<128x128xbf16>, vector<1x128xf32> -> vector<1x128xf32>
    %38 = arith.addf %37, %2 : vector<1x128xf32>
    %39 = math.tanh %38 : vector<1x128xf32>
    %40 = arith.truncf %39 : vector<1x128xf32> to vector<1x128xbf16>
    %cst_16 = arith.constant dense<0.000000e+00> : vector<1x128xf32>
    %41 = tpu.matmul %40, %1, %cst_16 {dimension_numbers = #tpu.dot_dimension_numbers<[1], [0], [0], [1], [0, 0, 1, 1], [], []>} : vector<1x128xbf16>, vector<128x128xbf16>, vector<1x128xf32> -> vector<1x128xf32>
    %42 = arith.addf %37, %41 : vector<1x128xf32>
    %43 = arith.addf %42, %3 : vector<1x128xf32>
    %44 = math.tanh %43 : vector<1x128xf32>
    %c2_i32 = arith.constant 2 : i32
    %45 = vector.broadcast %c2_i32 : i32 to vector<8x128xi32>
    %46 = arith.cmpi eq, %6, %45 : vector<8x128xi32>
    %47 = vector.shape_cast %44 : vector<1x128xf32> to vector<1x128xf32>
    %48 = vector.broadcast %47 : vector<1x128xf32> to vector<8x128xf32>
    %49 = arith.select %46, %48, %35 : vector<8x128xi1>, vector<8x128xf32>
    %50 = arith.truncf %44 : vector<1x128xf32> to vector<1x128xbf16>
    %cst_17 = arith.constant dense<0.000000e+00> : vector<1x128xf32>
    %51 = tpu.matmul %50, %0, %cst_17 {dimension_numbers = #tpu.dot_dimension_numbers<[1], [0], [0], [1], [0, 0, 1, 1], [], []>} : vector<1x128xbf16>, vector<128x128xbf16>, vector<1x128xf32> -> vector<1x128xf32>
    %52 = arith.addf %51, %2 : vector<1x128xf32>
    %53 = math.tanh %52 : vector<1x128xf32>
    %54 = arith.truncf %53 : vector<1x128xf32> to vector<1x128xbf16>
    %cst_18 = arith.constant dense<0.000000e+00> : vector<1x128xf32>
    %55 = tpu.matmul %54, %1, %cst_18 {dimension_numbers = #tpu.dot_dimension_numbers<[1], [0], [0], [1], [0, 0, 1, 1], [], []>} : vector<1x128xbf16>, vector<128x128xbf16>, vector<1x128xf32> -> vector<1x128xf32>
    %56 = arith.addf %51, %55 : vector<1x128xf32>
    %57 = arith.addf %56, %3 : vector<1x128xf32>
    %58 = math.tanh %57 : vector<1x128xf32>
    %c3_i32 = arith.constant 3 : i32
    %59 = vector.broadcast %c3_i32 : i32 to vector<8x128xi32>
    %60 = arith.cmpi eq, %6, %59 : vector<8x128xi32>
    %61 = vector.shape_cast %58 : vector<1x128xf32> to vector<1x128xf32>
    %62 = vector.broadcast %61 : vector<1x128xf32> to vector<8x128xf32>
    %63 = arith.select %60, %62, %49 : vector<8x128xi1>, vector<8x128xf32>
    %64 = arith.truncf %58 : vector<1x128xf32> to vector<1x128xbf16>
    %cst_19 = arith.constant dense<0.000000e+00> : vector<1x128xf32>
    %65 = tpu.matmul %64, %0, %cst_19 {dimension_numbers = #tpu.dot_dimension_numbers<[1], [0], [0], [1], [0, 0, 1, 1], [], []>} : vector<1x128xbf16>, vector<128x128xbf16>, vector<1x128xf32> -> vector<1x128xf32>
    %66 = arith.addf %65, %2 : vector<1x128xf32>
    %67 = math.tanh %66 : vector<1x128xf32>
    %68 = arith.truncf %67 : vector<1x128xf32> to vector<1x128xbf16>
    %cst_20 = arith.constant dense<0.000000e+00> : vector<1x128xf32>
    %69 = tpu.matmul %68, %1, %cst_20 {dimension_numbers = #tpu.dot_dimension_numbers<[1], [0], [0], [1], [0, 0, 1, 1], [], []>} : vector<1x128xbf16>, vector<128x128xbf16>, vector<1x128xf32> -> vector<1x128xf32>
    %70 = arith.addf %65, %69 : vector<1x128xf32>
    %71 = arith.addf %70, %3 : vector<1x128xf32>
    %72 = math.tanh %71 : vector<1x128xf32>
    %c4_i32 = arith.constant 4 : i32
    %73 = vector.broadcast %c4_i32 : i32 to vector<8x128xi32>
    %74 = arith.cmpi eq, %6, %73 : vector<8x128xi32>
    %75 = vector.shape_cast %72 : vector<1x128xf32> to vector<1x128xf32>
    %76 = vector.broadcast %75 : vector<1x128xf32> to vector<8x128xf32>
    %77 = arith.select %74, %76, %63 : vector<8x128xi1>, vector<8x128xf32>
    %78 = arith.truncf %72 : vector<1x128xf32> to vector<1x128xbf16>
    %cst_21 = arith.constant dense<0.000000e+00> : vector<1x128xf32>
    %79 = tpu.matmul %78, %0, %cst_21 {dimension_numbers = #tpu.dot_dimension_numbers<[1], [0], [0], [1], [0, 0, 1, 1], [], []>} : vector<1x128xbf16>, vector<128x128xbf16>, vector<1x128xf32> -> vector<1x128xf32>
    %80 = arith.addf %79, %2 : vector<1x128xf32>
    %81 = math.tanh %80 : vector<1x128xf32>
    %82 = arith.truncf %81 : vector<1x128xf32> to vector<1x128xbf16>
    %cst_22 = arith.constant dense<0.000000e+00> : vector<1x128xf32>
    %83 = tpu.matmul %82, %1, %cst_22 {dimension_numbers = #tpu.dot_dimension_numbers<[1], [0], [0], [1], [0, 0, 1, 1], [], []>} : vector<1x128xbf16>, vector<128x128xbf16>, vector<1x128xf32> -> vector<1x128xf32>
    %84 = arith.addf %79, %83 : vector<1x128xf32>
    %85 = arith.addf %84, %3 : vector<1x128xf32>
    %86 = math.tanh %85 : vector<1x128xf32>
    %c5_i32 = arith.constant 5 : i32
    %87 = vector.broadcast %c5_i32 : i32 to vector<8x128xi32>
    %88 = arith.cmpi eq, %6, %87 : vector<8x128xi32>
    %89 = vector.shape_cast %86 : vector<1x128xf32> to vector<1x128xf32>
    %90 = vector.broadcast %89 : vector<1x128xf32> to vector<8x128xf32>
    %91 = arith.select %88, %90, %77 : vector<8x128xi1>, vector<8x128xf32>
    %92 = arith.truncf %86 : vector<1x128xf32> to vector<1x128xbf16>
    %cst_23 = arith.constant dense<0.000000e+00> : vector<1x128xf32>
    %93 = tpu.matmul %92, %0, %cst_23 {dimension_numbers = #tpu.dot_dimension_numbers<[1], [0], [0], [1], [0, 0, 1, 1], [], []>} : vector<1x128xbf16>, vector<128x128xbf16>, vector<1x128xf32> -> vector<1x128xf32>
    %94 = arith.addf %93, %2 : vector<1x128xf32>
    %95 = math.tanh %94 : vector<1x128xf32>
    %96 = arith.truncf %95 : vector<1x128xf32> to vector<1x128xbf16>
    %cst_24 = arith.constant dense<0.000000e+00> : vector<1x128xf32>
    %97 = tpu.matmul %96, %1, %cst_24 {dimension_numbers = #tpu.dot_dimension_numbers<[1], [0], [0], [1], [0, 0, 1, 1], [], []>} : vector<1x128xbf16>, vector<128x128xbf16>, vector<1x128xf32> -> vector<1x128xf32>
    %98 = arith.addf %93, %97 : vector<1x128xf32>
    %99 = arith.addf %98, %3 : vector<1x128xf32>
    %100 = math.tanh %99 : vector<1x128xf32>
    %c6_i32 = arith.constant 6 : i32
    %101 = vector.broadcast %c6_i32 : i32 to vector<8x128xi32>
    %102 = arith.cmpi eq, %6, %101 : vector<8x128xi32>
    %103 = vector.shape_cast %100 : vector<1x128xf32> to vector<1x128xf32>
    %104 = vector.broadcast %103 : vector<1x128xf32> to vector<8x128xf32>
    %105 = arith.select %102, %104, %91 : vector<8x128xi1>, vector<8x128xf32>
    %106 = arith.truncf %100 : vector<1x128xf32> to vector<1x128xbf16>
    %cst_25 = arith.constant dense<0.000000e+00> : vector<1x128xf32>
    %107 = tpu.matmul %106, %0, %cst_25 {dimension_numbers = #tpu.dot_dimension_numbers<[1], [0], [0], [1], [0, 0, 1, 1], [], []>} : vector<1x128xbf16>, vector<128x128xbf16>, vector<1x128xf32> -> vector<1x128xf32>
    %108 = arith.addf %107, %2 : vector<1x128xf32>
    %109 = math.tanh %108 : vector<1x128xf32>
    %110 = arith.truncf %109 : vector<1x128xf32> to vector<1x128xbf16>
    %cst_26 = arith.constant dense<0.000000e+00> : vector<1x128xf32>
    %111 = tpu.matmul %110, %1, %cst_26 {dimension_numbers = #tpu.dot_dimension_numbers<[1], [0], [0], [1], [0, 0, 1, 1], [], []>} : vector<1x128xbf16>, vector<128x128xbf16>, vector<1x128xf32> -> vector<1x128xf32>
    %112 = arith.addf %107, %111 : vector<1x128xf32>
    %113 = arith.addf %112, %3 : vector<1x128xf32>
    %114 = math.tanh %113 : vector<1x128xf32>
    %c7_i32 = arith.constant 7 : i32
    %115 = vector.broadcast %c7_i32 : i32 to vector<8x128xi32>
    %116 = arith.cmpi eq, %6, %115 : vector<8x128xi32>
    %117 = vector.shape_cast %114 : vector<1x128xf32> to vector<1x128xf32>
    %118 = vector.broadcast %117 : vector<1x128xf32> to vector<8x128xf32>
    %119 = arith.select %116, %118, %105 : vector<8x128xi1>, vector<8x128xf32>
    tpu.wait_dma2 semaphore(%arg10 : memref<!tpu.dma_semaphore, #tpu.memory_space<semaphore_mem>>) src(%arg6 : memref<128x4864xbf16, #tpu.memory_space<any>>) dst(%arg9 : memref<128x4864xbf16, #tpu.memory_space<vmem>>)
    %c0_27 = arith.constant 0 : index
    %c0_28 = arith.constant 0 : index
    %120 = vector.load %arg9[%c0_27, %c0_28] : memref<128x4864xbf16, #tpu.memory_space<vmem>>, vector<128x4864xbf16>
    %121 = arith.truncf %119 : vector<8x128xf32> to vector<8x128xbf16>
    %cst_29 = arith.constant dense<0.000000e+00> : vector<8x4864xf32>
    %122 = tpu.matmul %121, %120, %cst_29 {dimension_numbers = #tpu.dot_dimension_numbers<[1], [0], [0], [1], [0, 0, 1, 1], [], []>} : vector<8x128xbf16>, vector<128x4864xbf16>, vector<8x4864xf32> -> vector<8x4864xf32>
    %123 = vector.broadcast %4 : vector<1x4864xf32> to vector<8x4864xf32>
    %124 = arith.addf %122, %123 : vector<8x4864xf32>
    %c0_30 = arith.constant 0 : index
    %c0_31 = arith.constant 0 : index
    %125 = vector.load %arg8[%c0_30, %c0_31] : memref<16x4864xf32, #tpu.memory_space<vmem>>, vector<8x4864xf32>
    tpu.vector_store %arg8[%c0_30, %c0_31], %124 {strides = array<i32>} : memref<16x4864xf32, #tpu.memory_space<vmem>>, vector<8x4864xf32>,
    %cst_32 = arith.constant 0.000000e+00 : f32
    %126 = vector.broadcast %cst_32 : f32 to vector<8x128xf32>
    %127 = arith.truncf %114 : vector<1x128xf32> to vector<1x128xbf16>
    %cst_33 = arith.constant dense<0.000000e+00> : vector<1x128xf32>
    %128 = tpu.matmul %127, %0, %cst_33 {dimension_numbers = #tpu.dot_dimension_numbers<[1], [0], [0], [1], [0, 0, 1, 1], [], []>} : vector<1x128xbf16>, vector<128x128xbf16>, vector<1x128xf32> -> vector<1x128xf32>
    %129 = arith.addf %128, %2 : vector<1x128xf32>
    %130 = math.tanh %129 : vector<1x128xf32>
    %131 = arith.truncf %130 : vector<1x128xf32> to vector<1x128xbf16>
    %cst_34 = arith.constant dense<0.000000e+00> : vector<1x128xf32>
    %132 = tpu.matmul %131, %1, %cst_34 {dimension_numbers = #tpu.dot_dimension_numbers<[1], [0], [0], [1], [0, 0, 1, 1], [], []>} : vector<1x128xbf16>, vector<128x128xbf16>, vector<1x128xf32> -> vector<1x128xf32>
    %133 = arith.addf %128, %132 : vector<1x128xf32>
    %134 = arith.addf %133, %3 : vector<1x128xf32>
    %135 = math.tanh %134 : vector<1x128xf32>
    %c0_i32_35 = arith.constant 0 : i32
    %136 = vector.broadcast %c0_i32_35 : i32 to vector<8x128xi32>
    %137 = arith.cmpi eq, %6, %136 : vector<8x128xi32>
    %138 = vector.shape_cast %135 : vector<1x128xf32> to vector<1x128xf32>
    %139 = vector.broadcast %138 : vector<1x128xf32> to vector<8x128xf32>
    %140 = arith.select %137, %139, %126 : vector<8x128xi1>, vector<8x128xf32>
    %141 = arith.truncf %135 : vector<1x128xf32> to vector<1x128xbf16>
    %cst_36 = arith.constant dense<0.000000e+00> : vector<1x128xf32>
    %142 = tpu.matmul %141, %0, %cst_36 {dimension_numbers = #tpu.dot_dimension_numbers<[1], [0], [0], [1], [0, 0, 1, 1], [], []>} : vector<1x128xbf16>, vector<128x128xbf16>, vector<1x128xf32> -> vector<1x128xf32>
    %143 = arith.addf %142, %2 : vector<1x128xf32>
    %144 = math.tanh %143 : vector<1x128xf32>
    %145 = arith.truncf %144 : vector<1x128xf32> to vector<1x128xbf16>
    %cst_37 = arith.constant dense<0.000000e+00> : vector<1x128xf32>
    %146 = tpu.matmul %145, %1, %cst_37 {dimension_numbers = #tpu.dot_dimension_numbers<[1], [0], [0], [1], [0, 0, 1, 1], [], []>} : vector<1x128xbf16>, vector<128x128xbf16>, vector<1x128xf32> -> vector<1x128xf32>
    %147 = arith.addf %142, %146 : vector<1x128xf32>
    %148 = arith.addf %147, %3 : vector<1x128xf32>
    %149 = math.tanh %148 : vector<1x128xf32>
    %c1_i32_38 = arith.constant 1 : i32
    %150 = vector.broadcast %c1_i32_38 : i32 to vector<8x128xi32>
    %151 = arith.cmpi eq, %6, %150 : vector<8x128xi32>
    %152 = vector.shape_cast %149 : vector<1x128xf32> to vector<1x128xf32>
    %153 = vector.broadcast %152 : vector<1x128xf32> to vector<8x128xf32>
    %154 = arith.select %151, %153, %140 : vector<8x128xi1>, vector<8x128xf32>
    %155 = arith.truncf %149 : vector<1x128xf32> to vector<1x128xbf16>
    %cst_39 = arith.constant dense<0.000000e+00> : vector<1x128xf32>
    %156 = tpu.matmul %155, %0, %cst_39 {dimension_numbers = #tpu.dot_dimension_numbers<[1], [0], [0], [1], [0, 0, 1, 1], [], []>} : vector<1x128xbf16>, vector<128x128xbf16>, vector<1x128xf32> -> vector<1x128xf32>
    %157 = arith.addf %156, %2 : vector<1x128xf32>
    %158 = math.tanh %157 : vector<1x128xf32>
    %159 = arith.truncf %158 : vector<1x128xf32> to vector<1x128xbf16>
    %cst_40 = arith.constant dense<0.000000e+00> : vector<1x128xf32>
    %160 = tpu.matmul %159, %1, %cst_40 {dimension_numbers = #tpu.dot_dimension_numbers<[1], [0], [0], [1], [0, 0, 1, 1], [], []>} : vector<1x128xbf16>, vector<128x128xbf16>, vector<1x128xf32> -> vector<1x128xf32>
    %161 = arith.addf %156, %160 : vector<1x128xf32>
    %162 = arith.addf %161, %3 : vector<1x128xf32>
    %163 = math.tanh %162 : vector<1x128xf32>
    %c2_i32_41 = arith.constant 2 : i32
    %164 = vector.broadcast %c2_i32_41 : i32 to vector<8x128xi32>
    %165 = arith.cmpi eq, %6, %164 : vector<8x128xi32>
    %166 = vector.shape_cast %163 : vector<1x128xf32> to vector<1x128xf32>
    %167 = vector.broadcast %166 : vector<1x128xf32> to vector<8x128xf32>
    %168 = arith.select %165, %167, %154 : vector<8x128xi1>, vector<8x128xf32>
    %169 = arith.truncf %163 : vector<1x128xf32> to vector<1x128xbf16>
    %cst_42 = arith.constant dense<0.000000e+00> : vector<1x128xf32>
    %170 = tpu.matmul %169, %0, %cst_42 {dimension_numbers = #tpu.dot_dimension_numbers<[1], [0], [0], [1], [0, 0, 1, 1], [], []>} : vector<1x128xbf16>, vector<128x128xbf16>, vector<1x128xf32> -> vector<1x128xf32>
    %171 = arith.addf %170, %2 : vector<1x128xf32>
    %172 = math.tanh %171 : vector<1x128xf32>
    %173 = arith.truncf %172 : vector<1x128xf32> to vector<1x128xbf16>
    %cst_43 = arith.constant dense<0.000000e+00> : vector<1x128xf32>
    %174 = tpu.matmul %173, %1, %cst_43 {dimension_numbers = #tpu.dot_dimension_numbers<[1], [0], [0], [1], [0, 0, 1, 1], [], []>} : vector<1x128xbf16>, vector<128x128xbf16>, vector<1x128xf32> -> vector<1x128xf32>
    %175 = arith.addf %170, %174 : vector<1x128xf32>
    %176 = arith.addf %175, %3 : vector<1x128xf32>
    %177 = math.tanh %176 : vector<1x128xf32>
    %c3_i32_44 = arith.constant 3 : i32
    %178 = vector.broadcast %c3_i32_44 : i32 to vector<8x128xi32>
    %179 = arith.cmpi eq, %6, %178 : vector<8x128xi32>
    %180 = vector.shape_cast %177 : vector<1x128xf32> to vector<1x128xf32>
    %181 = vector.broadcast %180 : vector<1x128xf32> to vector<8x128xf32>
    %182 = arith.select %179, %181, %168 : vector<8x128xi1>, vector<8x128xf32>
    %183 = arith.truncf %177 : vector<1x128xf32> to vector<1x128xbf16>
    %cst_45 = arith.constant dense<0.000000e+00> : vector<1x128xf32>
    %184 = tpu.matmul %183, %0, %cst_45 {dimension_numbers = #tpu.dot_dimension_numbers<[1], [0], [0], [1], [0, 0, 1, 1], [], []>} : vector<1x128xbf16>, vector<128x128xbf16>, vector<1x128xf32> -> vector<1x128xf32>
    %185 = arith.addf %184, %2 : vector<1x128xf32>
    %186 = math.tanh %185 : vector<1x128xf32>
    %187 = arith.truncf %186 : vector<1x128xf32> to vector<1x128xbf16>
    %cst_46 = arith.constant dense<0.000000e+00> : vector<1x128xf32>
    %188 = tpu.matmul %187, %1, %cst_46 {dimension_numbers = #tpu.dot_dimension_numbers<[1], [0], [0], [1], [0, 0, 1, 1], [], []>} : vector<1x128xbf16>, vector<128x128xbf16>, vector<1x128xf32> -> vector<1x128xf32>
    %189 = arith.addf %184, %188 : vector<1x128xf32>
    %190 = arith.addf %189, %3 : vector<1x128xf32>
    %191 = math.tanh %190 : vector<1x128xf32>
    %c4_i32_47 = arith.constant 4 : i32
    %192 = vector.broadcast %c4_i32_47 : i32 to vector<8x128xi32>
    %193 = arith.cmpi eq, %6, %192 : vector<8x128xi32>
    %194 = vector.shape_cast %191 : vector<1x128xf32> to vector<1x128xf32>
    %195 = vector.broadcast %194 : vector<1x128xf32> to vector<8x128xf32>
    %196 = arith.select %193, %195, %182 : vector<8x128xi1>, vector<8x128xf32>
    %197 = arith.truncf %191 : vector<1x128xf32> to vector<1x128xbf16>
    %cst_48 = arith.constant dense<0.000000e+00> : vector<1x128xf32>
    %198 = tpu.matmul %197, %0, %cst_48 {dimension_numbers = #tpu.dot_dimension_numbers<[1], [0], [0], [1], [0, 0, 1, 1], [], []>} : vector<1x128xbf16>, vector<128x128xbf16>, vector<1x128xf32> -> vector<1x128xf32>
    %199 = arith.addf %198, %2 : vector<1x128xf32>
    %200 = math.tanh %199 : vector<1x128xf32>
    %201 = arith.truncf %200 : vector<1x128xf32> to vector<1x128xbf16>
    %cst_49 = arith.constant dense<0.000000e+00> : vector<1x128xf32>
    %202 = tpu.matmul %201, %1, %cst_49 {dimension_numbers = #tpu.dot_dimension_numbers<[1], [0], [0], [1], [0, 0, 1, 1], [], []>} : vector<1x128xbf16>, vector<128x128xbf16>, vector<1x128xf32> -> vector<1x128xf32>
    %203 = arith.addf %198, %202 : vector<1x128xf32>
    %204 = arith.addf %203, %3 : vector<1x128xf32>
    %205 = math.tanh %204 : vector<1x128xf32>
    %c5_i32_50 = arith.constant 5 : i32
    %206 = vector.broadcast %c5_i32_50 : i32 to vector<8x128xi32>
    %207 = arith.cmpi eq, %6, %206 : vector<8x128xi32>
    %208 = vector.shape_cast %205 : vector<1x128xf32> to vector<1x128xf32>
    %209 = vector.broadcast %208 : vector<1x128xf32> to vector<8x128xf32>
    %210 = arith.select %207, %209, %196 : vector<8x128xi1>, vector<8x128xf32>
    %211 = arith.truncf %205 : vector<1x128xf32> to vector<1x128xbf16>
    %cst_51 = arith.constant dense<0.000000e+00> : vector<1x128xf32>
    %212 = tpu.matmul %211, %0, %cst_51 {dimension_numbers = #tpu.dot_dimension_numbers<[1], [0], [0], [1], [0, 0, 1, 1], [], []>} : vector<1x128xbf16>, vector<128x128xbf16>, vector<1x128xf32> -> vector<1x128xf32>
    %213 = arith.addf %212, %2 : vector<1x128xf32>
    %214 = math.tanh %213 : vector<1x128xf32>
    %215 = arith.truncf %214 : vector<1x128xf32> to vector<1x128xbf16>
    %cst_52 = arith.constant dense<0.000000e+00> : vector<1x128xf32>
    %216 = tpu.matmul %215, %1, %cst_52 {dimension_numbers = #tpu.dot_dimension_numbers<[1], [0], [0], [1], [0, 0, 1, 1], [], []>} : vector<1x128xbf16>, vector<128x128xbf16>, vector<1x128xf32> -> vector<1x128xf32>
    %217 = arith.addf %212, %216 : vector<1x128xf32>
    %218 = arith.addf %217, %3 : vector<1x128xf32>
    %219 = math.tanh %218 : vector<1x128xf32>
    %c6_i32_53 = arith.constant 6 : i32
    %220 = vector.broadcast %c6_i32_53 : i32 to vector<8x128xi32>
    %221 = arith.cmpi eq, %6, %220 : vector<8x128xi32>
    %222 = vector.shape_cast %219 : vector<1x128xf32> to vector<1x128xf32>
    %223 = vector.broadcast %222 : vector<1x128xf32> to vector<8x128xf32>
    %224 = arith.select %221, %223, %210 : vector<8x128xi1>, vector<8x128xf32>
    %225 = arith.truncf %219 : vector<1x128xf32> to vector<1x128xbf16>
    %cst_54 = arith.constant dense<0.000000e+00> : vector<1x128xf32>
    %226 = tpu.matmul %225, %0, %cst_54 {dimension_numbers = #tpu.dot_dimension_numbers<[1], [0], [0], [1], [0, 0, 1, 1], [], []>} : vector<1x128xbf16>, vector<128x128xbf16>, vector<1x128xf32> -> vector<1x128xf32>
    %227 = arith.addf %226, %2 : vector<1x128xf32>
    %228 = math.tanh %227 : vector<1x128xf32>
    %229 = arith.truncf %228 : vector<1x128xf32> to vector<1x128xbf16>
    %cst_55 = arith.constant dense<0.000000e+00> : vector<1x128xf32>
    %230 = tpu.matmul %229, %1, %cst_55 {dimension_numbers = #tpu.dot_dimension_numbers<[1], [0], [0], [1], [0, 0, 1, 1], [], []>} : vector<1x128xbf16>, vector<128x128xbf16>, vector<1x128xf32> -> vector<1x128xf32>
    %231 = arith.addf %226, %230 : vector<1x128xf32>
    %232 = arith.addf %231, %3 : vector<1x128xf32>
    %233 = math.tanh %232 : vector<1x128xf32>
    %c7_i32_56 = arith.constant 7 : i32
    %234 = vector.broadcast %c7_i32_56 : i32 to vector<8x128xi32>
    %235 = arith.cmpi eq, %6, %234 : vector<8x128xi32>
    %236 = vector.shape_cast %233 : vector<1x128xf32> to vector<1x128xf32>
    %237 = vector.broadcast %236 : vector<1x128xf32> to vector<8x128xf32>
    %238 = arith.select %235, %237, %224 : vector<8x128xi1>, vector<8x128xf32>
    %239 = arith.truncf %238 : vector<8x128xf32> to vector<8x128xbf16>
    %cst_57 = arith.constant dense<0.000000e+00> : vector<8x4864xf32>
    %240 = tpu.matmul %239, %120, %cst_57 {dimension_numbers = #tpu.dot_dimension_numbers<[1], [0], [0], [1], [0, 0, 1, 1], [], []>} : vector<8x128xbf16>, vector<128x4864xbf16>, vector<8x4864xf32> -> vector<8x4864xf32>
    %241 = vector.broadcast %4 : vector<1x4864xf32> to vector<8x4864xf32>
    %242 = arith.addf %240, %241 : vector<8x4864xf32>
    %c8 = arith.constant 8 : index
    %c0_58 = arith.constant 0 : index
    %243 = vector.load %arg8[%c8, %c0_58] : memref<16x4864xf32, #tpu.memory_space<vmem>>, vector<8x4864xf32>
    tpu.vector_store %arg8[%c8, %c0_58], %242 {strides = array<i32>} : memref<16x4864xf32, #tpu.memory_space<vmem>>, vector<8x4864xf32>,
    return
  }
  func.func @transform_0(%arg0: i32) -> (i32, i32) {
    %c0_i32 = arith.constant 0 : i32
    %c0_i32_0 = arith.constant 0 : i32
    %c0_i32_1 = arith.constant 0 : i32
    return %c0_i32, %c0_i32_0 : i32, i32
  }
  func.func @transform_1(%arg0: i32) -> (i32, i32) {
    %c0_i32 = arith.constant 0 : i32
    %c0_i32_0 = arith.constant 0 : i32
    %c0_i32_1 = arith.constant 0 : i32
    return %c0_i32, %c0_i32_0 : i32, i32
  }
  func.func @transform_2(%arg0: i32) -> (i32, i32) {
    %c0_i32 = arith.constant 0 : i32
    %c0_i32_0 = arith.constant 0 : i32
    %c0_i32_1 = arith.constant 0 : i32
    return %c0_i32, %c0_i32_0 : i32, i32
  }
  func.func @transform_3(%arg0: i32) -> (i32, i32) {
    %c0_i32 = arith.constant 0 : i32
    %c0_i32_0 = arith.constant 0 : i32
    %c0_i32_1 = arith.constant 0 : i32
    return %c0_i32, %c0_i32_0 : i32, i32
  }
  func.func @transform_4(%arg0: i32) -> (i32, i32) {
    %c0_i32 = arith.constant 0 : i32
    %c0_i32_0 = arith.constant 0 : i32
    %c0_i32_1 = arith.constant 0 : i32
    return %c0_i32, %c0_i32_0 : i32, i32
  }
  func.func @transform_6(%arg0: i32) -> (i32, i32) {
    %c0_i32 = arith.constant 0 : i32
    %c0_i32_0 = arith.constant 0 : i32
    %c0_i32_1 = arith.constant 0 : i32
    return %c0_i32, %c0_i32_0 : i32, i32
  }
  func.func @transform_7(%arg0: i32) -> (i32, i32) {
    %c0_i32 = arith.constant 0 : i32
    %c0_i32_0 = arith.constant 0 : i32
    %c0_i32_1 = arith.constant 0 : i32
    return %c0_i32, %c0_i32_0 : i32, i32
  }
}

</mosaic_0001>

<bundles_post_ra>
// kernel: tpu_custom_call.1
= control target key start
LH: loop header
LB: loop body
LE: loop exit
PB: predicated region body
PF: predicated region fallthrough
CT: control target
= control target key end

     0   :  { %12 = vsyncpa [#allocation5], 0  ;;  %s7666_s0 = inlined_call_operand.hbm [shape: f32[1,128], index: 0, kind: input, shape index: {}]   ;;  %s7667_s1 = inlined_call_operand.hbm [shape: bf16[128,128], index: 1, kind: input, shape index: {}]   ;;  %s7668_s2 = inlined_call_operand.hbm [shape: bf16[128,128], index: 2, kind: input, shape index: {}]   ;;  %s7669_s3 = inlined_call_operand.hbm [shape: f32[1,128], index: 3, kind: input, shape index: {}]   ;;  %s7670_s4 = inlined_call_operand.hbm [shape: f32[1,128], index: 4, kind: input, shape index: {}]   ;;  %s7671_s5 = inlined_call_operand.hbm [shape: bf16[128,4864], index: 5, kind: input, shape index: {}]   ;;  %s7672_s6 = inlined_call_operand.hbm [shape: f32[1,4864], index: 6, kind: input, shape index: {}]   ;;  %s7673_s7 = inlined_call_operand.hbm [shape: f32[16,4864], index: 7, kind: output, shape index: {}]  }
   0x1   :  { %13 = vsyncpa [#allocation8], 0 }
   0x2   :  { %14 = vsyncpa [#allocation11], 0 }
   0x3   :  { %15 = vsyncpa [#allocation14], 0  ;;  %s32_s26 = sshll.u32 %s7667_s1, 4  ;;  %s33_s26 = int_to_ptr.hbm [resolvable:$true] %s32_s26 }
   0x4   :  { %16 = vsyncpa [#allocation6], 0  ;;  %s5714_s27 = smov [#allocation7]   ;;  %s59_s8 = sshll.u32 %s7669_s3, 4  ;;  %s60_s8 = int_to_ptr.hbm [resolvable:$true] %s59_s8 }
   0x5   :  { %s34_s28 = sshll.u32 %s5714_s27, 4  ;;  %s5715_s9 = smov 64   ;;  %s35_s28 = int_to_ptr.vmem [resolvable:$true] %s34_s28 }
   0x6   :  { %s5716_s10 = smov 4   ;;  %s5717_s11 = smov [#allocation10]  }
   0x7   :  { %40 = dma.hbm_to_vmem [thread:$0]  %s33_s26, 1024, %s35_s28, [#allocation8], %s5715_s9, %s5715_s9, %s5716_s10  }
   0x8   :  { %s61_s12 = sshll.u32 %s5717_s11, 4  ;;  %s22_s15 = sshll.u32 %s7666_s0, 4  ;;  %s62_s12 = int_to_ptr.vmem [resolvable:$true] %s61_s12  ;;  %s23_s15 = int_to_ptr.hbm [resolvable:$true] %s22_s15 }
   0x9   :  { %64 = dma.hbm_to_vmem [thread:$0]  %s60_s8, 16, %s62_s12, [#allocation11]  }
   0xa   :  { %s45_s17 = sshll.u32 %s7668_s2, 4  ;;  %s5718_s18 = smov [#allocation4]   ;;  %s46_s17 = int_to_ptr.hbm [resolvable:$true] %s45_s17 }
   0xb   :  { %s24_s19 = sshll.u32 %s5718_s18, 4  ;;  %s5719_s3 = smov [#allocation9]   ;;  %s25_s19 = int_to_ptr.vmem [resolvable:$true] %s24_s19 }
   0xc   :  { %27 = dma.hbm_to_vmem [thread:$0]  %s23_s15, 16, %s25_s19, [#allocation5]  }
   0xd   :  { %s47_s20 = sshll.u32 %s5719_s3, 4  ;;  %s70_s23 = sshll.u32 %s7670_s4, 4  ;;  %s48_s20 = int_to_ptr.vmem [resolvable:$true] %s47_s20  ;;  %s71_s23 = int_to_ptr.hbm [resolvable:$true] %s70_s23 }
   0xe   :  { %53 = dma.hbm_to_vmem [thread:$0]  %s46_s17, 1024, %s48_s20, [#allocation8], %s5715_s9, %s5715_s9, %s5716_s10  }
   0xf   :  { %s81_s25 = sshll.u32 %s7672_s6, 4  ;;  %s5720_s26 = smov [#allocation12]   ;;  %s82_s25 = int_to_ptr.hbm [resolvable:$true] %s81_s25 }
  0x10   :  { %s72_s2 = sshll.u32 %s5720_s26, 4  ;;  %s5721_s27 = smov [#allocation13]   ;;  %s73_s2 = int_to_ptr.vmem [resolvable:$true] %s72_s2 }
  0x11   :  { %75 = dma.hbm_to_vmem [thread:$0]  %s71_s23, 16, %s73_s2, [#allocation11]  }
  0x12   :  { %s83_s28 = sshll.u32 %s5721_s27, 4  ;;  %s84_s28 = int_to_ptr.vmem [resolvable:$true] %s83_s28 }
  0x13   :  { %86 = dma.hbm_to_vmem [thread:$0]  %s82_s25, 608, %s84_s28, [#allocation14]  }
  0x14   :  { %5702 = dma.done.wait [#allocation5], 16  }
  0x15   :  { %5703 = vsyncadd [#allocation5], 4294967280 }
  0x16   :  { %5704 = dma.done.wait [#allocation8], 2048  }
  0x17   :  { %5705 = vsyncadd [#allocation8], 4294965248 }
  0x18   :  { %5706 = dma.done.wait [#allocation11], 32  }
  0x19   :  { %5707 = vsyncadd [#allocation11], 4294967264 }
  0x1a   :  { %5708 = dma.done.wait [#allocation14], 608  }
  0x1b   :  { %5709 = vsyncadd [#allocation14], 4294966688  ;;  %v5784_v0 = vld [vmem:[#allocation13] sm:$0xff]  ;;  %v5786_v1 = vld [vmem:[#allocation13 + $0x8] sm:$0xff]  ;;  %v164_v43 = vlaneseq  ;;  %s118_s29 = sshll.u32 %s7671_s5, 4  ;;  %s5722_s30 = smov [#allocation2]   ;;  %s119_s29 = int_to_ptr.hbm [resolvable:$true] %s118_s29 }
  0x1c   :  { %7992 = vst [vmem:[#allocation26_spill] sm:$0xff] %v5786_v1  ;;  %v5788_v2 = vld [vmem:[#allocation13 + $0x10] sm:$0xff]  ;;  %v5790_v3 = vld [vmem:[#allocation13 + $0x18] sm:$0xff]  ;;  %v5792_v4 = vld [vmem:[#allocation13 + $0x20] sm:$0x3f]  ;;  %s120_s8 = sshll.u32 %s5722_s30, 4  ;;  %s121_s8 = int_to_ptr.vmem [resolvable:$true] %s120_s8 }
  0x1d   :  { %7993 = vst [vmem:[#allocation27_spill] sm:$0xff] %v5790_v3  ;;  %v5794_v5 = vld [vmem:[#allocation7 + $0x38] sm:$0xff]  ;;  %v5797_v6 = vld [vmem:[#allocation7 + $0x30] sm:$0xff]  ;;  %v5807_v9 = vld [vmem:[#allocation7 + $0x28] sm:$0xff]  ;;  %v5930_v45 = vshrl.u32 %v164_v43, 7 }
  0x1e   :  { %215 = vmatpush.bf16.msra.mxu0 %v5794_v5  ;;  %299 = vmatpush.bf16.msra.mxu2 %v5794_v5  ;;  %v5800_v7 = vld [vmem:[#allocation9 + $0x38] sm:$0xff]  ;;  %v5803_v8 = vld [vmem:[#allocation9 + $0x30] sm:$0xff]  ;;  %v5811_v10 = vld [vmem:[#allocation9 + $0x28] sm:$0xff]  ;;  %123 = dma.hbm_to_vmem [thread:$0]  %s119_s29, 38912, %s121_s8, [#allocation3] }
  0x1f   :  { %279 = vmatpush.bf16.msra.mxu1 %v5800_v7  ;;  %315 = vmatpush.bf16.msra.mxu3 %v5800_v7  ;;  %v5815_v11 = vld [vmem:[#allocation7 + $0x20] sm:$0xff]  ;;  %v5823_v13 = vld [vmem:[#allocation7 + $0x18] sm:$0xff]  ;;  %v5831_v15 = vld [vmem:[#allocation7 + $0x10] sm:$0xff]  ;;  %vm295_vm0 = vcmp.eq.s32.totalorder %v5930_v45, 0  ;;  %vm331_vm1 = vcmp.eq.s32.totalorder %v5930_v45, 1  ;;  %vm367_vm2 = vcmp.eq.s32.totalorder %v5930_v45, 2 }
  0x20   :  { %v5819_v12 = vld [vmem:[#allocation9 + $0x20] sm:$0xff]  ;;  %v5827_v14 = vld [vmem:[#allocation9 + $0x18] sm:$0xff]  ;;  %v5837_v16 = vld [vmem:[#allocation7 + $0x8] sm:$0xff]  ;;  %vm403_vm3 = vcmp.eq.s32.totalorder %v5930_v45, 3  ;;  %vm439_vm4 = vcmp.eq.s32.totalorder %v5930_v45, 4  ;;  %vm475_vm5 = vcmp.eq.s32.totalorder %v5930_v45, 5 }
  0x21   :  { %v5841_v17 = vld [vmem:[#allocation7] sm:$0xff]  ;;  %v163_v18 = vld [vmem:[#allocation4] sm:$0x1]  ;;  %v5870_v20 = vld [vmem:[#allocation9 + $0x10] sm:$0xff]  ;;  %vm511_vm6 = vcmp.eq.s32.totalorder %v5930_v45, 6  ;;  %vm547_vm7 = vcmp.eq.s32.totalorder %v5930_v45, 7 }
  0x22   :  { %216 = vmatpush.bf16.msra.mxu0 %v5797_v6  ;;  %300 = vmatpush.bf16.msra.mxu2 %v5797_v6  ;;  %v166_v19 = vpack.c.bf16 %v163_v18, %v163_v18  ;;  %v5874_v21 = vld [vmem:[#allocation9 + $0x8] sm:$0xff]  ;;  %v5878_v22 = vld [vmem:[#allocation9] sm:$0xff] }
  0x23   :  { %280 = vmatpush.bf16.msra.mxu1 %v5803_v8  ;;  %316 = vmatpush.bf16.msra.mxu3 %v5803_v8  ;;  %v5892_v23 = vld [vmem:[#allocation10] sm:$0x1]  ;;  %v5909_v29 = vld [vmem:[#allocation12] sm:$0x1] }
  0x26   :  { %217 = vmatpush.bf16.msra.mxu0 %v5807_v9  ;;  %301 = vmatpush.bf16.msra.mxu2 %v5807_v9 }
  0x27   :  { %281 = vmatpush.bf16.msra.mxu1 %v5811_v10  ;;  %317 = vmatpush.bf16.msra.mxu3 %v5811_v10 }
  0x2a   :  { %218 = vmatpush.bf16.msra.mxu0 %v5815_v11  ;;  %302 = vmatpush.bf16.msra.mxu2 %v5815_v11 }
  0x2b   :  { %282 = vmatpush.bf16.msra.mxu1 %v5819_v12  ;;  %318 = vmatpush.bf16.msra.mxu3 %v5819_v12 }
  0x2e   :  { %219 = vmatpush.bf16.msra.mxu0 %v5823_v13  ;;  %303 = vmatpush.bf16.msra.mxu2 %v5823_v13 }
  0x2f   :  { %283 = vmatpush.bf16.msra.mxu1 %v5827_v14  ;;  %319 = vmatpush.bf16.msra.mxu3 %v5827_v14 }
  0x32   :  { %220 = vmatpush.bf16.msra.mxu0 %v5831_v15  ;;  %304 = vmatpush.bf16.msra.mxu2 %v5831_v15 }
  0x33   :  { %284 = vmatpush.bf16.msra.mxu1 %v5870_v20  ;;  %320 = vmatpush.bf16.msra.mxu3 %v5870_v20 }
  0x36   :  { %221 = vmatpush.bf16.msra.mxu0 %v5837_v16  ;;  %305 = vmatpush.bf16.msra.mxu2 %v5837_v16 }
  0x37   :  { %285 = vmatpush.bf16.msra.mxu1 %v5874_v21  ;;  %321 = vmatpush.bf16.msra.mxu3 %v5874_v21 }
  0x3a   :  { %222 = vmatpush.bf16.msra.mxu0 %v5841_v17  ;;  %306 = vmatpush.bf16.msra.mxu2 %v5841_v17 }
  0x3b   :  { %286 = vmatpush.bf16.msra.mxu1 %v5878_v22  ;;  %322 = vmatpush.bf16.msra.mxu3 %v5878_v22 }
  0x3d   :  { %223 = vmatmul.bf16.vlgmr.msra.gmra.mxu0 %v166_v19 }
  0x3e   :  { %335 = vmatpush.bf16.msrb.mxu0 %v5794_v5  ;;  %371 = vmatpush.bf16.msrb.mxu2 %v5794_v5 }
  0x3f   :  { %351 = vmatpush.bf16.msrb.mxu1 %v5800_v7  ;;  %387 = vmatpush.bf16.msrb.mxu3 %v5800_v7 }
  0x42   :  { %336 = vmatpush.bf16.msrb.mxu0 %v5797_v6  ;;  %372 = vmatpush.bf16.msrb.mxu2 %v5797_v6 }
  0x43   :  { %352 = vmatpush.bf16.msrb.mxu1 %v5803_v8  ;;  %388 = vmatpush.bf16.msrb.mxu3 %v5803_v8 }
  0x46   :  { %337 = vmatpush.bf16.msrb.mxu0 %v5807_v9  ;;  %373 = vmatpush.bf16.msrb.mxu2 %v5807_v9 }
  0x47   :  { %353 = vmatpush.bf16.msrb.mxu1 %v5811_v10  ;;  %389 = vmatpush.bf16.msrb.mxu3 %v5811_v10 }
  0x4a   :  { %338 = vmatpush.bf16.msrb.mxu0 %v5815_v11  ;;  %374 = vmatpush.bf16.msrb.mxu2 %v5815_v11 }
  0x4b   :  { %354 = vmatpush.bf16.msrb.mxu1 %v5819_v12  ;;  %390 = vmatpush.bf16.msrb.mxu3 %v5819_v12 }
  0x4e   :  { %339 = vmatpush.bf16.msrb.mxu0 %v5823_v13  ;;  %375 = vmatpush.bf16.msrb.mxu2 %v5823_v13 }
  0x4f   :  { %355 = vmatpush.bf16.msrb.mxu1 %v5827_v14  ;;  %391 = vmatpush.bf16.msrb.mxu3 %v5827_v14 }
  0x52   :  { %340 = vmatpush.bf16.msrb.mxu0 %v5831_v15  ;;  %376 = vmatpush.bf16.msrb.mxu2 %v5831_v15 }
  0x53   :  { %356 = vmatpush.bf16.msrb.mxu1 %v5870_v20  ;;  %392 = vmatpush.bf16.msrb.mxu3 %v5870_v20 }
  0x56   :  { %341 = vmatpush.bf16.msrb.mxu0 %v5837_v16  ;;  %377 = vmatpush.bf16.msrb.mxu2 %v5837_v16 }
  0x57   :  { %357 = vmatpush.bf16.msrb.mxu1 %v5874_v21  ;;  %393 = vmatpush.bf16.msrb.mxu3 %v5874_v21 }
  0x5a   :  { %342 = vmatpush.bf16.msrb.mxu0 %v5841_v17  ;;  %378 = vmatpush.bf16.msrb.mxu2 %v5841_v17 }
  0x5b   :  { %358 = vmatpush.bf16.msrb.mxu1 %v5878_v22  ;;  %394 = vmatpush.bf16.msrb.mxu3 %v5878_v22 }
  0x5e   :  { %407 = vmatpush.bf16.msra.mxu0 %v5794_v5 }
  0x62   :  { %408 = vmatpush.bf16.msra.mxu0 %v5797_v6 }
  0x66   :  { %409 = vmatpush.bf16.msra.mxu0 %v5807_v9 }
  0x6a   :  { %410 = vmatpush.bf16.msra.mxu0 %v5815_v11 }
  0x6e   :  { %411 = vmatpush.bf16.msra.mxu0 %v5823_v13 }
  0x72   :  { %412 = vmatpush.bf16.msra.mxu0 %v5831_v15 }
  0x76   :  { %413 = vmatpush.bf16.msra.mxu0 %v5837_v16 }
  0x7a   :  { %414 = vmatpush.bf16.msra.mxu0 %v5841_v17 }
  0xba   :  { %v224_v24 = vpop.f32.mrf.mxu0 }
  0xbb   :  { %v228_v25 = vadd.f32 %v224_v24, %v5892_v23 }
  0xbd   :  { %5446 = vtanh.f32 %v228_v25 }
  0xc2   :  { %v226_v26 = vpop.f32.mrf.mxu0 }
  0xc3   :  { %v5447_v27 = vpop.eup %5446 }
  0xc4   :  { %v230_v28 = vpack.c.bf16 %v5447_v27, %v5447_v27 }
  0xc6   :  { %287 = vmatmul.bf16.vlgmr.msra.gmra.mxu1 %v230_v28 }
  0xc7   :  { %423 = vmatpush.bf16.msra.mxu1 %v5800_v7 }
  0xcb   :  { %424 = vmatpush.bf16.msra.mxu1 %v5803_v8 }
  0xcf   :  { %425 = vmatpush.bf16.msra.mxu1 %v5811_v10 }
  0xd3   :  { %426 = vmatpush.bf16.msra.mxu1 %v5819_v12 }
  0xd7   :  { %427 = vmatpush.bf16.msra.mxu1 %v5827_v14 }
  0xdb   :  { %428 = vmatpush.bf16.msra.mxu1 %v5870_v20 }
  0xdf   :  { %429 = vmatpush.bf16.msra.mxu1 %v5874_v21 }
  0xe3   :  { %430 = vmatpush.bf16.msra.mxu1 %v5878_v22 }
 0x143   :  { %v288_v30 = vpop.f32.mrf.mxu1 }
 0x144   :  { %v292_v31 = vadd.f32 %v288_v30, %v224_v24 }
 0x146   :  { %v293_v32 = vadd.f32 %v292_v31, %v5909_v29 }
 0x148   :  { %5448 = vtanh.f32 %v293_v32 }
 0x14b   :  { %v290_v33 = vpop.f32.mrf.mxu1 }
 0x14e   :  { %v5449_v34 = vpop.eup %5448 }
 0x14f   :  { %v298_v35 = vpack.c.bf16 %v5449_v34, %v5449_v34  ;;  %v296_v47 = vperm.slane %v5449_v34, 0 }
 0x151   :  { %307 = vmatmul.bf16.vlgmr.msra.gmra.mxu2 %v298_v35  ;;  %v297_v51 = vsel %vm295_vm0, %v296_v47, 0.0 }
 0x152   :  { %443 = vmatpush.bf16.msra.mxu2 %v5794_v5 }
 0x156   :  { %444 = vmatpush.bf16.msra.mxu2 %v5797_v6 }
 0x15a   :  { %445 = vmatpush.bf16.msra.mxu2 %v5807_v9 }
 0x15e   :  { %446 = vmatpush.bf16.msra.mxu2 %v5815_v11 }
 0x162   :  { %447 = vmatpush.bf16.msra.mxu2 %v5823_v13 }
 0x166   :  { %448 = vmatpush.bf16.msra.mxu2 %v5831_v15 }
 0x16a   :  { %449 = vmatpush.bf16.msra.mxu2 %v5837_v16 }
 0x16e   :  { %450 = vmatpush.bf16.msra.mxu2 %v5841_v17 }
 0x1d4   :  { %v308_v36 = vpop.f32.mrf.mxu2 }
 0x1d5   :  { %v312_v37 = vadd.f32 %v308_v36, %v5892_v23 }
 0x1d7   :  { %5450 = vtanh.f32 %v312_v37 }
 0x1dc   :  { %v310_v38 = vpop.f32.mrf.mxu2 }
 0x1dd   :  { %v5451_v39 = vpop.eup %5450 }
 0x1de   :  { %v314_v40 = vpack.c.bf16 %v5451_v39, %v5451_v39 }
 0x1e0   :  { %323 = vmatmul.bf16.vlgmr.msra.gmra.mxu3 %v314_v40 }
 0x1e1   :  { %459 = vmatpush.bf16.msra.mxu3 %v5800_v7 }
 0x1e5   :  { %460 = vmatpush.bf16.msra.mxu3 %v5803_v8 }
 0x1e9   :  { %461 = vmatpush.bf16.msra.mxu3 %v5811_v10 }
 0x1ed   :  { %462 = vmatpush.bf16.msra.mxu3 %v5819_v12 }
 0x1f1   :  { %463 = vmatpush.bf16.msra.mxu3 %v5827_v14 }
 0x1f5   :  { %464 = vmatpush.bf16.msra.mxu3 %v5870_v20 }
 0x1f9   :  { %465 = vmatpush.bf16.msra.mxu3 %v5874_v21 }
 0x1fd   :  { %466 = vmatpush.bf16.msra.mxu3 %v5878_v22 }
 0x263   :  { %v324_v41 = vpop.f32.mrf.mxu3 }
 0x264   :  { %v328_v42 = vadd.f32 %v324_v41, %v308_v36 }
 0x266   :  { %v329_v44 = vadd.f32 %v328_v42, %v5909_v29 }
 0x268   :  { %5452 = vtanh.f32 %v329_v44 }
 0x26b   :  { %v326_v46 = vpop.f32.mrf.mxu3 }
 0x26e   :  { %v5453_v48 = vpop.eup %5452 }
 0x26f   :  { %v332_v49 = vperm.slane %v5453_v48, 0  ;;  %v334_v50 = vpack.c.bf16 %v5453_v48, %v5453_v48 }
 0x271   :  { %v333_v52 = vsel %vm331_vm1, %v332_v49, %v297_v51  ;;  %343 = vmatmul.bf16.vlgmr.msrb.gmra.mxu0 %v334_v50 }
 0x272   :  { %479 = vmatpush.bf16.msrb.mxu0 %v5794_v5 }
 0x276   :  { %480 = vmatpush.bf16.msrb.mxu0 %v5797_v6 }
 0x27a   :  { %481 = vmatpush.bf16.msrb.mxu0 %v5807_v9 }
 0x27e   :  { %482 = vmatpush.bf16.msrb.mxu0 %v5815_v11 }
 0x282   :  { %483 = vmatpush.bf16.msrb.mxu0 %v5823_v13 }
 0x286   :  { %484 = vmatpush.bf16.msrb.mxu0 %v5831_v15 }
 0x28a   :  { %485 = vmatpush.bf16.msrb.mxu0 %v5837_v16 }
 0x28e   :  { %486 = vmatpush.bf16.msrb.mxu0 %v5841_v17 }
 0x2ee   :  { %v344_v53 = vpop.f32.mrf.mxu0 }
 0x2ef   :  { %v348_v54 = vadd.f32 %v344_v53, %v5892_v23 }
 0x2f1   :  { %5454 = vtanh.f32 %v348_v54 }
 0x2f6   :  { %v346_v55 = vpop.f32.mrf.mxu0 }
 0x2f7   :  { %v5455_v56 = vpop.eup %5454 }
 0x2f8   :  { %v350_v57 = vpack.c.bf16 %v5455_v56, %v5455_v56 }
 0x2fa   :  { %359 = vmatmul.bf16.vlgmr.msrb.gmra.mxu1 %v350_v57 }
 0x2fb   :  { %495 = vmatpush.bf16.msrb.mxu1 %v5800_v7 }
 0x2ff   :  { %496 = vmatpush.bf16.msrb.mxu1 %v5803_v8 }
 0x303   :  { %497 = vmatpush.bf16.msrb.mxu1 %v5811_v10 }
 0x307   :  { %498 = vmatpush.bf16.msrb.mxu1 %v5819_v12 }
 0x30b   :  { %499 = vmatpush.bf16.msrb.mxu1 %v5827_v14 }
 0x30f   :  { %500 = vmatpush.bf16.msrb.mxu1 %v5870_v20 }
 0x313   :  { %501 = vmatpush.bf16.msrb.mxu1 %v5874_v21 }
 0x317   :  { %502 = vmatpush.bf16.msrb.mxu1 %v5878_v22 }
 0x377   :  { %v360_v58 = vpop.f32.mrf.mxu1 }
 0x378   :  { %v364_v59 = vadd.f32 %v360_v58, %v344_v53 }
 0x37a   :  { %v365_v60 = vadd.f32 %v364_v59, %v5909_v29 }
 0x37c   :  { %5456 = vtanh.f32 %v365_v60 }
 0x37f   :  { %v362_v61 = vpop.f32.mrf.mxu1 }
 0x382   :  { %v5457_v62 = vpop.eup %5456 }
 0x383   :  { %v368_v63 = vperm.slane %v5457_v62, 0  ;;  %v370_v18 = vpack.c.bf16 %v5457_v62, %v5457_v62 }
 0x385   :  { %v369_v19 = vsel %vm367_vm2, %v368_v63, %v333_v52  ;;  %379 = vmatmul.bf16.vlgmr.msrb.gmra.mxu2 %v370_v18 }
 0x386   :  { %515 = vmatpush.bf16.msrb.mxu2 %v5794_v5 }
 0x38a   :  { %516 = vmatpush.bf16.msrb.mxu2 %v5797_v6 }
 0x38e   :  { %517 = vmatpush.bf16.msrb.mxu2 %v5807_v9 }
 0x392   :  { %518 = vmatpush.bf16.msrb.mxu2 %v5815_v11 }
 0x396   :  { %519 = vmatpush.bf16.msrb.mxu2 %v5823_v13 }
 0x39a   :  { %520 = vmatpush.bf16.msrb.mxu2 %v5831_v15 }
 0x39e   :  { %521 = vmatpush.bf16.msrb.mxu2 %v5837_v16 }
 0x3a2   :  { %522 = vmatpush.bf16.msrb.mxu2 %v5841_v17 }
 0x408   :  { %v380_v24 = vpop.f32.mrf.mxu2 }
 0x409   :  { %v384_v25 = vadd.f32 %v380_v24, %v5892_v23 }
 0x40b   :  { %5458 = vtanh.f32 %v384_v25 }
 0x410   :  { %v382_v26 = vpop.f32.mrf.mxu2 }
 0x411   :  { %v5459_v27 = vpop.eup %5458 }
 0x412   :  { %v386_v28 = vpack.c.bf16 %v5459_v27, %v5459_v27 }
 0x414   :  { %395 = vmatmul.bf16.vlgmr.msrb.gmra.mxu3 %v386_v28 }
 0x415   :  { %531 = vmatpush.bf16.msrb.mxu3 %v5800_v7 }
 0x419   :  { %532 = vmatpush.bf16.msrb.mxu3 %v5803_v8 }
 0x41d   :  { %533 = vmatpush.bf16.msrb.mxu3 %v5811_v10 }
 0x421   :  { %534 = vmatpush.bf16.msrb.mxu3 %v5819_v12 }
 0x425   :  { %535 = vmatpush.bf16.msrb.mxu3 %v5827_v14 }
 0x429   :  { %536 = vmatpush.bf16.msrb.mxu3 %v5870_v20 }
 0x42d   :  { %537 = vmatpush.bf16.msrb.mxu3 %v5874_v21 }
 0x431   :  { %538 = vmatpush.bf16.msrb.mxu3 %v5878_v22 }
 0x497   :  { %v396_v30 = vpop.f32.mrf.mxu3 }
 0x498   :  { %v400_v31 = vadd.f32 %v396_v30, %v380_v24 }
 0x49a   :  { %v401_v32 = vadd.f32 %v400_v31, %v5909_v29 }
 0x49c   :  { %5460 = vtanh.f32 %v401_v32 }
 0x49f   :  { %v398_v33 = vpop.f32.mrf.mxu3 }
 0x4a2   :  { %v5461_v34 = vpop.eup %5460 }
 0x4a3   :  { %v404_v35 = vperm.slane %v5461_v34, 0  ;;  %v406_v36 = vpack.c.bf16 %v5461_v34, %v5461_v34 }
 0x4a5   :  { %v405_v37 = vsel %vm403_vm3, %v404_v35, %v369_v19  ;;  %415 = vmatmul.bf16.vlgmr.msra.gmra.mxu0 %v406_v36 }
 0x522   :  { %v416_v38 = vpop.f32.mrf.mxu0 }
 0x523   :  { %v420_v39 = vadd.f32 %v416_v38, %v5892_v23 }
 0x525   :  { %5462 = vtanh.f32 %v420_v39 }
 0x52a   :  { %v418_v40 = vpop.f32.mrf.mxu0 }
 0x52b   :  { %v5463_v41 = vpop.eup %5462 }
 0x52c   :  { %v422_v42 = vpack.c.bf16 %v5463_v41, %v5463_v41 }
 0x52e   :  { %431 = vmatmul.bf16.vlgmr.msra.gmra.mxu1 %v422_v42 }
 0x5ab   :  { %v432_v43 = vpop.f32.mrf.mxu1 }
 0x5ac   :  { %v436_v44 = vadd.f32 %v432_v43, %v416_v38 }
 0x5ae   :  { %v437_v46 = vadd.f32 %v436_v44, %v5909_v29 }
 0x5b0   :  { %5464 = vtanh.f32 %v437_v46 }
 0x5b3   :  { %v434_v47 = vpop.f32.mrf.mxu1 }
 0x5b6   :  { %v5465_v48 = vpop.eup %5464 }
 0x5b7   :  { %v440_v49 = vperm.slane %v5465_v48, 0  ;;  %v442_v50 = vpack.c.bf16 %v5465_v48, %v5465_v48 }
 0x5b9   :  { %v441_v51 = vsel %vm439_vm4, %v440_v49, %v405_v37  ;;  %451 = vmatmul.bf16.vlgmr.msra.gmra.mxu2 %v442_v50 }
 0x63c   :  { %v452_v52 = vpop.f32.mrf.mxu2 }
 0x63d   :  { %v456_v53 = vadd.f32 %v452_v52, %v5892_v23 }
 0x63f   :  { %5466 = vtanh.f32 %v456_v53 }
 0x644   :  { %v454_v54 = vpop.f32.mrf.mxu2 }
 0x645   :  { %v5467_v55 = vpop.eup %5466 }
 0x646   :  { %v458_v56 = vpack.c.bf16 %v5467_v55, %v5467_v55 }
 0x648   :  { %467 = vmatmul.bf16.vlgmr.msra.gmra.mxu3 %v458_v56 }
 0x6cb   :  { %v468_v57 = vpop.f32.mrf.mxu3 }
 0x6cc   :  { %v472_v58 = vadd.f32 %v468_v57, %v452_v52 }
 0x6ce   :  { %v473_v59 = vadd.f32 %v472_v58, %v5909_v29 }
 0x6d0   :  { %5468 = vtanh.f32 %v473_v59 }
 0x6d3   :  { %v470_v60 = vpop.f32.mrf.mxu3 }
 0x6d6   :  { %v5469_v61 = vpop.eup %5468 }
 0x6d7   :  { %v476_v62 = vperm.slane %v5469_v61, 0  ;;  %v478_v63 = vpack.c.bf16 %v5469_v61, %v5469_v61 }
 0x6d9   :  { %487 = vmatmul.bf16.vlgmr.msrb.gmra.mxu0 %v478_v63  ;;  %v477_v18 = vsel %vm475_vm5, %v476_v62, %v441_v51 }
 0x756   :  { %v488_v19 = vpop.f32.mrf.mxu0 }
 0x757   :  { %v492_v24 = vadd.f32 %v488_v19, %v5892_v23 }
 0x759   :  { %5470 = vtanh.f32 %v492_v24 }
 0x75e   :  { %v490_v25 = vpop.f32.mrf.mxu0 }
 0x75f   :  { %v5471_v26 = vpop.eup %5470 }
 0x760   :  { %v494_v27 = vpack.c.bf16 %v5471_v26, %v5471_v26 }
 0x762   :  { %503 = vmatmul.bf16.vlgmr.msrb.gmra.mxu1 %v494_v27 }
 0x7df   :  { %v504_v28 = vpop.f32.mrf.mxu1 }
 0x7e0   :  { %v508_v30 = vadd.f32 %v504_v28, %v488_v19 }
 0x7e2   :  { %v509_v31 = vadd.f32 %v508_v30, %v5909_v29 }
 0x7e4   :  { %5472 = vtanh.f32 %v509_v31 }
 0x7e7   :  { %v506_v32 = vpop.f32.mrf.mxu1 }
 0x7ea   :  { %v5473_v33 = vpop.eup %5472 }
 0x7eb   :  { %v512_v34 = vperm.slane %v5473_v33, 0  ;;  %v514_v35 = vpack.c.bf16 %v5473_v33, %v5473_v33 }
 0x7ed   :  { %523 = vmatmul.bf16.vlgmr.msrb.gmra.mxu2 %v514_v35  ;;  %v513_v36 = vsel %vm511_vm6, %v512_v34, %v477_v18 }
 0x870   :  { %v524_v37 = vpop.f32.mrf.mxu2 }
 0x871   :  { %v528_v38 = vadd.f32 %v524_v37, %v5892_v23 }
 0x873   :  { %5474 = vtanh.f32 %v528_v38 }
 0x878   :  { %v526_v39 = vpop.f32.mrf.mxu2 }
 0x879   :  { %v5475_v40 = vpop.eup %5474 }
 0x87a   :  { %v530_v41 = vpack.c.bf16 %v5475_v40, %v5475_v40 }
 0x87c   :  { %539 = vmatmul.bf16.vlgmr.msrb.gmra.mxu3 %v530_v41 }
 0x8ff   :  { %v540_v42 = vpop.f32.mrf.mxu3 }
 0x900   :  { %v544_v43 = vadd.f32 %v540_v42, %v524_v37 }
 0x902   :  { %v545_v44 = vadd.f32 %v544_v43, %v5909_v29 }
 0x904   :  { %5476 = vtanh.f32 %v545_v44 }
 0x907   :  { %v542_v46 = vpop.f32.mrf.mxu3 }
 0x90a   :  { %v6000_v47 = vpop.eup %5476 }
 0x90b   :  { %v548_v48 = vperm.slane %v6000_v47, 0 }
 0x90d   :  { %v549_v49 = vsel %vm547_vm7, %v548_v48, %v513_v36 }
 0x90e   :  { %5710 = dma.done.wait [#allocation3], 38912 }
 0x90f   :  { %5711 = vsyncadd [#allocation3], 4294928384  ;;  %v4971_v50 = vld [vmem:[#allocation2 + $0x858] sm:$0xf]  ;;  %v5416_v51 = vld [vmem:[#allocation2 + $0x8ec] sm:$0xf0]  ;;  %v6031_v38 = vpack.c.bf16 %v549_v49, %v549_v49 }
 0x910   :  { %v4819_v52 = vld [vmem:[#allocation2 + $0x728] sm:$0xf]  ;;  %v6006_v53 = vor.u32 %v5416_v51, %v4971_v50  ;;  %v5378_v54 = vld [vmem:[#allocation2 + $0x7bc] sm:$0xf0]  ;;  %v4667_v56 = vld [vmem:[#allocation2 + $0x5f8] sm:$0xf] }
 0x911   :  { %v6009_v55 = vor.u32 %v5378_v54, %v4819_v52  ;;  %v5340_v57 = vld [vmem:[#allocation2 + $0x68c] sm:$0xf0]  ;;  %v4515_v59 = vld [vmem:[#allocation2 + $0x4c8] sm:$0xf]  ;;  %v5302_v60 = vld [vmem:[#allocation2 + $0x55c] sm:$0xf0] }
 0x912   :  { %2486 = vmatpush.bf16.msra.mxu2 %v6006_v53  ;;  %v6012_v58 = vor.u32 %v5340_v57, %v4667_v56  ;;  %v6015_v61 = vor.u32 %v5302_v60, %v4515_v59  ;;  %v4363_v62 = vld [vmem:[#allocation2 + $0x398] sm:$0xf]  ;;  %v5264_v63 = vld [vmem:[#allocation2 + $0x42c] sm:$0xf0]  ;;  %v4211_v19 = vld [vmem:[#allocation2 + $0x268] sm:$0xf] }
 0x913   :  { %v6018_v18 = vor.u32 %v5264_v63, %v4363_v62  ;;  %v5226_v24 = vld [vmem:[#allocation2 + $0x2fc] sm:$0xf0]  ;;  %v4059_v26 = vld [vmem:[#allocation2 + $0x138] sm:$0xf]  ;;  %v5188_v27 = vld [vmem:[#allocation2 + $0x1cc] sm:$0xf0] }
 0x914   :  { %7994 = vst [vmem:[#allocation28_spill] sm:$0xff] %v6015_v61  ;;  %v6021_v25 = vor.u32 %v5226_v24, %v4211_v19  ;;  %v6024_v28 = vor.u32 %v5188_v27, %v4059_v26  ;;  %v3907_v30 = vld [vmem:[#allocation2 + $0x8] sm:$0xf]  ;;  %v5150_v31 = vld [vmem:[#allocation2 + $0x9c] sm:$0xf0]  ;;  %s5723_s5 = smov [#allocation15]  }
 0x915   :  { %7995 = vst [vmem:[#allocation29_spill] sm:$0xff] %v6018_v18  ;;  %v4987_v32 = vld [vmem:[#allocation2 + $0x868] sm:$0xf]  ;;  %v5418_v33 = vld [vmem:[#allocation2 + $0x8fc] sm:$0xf0]  ;;  %v6027_v34 = vor.u32 %v5150_v31, %v3907_v30  ;;  %s3809_s9 = sshll.u32 %s5723_s5, 4  ;;  %s3810_s9 = int_to_ptr.vmem [resolvable:$true] %s3809_s9 }
 0x916   :  { %2487 = vmatpush.bf16.msra.mxu2 %v6009_v55  ;;  %7996 = vst [vmem:[#allocation30_spill] sm:$0xff] %v6021_v25  ;;  %v6029_v35 = vor.u32 %v5418_v33, %v4987_v32  ;;  %v4835_v36 = vld [vmem:[#allocation2 + $0x738] sm:$0xf]  ;;  %v5380_v37 = vld [vmem:[#allocation2 + $0x7cc] sm:$0xf0]  ;;  %s3811_s12 = sshll.u32 %s7673_s7, 4  ;;  %s3812_s12 = int_to_ptr.hbm [resolvable:$true] %s3811_s12 }
 0x917   :  { %7997 = vst [vmem:[#allocation31_spill] sm:$0xff] %v6024_v28  ;;  %v6035_v39 = vor.u32 %v5380_v37, %v4835_v36  ;;  %v4683_v40 = vld [vmem:[#allocation2 + $0x608] sm:$0xf]  ;;  %v5342_v41 = vld [vmem:[#allocation2 + $0x69c] sm:$0xf0]  ;;  %s5724_s13 = smov 4864  }
 0x918   :  { %7998 = vst [vmem:[#allocation32_spill] sm:$0xff] %v6027_v34  ;;  %v6039_v42 = vor.u32 %v5342_v41, %v4683_v40  ;;  %v4531_v43 = vld [vmem:[#allocation2 + $0x4d8] sm:$0xf]  ;;  %v5304_v44 = vld [vmem:[#allocation2 + $0x56c] sm:$0xf0]  ;;  %s5725_s14 = smov 304  }
 0x919   :  { %7999 = vst [vmem:[#allocation33_spill] sm:$0xff] %v6029_v35  ;;  %v6042_v46 = vor.u32 %v5304_v44, %v4531_v43  ;;  %v4379_v48 = vld [vmem:[#allocation2 + $0x3a8] sm:$0xf]  ;;  %v5266_v49 = vld [vmem:[#allocation2 + $0x43c] sm:$0xf0] }
 0x91a   :  { %2488 = vmatpush.bf16.msra.mxu2 %v6012_v58  ;;  %8000 = vst [vmem:[#allocation34_spill] sm:$0xff] %v6035_v39  ;;  %v6045_v50 = vor.u32 %v5266_v49, %v4379_v48  ;;  %v4227_v51 = vld [vmem:[#allocation2 + $0x278] sm:$0xf]  ;;  %v5228_v52 = vld [vmem:[#allocation2 + $0x30c] sm:$0xf0] }
 0x91b   :  { %8001 = vst [vmem:[#allocation35_spill] sm:$0xff] %v6039_v42  ;;  %v6048_v54 = vor.u32 %v5228_v52, %v4227_v51  ;;  %v4075_v56 = vld [vmem:[#allocation2 + $0x148] sm:$0xf]  ;;  %v5190_v57 = vld [vmem:[#allocation2 + $0x1dc] sm:$0xf0] }
 0x91c   :  { %8002 = vst [vmem:[#allocation36_spill] sm:$0xff] %v6042_v46  ;;  %v6051_v59 = vor.u32 %v5190_v57, %v4075_v56  ;;  %v3923_v60 = vld [vmem:[#allocation2 + $0x18] sm:$0xf]  ;;  %v5152_v62 = vld [vmem:[#allocation2 + $0xac] sm:$0xf0] }
 0x91d   :  { %8003 = vst [vmem:[#allocation37_spill] sm:$0xff] %v6045_v50  ;;  %v5003_v63 = vld [vmem:[#allocation2 + $0x878] sm:$0xf]  ;;  %v5420_v19 = vld [vmem:[#allocation2 + $0x90c] sm:$0xf0]  ;;  %v6054_v24 = vor.u32 %v5152_v62, %v3923_v60 }
 0x91e   :  { %2489 = vmatpush.bf16.msra.mxu2 %v6015_v61  ;;  %8004 = vst [vmem:[#allocation38_spill] sm:$0xff] %v6048_v54  ;;  %v6056_v26 = vor.u32 %v5420_v19, %v5003_v63  ;;  %v4851_v27 = vld [vmem:[#allocation2 + $0x748] sm:$0xf]  ;;  %v5382_v30 = vld [vmem:[#allocation2 + $0x7dc] sm:$0xf0] }
 0x91f   :  { %8005 = vst [vmem:[#allocation39_spill] sm:$0xff] %v6051_v59  ;;  %v6060_v31 = vor.u32 %v5382_v30, %v4851_v27  ;;  %v4699_v32 = vld [vmem:[#allocation2 + $0x618] sm:$0xf]  ;;  %v5344_v33 = vld [vmem:[#allocation2 + $0x6ac] sm:$0xf0] }
 0x920   :  { %8006 = vst [vmem:[#allocation40_spill] sm:$0xff] %v6054_v24  ;;  %v6064_v36 = vor.u32 %v5344_v33, %v4699_v32  ;;  %v4547_v37 = vld [vmem:[#allocation2 + $0x4e8] sm:$0xf]  ;;  %v5306_v40 = vld [vmem:[#allocation2 + $0x57c] sm:$0xf0] }
 0x921   :  { %8007 = vst [vmem:[#allocation41_spill] sm:$0xff] %v6056_v26  ;;  %v6067_v41 = vor.u32 %v5306_v40, %v4547_v37  ;;  %v4395_v43 = vld [vmem:[#allocation2 + $0x3b8] sm:$0xf]  ;;  %v5268_v44 = vld [vmem:[#allocation2 + $0x44c] sm:$0xf0] }
 0x922   :  { %2490 = vmatpush.bf16.msra.mxu2 %v6018_v18  ;;  %8008 = vst [vmem:[#allocation42_spill] sm:$0xff] %v6060_v31  ;;  %v6070_v48 = vor.u32 %v5268_v44, %v4395_v43  ;;  %v4243_v49 = vld [vmem:[#allocation2 + $0x288] sm:$0xf]  ;;  %v5230_v51 = vld [vmem:[#allocation2 + $0x31c] sm:$0xf0] }
 0x923   :  { %8009 = vst [vmem:[#allocation43_spill] sm:$0xff] %v6064_v36  ;;  %v6073_v52 = vor.u32 %v5230_v51, %v4243_v49  ;;  %v4091_v56 = vld [vmem:[#allocation2 + $0x158] sm:$0xf]  ;;  %v5192_v57 = vld [vmem:[#allocation2 + $0x1ec] sm:$0xf0] }
 0x924   :  { %8010 = vst [vmem:[#allocation44_spill] sm:$0xff] %v6067_v41  ;;  %v6076_v60 = vor.u32 %v5192_v57, %v4091_v56  ;;  %v3939_v62 = vld [vmem:[#allocation2 + $0x28] sm:$0xf]  ;;  %v5154_v63 = vld [vmem:[#allocation2 + $0xbc] sm:$0xf0] }
 0x925   :  { %8011 = vst [vmem:[#allocation45_spill] sm:$0xff] %v6070_v48  ;;  %v5019_v19 = vld [vmem:[#allocation2 + $0x888] sm:$0xf]  ;;  %v5422_v27 = vld [vmem:[#allocation2 + $0x91c] sm:$0xf0]  ;;  %v6079_v30 = vor.u32 %v5154_v63, %v3939_v62 }
 0x926   :  { %2491 = vmatpush.bf16.msra.mxu2 %v6021_v25  ;;  %8012 = vst [vmem:[#allocation46_spill] sm:$0xff] %v6073_v52  ;;  %v6081_v32 = vor.u32 %v5422_v27, %v5019_v19  ;;  %v4867_v33 = vld [vmem:[#allocation2 + $0x758] sm:$0xf]  ;;  %v5384_v37 = vld [vmem:[#allocation2 + $0x7ec] sm:$0xf0] }
 0x927   :  { %8013 = vst [vmem:[#allocation47_spill] sm:$0xff] %v6076_v60  ;;  %v6085_v40 = vor.u32 %v5384_v37, %v4867_v33  ;;  %v4715_v43 = vld [vmem:[#allocation2 + $0x628] sm:$0xf]  ;;  %v5346_v44 = vld [vmem:[#allocation2 + $0x6bc] sm:$0xf0] }
 0x928   :  { %8014 = vst [vmem:[#allocation48_spill] sm:$0xff] %v6079_v30  ;;  %v6089_v49 = vor.u32 %v5346_v44, %v4715_v43  ;;  %v4563_v51 = vld [vmem:[#allocation2 + $0x4f8] sm:$0xf]  ;;  %v5308_v56 = vld [vmem:[#allocation2 + $0x58c] sm:$0xf0] }
 0x929   :  { %8015 = vst [vmem:[#allocation49_spill] sm:$0xff] %v6081_v32  ;;  %v6092_v57 = vor.u32 %v5308_v56, %v4563_v51  ;;  %v4411_v62 = vld [vmem:[#allocation2 + $0x3c8] sm:$0xf]  ;;  %v5270_v63 = vld [vmem:[#allocation2 + $0x45c] sm:$0xf0] }
 0x92a   :  { %2492 = vmatpush.bf16.msra.mxu2 %v6024_v28  ;;  %8016 = vst [vmem:[#allocation50_spill] sm:$0xff] %v6085_v40  ;;  %v6095_v19 = vor.u32 %v5270_v63, %v4411_v62  ;;  %v4259_v27 = vld [vmem:[#allocation2 + $0x298] sm:$0xf]  ;;  %v5232_v33 = vld [vmem:[#allocation2 + $0x32c] sm:$0xf0] }
 0x92b   :  { %8017 = vst [vmem:[#allocation51_spill] sm:$0xff] %v6089_v49  ;;  %v6098_v37 = vor.u32 %v5232_v33, %v4259_v27  ;;  %v4107_v43 = vld [vmem:[#allocation2 + $0x168] sm:$0xf]  ;;  %v5194_v44 = vld [vmem:[#allocation2 + $0x1fc] sm:$0xf0] }
 0x92c   :  { %8018 = vst [vmem:[#allocation52_spill] sm:$0xff] %v6092_v57  ;;  %v3955_v51 = vld [vmem:[#allocation2 + $0x38] sm:$0xf]  ;;  %v5156_v56 = vld [vmem:[#allocation2 + $0xcc] sm:$0xf0] }
 0x92d   :  { %8019 = vst [vmem:[#allocation53_spill] sm:$0xff] %v6095_v19  ;;  %v6106_v63 = vor.u32 %v5156_v56, %v3955_v51  ;;  %v5359_v33 = vld [vmem:[#allocation2 + $0x72c] sm:$0xf]  ;;  %v4669_v51 = vld [vmem:[#allocation2 + $0x690] sm:$0xf0] }
 0x92e   :  { %2493 = vmatpush.bf16.msra.mxu2 %v6027_v34  ;;  %8020 = vst [vmem:[#allocation54_spill] sm:$0xff] %v6098_v37  ;;  %v4731_v56 = vld [vmem:[#allocation2 + $0x638] sm:$0xf]  ;;  %v5199_v28 = vld [vmem:[#allocation2 + $0x224] sm:$0xf0] }
 0x92f   :  { %8023 = vst [vmem:[#allocation57_spill] sm:$0xff] %v6106_v63  ;;  %v5313_v34 = vld [vmem:[#allocation2 + $0x5b4] sm:$0xf0]  ;;  %v5362_v25 = vld [vmem:[#allocation2 + $0x744] sm:$0xf] }
 0x930   :  { %v4845_v18 = vld [vmem:[#allocation2 + $0x7d8] sm:$0xf0]  ;;  %v5433_v61 = vld [vmem:[#allocation2 + $0x974] sm:$0xf0] }
 0x931   :  { %2494 = vmatmul.bf16.vlgmr.msra.gmra.mxu2 %v6031_v38 }
 0x932   :  { %2538 = vmatpush.bf16.msrb.mxu2 %v6029_v35  ;;  %v4125_v35 = vld [vmem:[#allocation2 + $0x210] sm:$0xf0] }
 0x936   :  { %2539 = vmatpush.bf16.msrb.mxu2 %v6035_v39  ;;  %v5204_v39 = vld [vmem:[#allocation2 + $0x24c] sm:$0xf0] }
 0x93a   :  { %2540 = vmatpush.bf16.msrb.mxu2 %v6039_v42 }
 0x93e   :  { %2541 = vmatpush.bf16.msrb.mxu2 %v6042_v46 }
 0x942   :  { %2542 = vmatpush.bf16.msrb.mxu2 %v6045_v50 }
 0x946   :  { %2543 = vmatpush.bf16.msrb.mxu2 %v6048_v54  ;;  %v5005_v54 = vld [vmem:[#allocation2 + $0x910] sm:$0xf0] }
 0x94a   :  { %2544 = vmatpush.bf16.msrb.mxu2 %v6051_v59  ;;  %v5401_v59 = vld [vmem:[#allocation2 + $0x87c] sm:$0xf] }
 0x94b   :  { %v6204_v50 = vor.u32 %v5401_v59, %v5005_v54  ;;  %v5325_v59 = vld [vmem:[#allocation2 + $0x61c] sm:$0xf] }
 0x94d   :  { %8054 = vst [vmem:[#allocation88_spill] sm:$0xff] %v6204_v50 }
 0x94e   :  { %2545 = vmatpush.bf16.msrb.mxu2 %v6054_v24 }
 0x951   :  { %2546 = vmatmul.bf16.vlgmr.msrb.gmra.mxu2 %v6031_v38 }
 0x952   :  { %2590 = vmatpush.bf16.msra.mxu2 %v6056_v26  ;;  %v5426_v26 = vld [vmem:[#allocation2 + $0x93c] sm:$0xf0] }
 0x956   :  { %2591 = vmatpush.bf16.msra.mxu2 %v6060_v31 }
 0x95a   :  { %2592 = vmatpush.bf16.msra.mxu2 %v6064_v36 }
 0x95e   :  { %2593 = vmatpush.bf16.msra.mxu2 %v6067_v41 }
 0x962   :  { %2594 = vmatpush.bf16.msra.mxu2 %v6070_v48 }
 0x966   :  { %2595 = vmatpush.bf16.msra.mxu2 %v6073_v52  ;;  %v5272_v52 = vld [vmem:[#allocation2 + $0x46c] sm:$0xf0] }
 0x96a   :  { %2596 = vmatpush.bf16.msra.mxu2 %v6076_v60  ;;  %v4427_v60 = vld [vmem:[#allocation2 + $0x3d8] sm:$0xf] }
 0x96e   :  { %2597 = vmatpush.bf16.msra.mxu2 %v6079_v30  ;;  %v5035_v30 = vld [vmem:[#allocation2 + $0x898] sm:$0xf] }
 0x971   :  { %2598 = vmatmul.bf16.vlgmr.msra.gmra.mxu2 %v6031_v38 }
 0x972   :  { %2642 = vmatpush.bf16.msrb.mxu2 %v6081_v32  ;;  %v4973_v32 = vld [vmem:[#allocation2 + $0x8f0] sm:$0xf0] }
 0x976   :  { %2643 = vmatpush.bf16.msrb.mxu2 %v6085_v40  ;;  %v6101_v40 = vor.u32 %v5194_v44, %v4107_v43  ;;  %v4883_v43 = vld [vmem:[#allocation2 + $0x768] sm:$0xf]  ;;  %v5386_v44 = vld [vmem:[#allocation2 + $0x7fc] sm:$0xf0] }
 0x978   :  { %8021 = vst [vmem:[#allocation55_spill] sm:$0xff] %v6101_v40 }
 0x97a   :  { %2644 = vmatpush.bf16.msrb.mxu2 %v6089_v49  ;;  %v5397_v49 = vld [vmem:[#allocation2 + $0x85c] sm:$0xf] }
 0x97b   :  { %v6103_v62 = vor.u32 %v5397_v49, %v4973_v32  ;;  %v6116_v32 = vor.u32 %v5386_v44, %v4883_v43  ;;  %v5321_v49 = vld [vmem:[#allocation2 + $0x5fc] sm:$0xf] }
 0x97d   :  { %8022 = vst [vmem:[#allocation56_spill] sm:$0xff] %v6103_v62  ;;  %2499 = vmatpush.bf16.msra.mxu3 %v6103_v62  ;;  %v4755_v62 = vld [vmem:[#allocation2 + $0x650] sm:$0xf] }
 0x97e   :  { %2645 = vmatpush.bf16.msrb.mxu2 %v6092_v57  ;;  %v5424_v57 = vld [vmem:[#allocation2 + $0x92c] sm:$0xf0]  ;;  %8026 = vst [vmem:[#allocation60_spill] sm:$0xff] %v6116_v32 }
 0x97f   :  { %v6109_v27 = vor.u32 %v5424_v57, %v5035_v30  ;;  %v6118_v30 = vor.u32 %v5321_v49, %v4669_v51  ;;  %v5245_v49 = vld [vmem:[#allocation2 + $0x39c] sm:$0xf]  ;;  %v4365_v51 = vld [vmem:[#allocation2 + $0x430] sm:$0xf0] }
 0x980   :  { %v6131_v48 = vor.u32 %v5245_v49, %v4365_v51  ;;  %v4061_v49 = vld [vmem:[#allocation2 + $0x1d0] sm:$0xf0]  ;;  %v4123_v51 = vld [vmem:[#allocation2 + $0x178] sm:$0xf] }
 0x981   :  { %8024 = vst [vmem:[#allocation58_spill] sm:$0xff] %v6109_v27 }
 0x982   :  { %2646 = vmatpush.bf16.msrb.mxu2 %v6095_v19  ;;  %8027 = vst [vmem:[#allocation61_spill] sm:$0xff] %v6118_v30 }
 0x983   :  { %8031 = vst [vmem:[#allocation65_spill] sm:$0xff] %v6131_v48 }
 0x986   :  { %2647 = vmatpush.bf16.msrb.mxu2 %v6098_v37  ;;  %v4821_v37 = vld [vmem:[#allocation2 + $0x7c0] sm:$0xf0] }
 0x987   :  { %v6111_v19 = vor.u32 %v5359_v33, %v4821_v37  ;;  %v5283_v37 = vld [vmem:[#allocation2 + $0x4cc] sm:$0xf]  ;;  %v4517_v33 = vld [vmem:[#allocation2 + $0x560] sm:$0xf0] }
 0x988   :  { %v6125_v43 = vor.u32 %v5283_v37, %v4517_v33  ;;  %v4213_v37 = vld [vmem:[#allocation2 + $0x300] sm:$0xf0]  ;;  %v4275_v33 = vld [vmem:[#allocation2 + $0x2a8] sm:$0xf] }
 0x989   :  { %8025 = vst [vmem:[#allocation59_spill] sm:$0xff] %v6111_v19  ;;  %2500 = vmatpush.bf16.msra.mxu3 %v6111_v19 }
 0x98a   :  { %2648 = vmatpush.bf16.msrb.mxu2 %v6101_v40  ;;  %v5348_v40 = vld [vmem:[#allocation2 + $0x6cc] sm:$0xf0]  ;;  %8029 = vst [vmem:[#allocation63_spill] sm:$0xff] %v6125_v43 }
 0x98b   :  { %v6123_v57 = vor.u32 %v5348_v40, %v4731_v56  ;;  %v6135_v40 = vor.u32 %v5272_v52, %v4427_v60  ;;  %v5207_v56 = vld [vmem:[#allocation2 + $0x26c] sm:$0xf]  ;;  %v3971_v60 = vld [vmem:[#allocation2 + $0x48] sm:$0xf] }
 0x98c   :  { %v6137_v41 = vor.u32 %v5207_v56, %v4213_v37  ;;  %v5131_v56 = vld [vmem:[#allocation2 + $0xc] sm:$0xf]  ;;  %v3909_v37 = vld [vmem:[#allocation2 + $0xa0] sm:$0xf0] }
 0x98d   :  { %2501 = vmatpush.bf16.msra.mxu3 %v6118_v30  ;;  %8028 = vst [vmem:[#allocation62_spill] sm:$0xff] %v6123_v57  ;;  %v6149_v31 = vor.u32 %v5131_v56, %v3909_v37  ;;  %v4899_v56 = vld [vmem:[#allocation2 + $0x778] sm:$0xf]  ;;  %v5388_v37 = vld [vmem:[#allocation2 + $0x80c] sm:$0xf0] }
 0x98e   :  { %2649 = vmatpush.bf16.msrb.mxu2 %v6106_v63  ;;  %v4579_v63 = vld [vmem:[#allocation2 + $0x508] sm:$0xf]  ;;  %8032 = vst [vmem:[#allocation66_spill] sm:$0xff] %v6135_v40  ;;  %v4917_v30 = vld [vmem:[#allocation2 + $0x820] sm:$0xf0] }
 0x98f   :  { %8033 = vst [vmem:[#allocation67_spill] sm:$0xff] %v6137_v41 }
 0x990   :  { %8037 = vst [vmem:[#allocation71_spill] sm:$0xff] %v6149_v31 }
 0x991   :  { %2650 = vmatmul.bf16.vlgmr.msrb.gmra.mxu2 %v6031_v38  ;;  %2502 = vmatpush.bf16.msra.mxu3 %v6125_v43  ;;  %v5069_v43 = vld [vmem:[#allocation2 + $0x950] sm:$0xf0] }
 0x992   :  { %2694 = vmatpush.bf16.msra.mxu2 %v6109_v27  ;;  %v5310_v27 = vld [vmem:[#allocation2 + $0x59c] sm:$0xf0] }
 0x993   :  { %v6129_v44 = vor.u32 %v5310_v27, %v4579_v63  ;;  %v5169_v27 = vld [vmem:[#allocation2 + $0x13c] sm:$0xf] }
 0x994   :  { %v6143_v36 = vor.u32 %v5169_v27, %v4061_v49  ;;  %v5361_v49 = vld [vmem:[#allocation2 + $0x73c] sm:$0xf] }
 0x995   :  { %8030 = vst [vmem:[#allocation64_spill] sm:$0xff] %v6129_v44  ;;  %2503 = vmatpush.bf16.msra.mxu3 %v6131_v48  ;;  %v5409_v48 = vld [vmem:[#allocation2 + $0x8bc] sm:$0xf] }
 0x996   :  { %2695 = vmatpush.bf16.msra.mxu2 %v6116_v32  ;;  %v5234_v32 = vld [vmem:[#allocation2 + $0x33c] sm:$0xf0]  ;;  %8035 = vst [vmem:[#allocation69_spill] sm:$0xff] %v6143_v36 }
 0x997   :  { %v6141_v63 = vor.u32 %v5234_v32, %v4275_v33  ;;  %v5399_v32 = vld [vmem:[#allocation2 + $0x86c] sm:$0xf]  ;;  %v4989_v33 = vld [vmem:[#allocation2 + $0x900] sm:$0xf0] }
 0x998   :  { %v6151_v24 = vor.u32 %v5399_v32, %v4989_v33  ;;  %v4685_v32 = vld [vmem:[#allocation2 + $0x6a0] sm:$0xf0] }
 0x999   :  { %2504 = vmatpush.bf16.msra.mxu3 %v6137_v41  ;;  %8034 = vst [vmem:[#allocation68_spill] sm:$0xff] %v6141_v63  ;;  %v5053_v41 = vld [vmem:[#allocation2 + $0x940] sm:$0xf0] }
 0x99a   :  { %2696 = vmatpush.bf16.msra.mxu2 %v6123_v57  ;;  %v5196_v57 = vld [vmem:[#allocation2 + $0x20c] sm:$0xf0]  ;;  %8038 = vst [vmem:[#allocation72_spill] sm:$0xff] %v6151_v24 }
 0x99b   :  { %v6147_v52 = vor.u32 %v5196_v57, %v4123_v51  ;;  %v4837_v51 = vld [vmem:[#allocation2 + $0x7d0] sm:$0xf0] }
 0x99d   :  { %2505 = vmatpush.bf16.msra.mxu3 %v6143_v36  ;;  %8036 = vst [vmem:[#allocation70_spill] sm:$0xff] %v6147_v52  ;;  %v3973_v36 = vld [vmem:[#allocation2 + $0xe0] sm:$0xf0] }
 0x99e   :  { %2697 = vmatpush.bf16.msra.mxu2 %v6129_v44  ;;  %v5158_v44 = vld [vmem:[#allocation2 + $0xdc] sm:$0xf0] }
 0x99f   :  { %v6155_v27 = vor.u32 %v5158_v44, %v3971_v60  ;;  %v6166_v44 = vor.u32 %v5388_v37, %v4899_v56  ;;  %v5323_v60 = vld [vmem:[#allocation2 + $0x60c] sm:$0xf] }
 0x9a0   :  { %v6168_v33 = vor.u32 %v5323_v60, %v4685_v32  ;;  %v5247_v60 = vld [vmem:[#allocation2 + $0x3ac] sm:$0xf]  ;;  %v4381_v32 = vld [vmem:[#allocation2 + $0x440] sm:$0xf0] }
 0x9a1   :  { %2506 = vmatpush.bf16.msra.mxu3 %v6149_v31  ;;  %8039 = vst [vmem:[#allocation73_spill] sm:$0xff] %v6155_v27  ;;  %v4035_v31 = vld [vmem:[#allocation2 + $0x88] sm:$0xf] }
 0x9a2   :  { %2698 = vmatpush.bf16.msra.mxu2 %v6135_v40  ;;  %v5051_v40 = vld [vmem:[#allocation2 + $0x8a8] sm:$0xf]  ;;  %8042 = vst [vmem:[#allocation76_spill] sm:$0xff] %v6166_v44 }
 0x9a3   :  { %v6158_v57 = vor.u32 %v5426_v26, %v5051_v40  ;;  %v4747_v26 = vld [vmem:[#allocation2 + $0x648] sm:$0xf]  ;;  %v5350_v40 = vld [vmem:[#allocation2 + $0x6dc] sm:$0xf0]  ;;  %8043 = vst [vmem:[#allocation77_spill] sm:$0xff] %v6168_v33 }
 0x9a4   :  { %2507 = vmatmul.bf16.vlgmr.msra.gmra.mxu3 %v6031_v38 }
 0x9a5   :  { %2551 = vmatpush.bf16.msrb.mxu3 %v6151_v24  ;;  %8040 = vst [vmem:[#allocation74_spill] sm:$0xff] %v6158_v57  ;;  %v6181_v24 = vor.u32 %v5247_v60, %v4381_v32  ;;  %v5171_v60 = vld [vmem:[#allocation2 + $0x14c] sm:$0xf]  ;;  %v4077_v32 = vld [vmem:[#allocation2 + $0x1e0] sm:$0xf0] }
 0x9a6   :  { %2699 = vmatpush.bf16.msra.mxu2 %v6141_v63  ;;  %v6160_v63 = vor.u32 %v5361_v49, %v4837_v51  ;;  %v6173_v49 = vor.u32 %v5350_v40, %v4747_v26  ;;  %v5285_v51 = vld [vmem:[#allocation2 + $0x4dc] sm:$0xf]  ;;  %v4229_v40 = vld [vmem:[#allocation2 + $0x310] sm:$0xf0] }
 0x9a7   :  { %8047 = vst [vmem:[#allocation81_spill] sm:$0xff] %v6181_v24 }
 0x9a8   :  { %8041 = vst [vmem:[#allocation75_spill] sm:$0xff] %v6160_v63 }
 0x9a9   :  { %2552 = vmatpush.bf16.msrb.mxu3 %v6160_v63  ;;  %8044 = vst [vmem:[#allocation78_spill] sm:$0xff] %v6173_v49  ;;  %v4443_v63 = vld [vmem:[#allocation2 + $0x3e8] sm:$0xf] }
 0x9aa   :  { %2700 = vmatpush.bf16.msra.mxu2 %v6147_v52  ;;  %v4595_v52 = vld [vmem:[#allocation2 + $0x518] sm:$0xf] }
 0x9ad   :  { %2553 = vmatpush.bf16.msrb.mxu3 %v6168_v33  ;;  %v5274_v33 = vld [vmem:[#allocation2 + $0x47c] sm:$0xf0] }
 0x9ae   :  { %2701 = vmatpush.bf16.msra.mxu2 %v6155_v27  ;;  %v4533_v27 = vld [vmem:[#allocation2 + $0x570] sm:$0xf0]  ;;  %v6185_v26 = vor.u32 %v5274_v33, %v4443_v63  ;;  %v6194_v33 = vor.u32 %v5171_v60, %v4077_v32  ;;  %v5067_v60 = vld [vmem:[#allocation2 + $0x8b8] sm:$0xf]  ;;  %v5428_v32 = vld [vmem:[#allocation2 + $0x94c] sm:$0xf0] }
 0x9af   :  { %v6175_v56 = vor.u32 %v5285_v51, %v4533_v27  ;;  %v5209_v27 = vld [vmem:[#allocation2 + $0x27c] sm:$0xf]  ;;  %v4291_v51 = vld [vmem:[#allocation2 + $0x2b8] sm:$0xf] }
 0x9b0   :  { %8048 = vst [vmem:[#allocation82_spill] sm:$0xff] %v6185_v26 }
 0x9b1   :  { %2702 = vmatmul.bf16.vlgmr.msra.gmra.mxu2 %v6031_v38  ;;  %8045 = vst [vmem:[#allocation79_spill] sm:$0xff] %v6175_v56  ;;  %2554 = vmatpush.bf16.msrb.mxu3 %v6175_v56  ;;  %v6187_v56 = vor.u32 %v5209_v27, %v4229_v40  ;;  %v3987_v27 = vld [vmem:[#allocation2 + $0x58] sm:$0xf] }
 0x9b2   :  { %2746 = vmatpush.bf16.msrb.mxu2 %v6158_v57  ;;  %v5312_v57 = vld [vmem:[#allocation2 + $0x5ac] sm:$0xf0]  ;;  %8051 = vst [vmem:[#allocation85_spill] sm:$0xff] %v6194_v33 }
 0x9b3   :  { %v6179_v37 = vor.u32 %v5312_v57, %v4595_v52  ;;  %8049 = vst [vmem:[#allocation83_spill] sm:$0xff] %v6187_v56  ;;  %v7713_v52 = vperm.slane %v5784_v0, 2 }
 0x9b4   :  { %v2495_v63 = vpop.f32.mrf.mxu2 }
 0x9b5   :  { %8046 = vst [vmem:[#allocation80_spill] sm:$0xff] %v6179_v37  ;;  %2555 = vmatpush.bf16.msrb.mxu3 %v6181_v24  ;;  %v2496_v24 = vadd.f32 %v2495_v63, %v7713_v52  ;;  %v5390_v52 = vld [vmem:[#allocation2 + $0x81c] sm:$0xf0] }
 0x9b6   :  { %2747 = vmatpush.bf16.msrb.mxu2 %v6166_v44  ;;  %v5236_v44 = vld [vmem:[#allocation2 + $0x34c] sm:$0xf0] }
 0x9b7   :  { %v6192_v57 = vor.u32 %v5236_v44, %v4291_v51  ;;  %2956 = vst [vmem:[#allocation15 + $0x10] sm:$0xff] %v2496_v24  ;;  %v5133_v44 = vld [vmem:[#allocation2 + $0x1c] sm:$0xf]  ;;  %v3925_v51 = vld [vmem:[#allocation2 + $0xb0] sm:$0xf0]  ;;  %v6211_v24 = vor.u32 %v5428_v32, %v5067_v60 }
 0x9b8   :  { %v5352_v60 = vld [vmem:[#allocation2 + $0x6ec] sm:$0xf0] }
 0x9b9   :  { %2556 = vmatpush.bf16.msrb.mxu3 %v6187_v56  ;;  %8050 = vst [vmem:[#allocation84_spill] sm:$0xff] %v6192_v57  ;;  %v6202_v56 = vor.u32 %v5133_v44, %v3925_v51  ;;  %v4853_v44 = vld [vmem:[#allocation2 + $0x7e0] sm:$0xf0]  ;;  %v4915_v51 = vld [vmem:[#allocation2 + $0x788] sm:$0xf] }
 0x9ba   :  { %2748 = vmatpush.bf16.msrb.mxu2 %v6173_v49  ;;  %v4139_v49 = vld [vmem:[#allocation2 + $0x188] sm:$0xf]  ;;  %8056 = vst [vmem:[#allocation90_spill] sm:$0xff] %v6211_v24  ;;  %v6219_v54 = vor.u32 %v5390_v52, %v4915_v51 }
 0x9bb   :  { %8053 = vst [vmem:[#allocation87_spill] sm:$0xff] %v6202_v56 }
 0x9bc   :  { %8058 = vst [vmem:[#allocation92_spill] sm:$0xff] %v6219_v54 }
 0x9bd   :  { %2557 = vmatpush.bf16.msrb.mxu3 %v6194_v33 }
 0x9be   :  { %2749 = vmatpush.bf16.msrb.mxu2 %v6179_v37  ;;  %v5198_v37 = vld [vmem:[#allocation2 + $0x21c] sm:$0xf0] }
 0x9bf   :  { %v6200_v40 = vor.u32 %v5198_v37, %v4139_v49  ;;  %v2497_v49 = vpop.f32.mrf.mxu2  ;;  %v5363_v37 = vld [vmem:[#allocation2 + $0x74c] sm:$0xf] }
 0x9c1   :  { %8052 = vst [vmem:[#allocation86_spill] sm:$0xff] %v6200_v40  ;;  %2558 = vmatpush.bf16.msrb.mxu3 %v6202_v56  ;;  %v5021_v56 = vld [vmem:[#allocation2 + $0x920] sm:$0xf0] }
 0x9c2   :  { %2750 = vmatpush.bf16.msrb.mxu2 %v6185_v26  ;;  %v5160_v26 = vld [vmem:[#allocation2 + $0xec] sm:$0xf0] }
 0x9c3   :  { %v6208_v63 = vor.u32 %v5160_v26, %v3987_v27  ;;  %v4701_v26 = vld [vmem:[#allocation2 + $0x6b0] sm:$0xf0]  ;;  %v4763_v27 = vld [vmem:[#allocation2 + $0x658] sm:$0xf] }
 0x9c4   :  { %2559 = vmatmul.bf16.vlgmr.msrb.gmra.mxu3 %v6031_v38  ;;  %v6221_v32 = vor.u32 %v5325_v59, %v4701_v26  ;;  %v6226_v49 = vor.u32 %v5352_v60, %v4763_v27  ;;  %v5249_v59 = vld [vmem:[#allocation2 + $0x3bc] sm:$0xf]  ;;  %v4397_v26 = vld [vmem:[#allocation2 + $0x450] sm:$0xf0]  ;;  %v5211_v60 = vld [vmem:[#allocation2 + $0x28c] sm:$0xf] }
 0x9c5   :  { %8055 = vst [vmem:[#allocation89_spill] sm:$0xff] %v6208_v63  ;;  %2603 = vmatpush.bf16.msra.mxu3 %v6204_v50  ;;  %v5403_v50 = vld [vmem:[#allocation2 + $0x88c] sm:$0xf] }
 0x9c6   :  { %2751 = vmatpush.bf16.msrb.mxu2 %v6192_v57  ;;  %v6213_v57 = vor.u32 %v5363_v37, %v4853_v44  ;;  %8059 = vst [vmem:[#allocation93_spill] sm:$0xff] %v6221_v32  ;;  %v5287_v37 = vld [vmem:[#allocation2 + $0x4ec] sm:$0xf]  ;;  %v4549_v44 = vld [vmem:[#allocation2 + $0x580] sm:$0xf0]  ;;  %v6257_v33 = vor.u32 %v5403_v50, %v5021_v56 }
 0x9c7   :  { %8060 = vst [vmem:[#allocation94_spill] sm:$0xff] %v6226_v49  ;;  %v6228_v52 = vor.u32 %v5287_v37, %v4549_v44  ;;  %v4245_v37 = vld [vmem:[#allocation2 + $0x320] sm:$0xf0]  ;;  %v4307_v44 = vld [vmem:[#allocation2 + $0x2c8] sm:$0xf] }
 0x9c8   :  { %8057 = vst [vmem:[#allocation91_spill] sm:$0xff] %v6213_v57  ;;  %v5327_v56 = vld [vmem:[#allocation2 + $0x62c] sm:$0xf] }
 0x9c9   :  { %2604 = vmatpush.bf16.msra.mxu3 %v6213_v57  ;;  %8061 = vst [vmem:[#allocation95_spill] sm:$0xff] %v6228_v52  ;;  %v6234_v57 = vor.u32 %v5249_v59, %v4397_v26  ;;  %v5173_v59 = vld [vmem:[#allocation2 + $0x15c] sm:$0xf]  ;;  %v4093_v26 = vld [vmem:[#allocation2 + $0x1f0] sm:$0xf0] }
 0x9ca   :  { %2752 = vmatpush.bf16.msrb.mxu2 %v6200_v40  ;;  %v4459_v40 = vld [vmem:[#allocation2 + $0x3f8] sm:$0xf]  ;;  %8070 = vst [vmem:[#allocation104_spill] sm:$0xff] %v6257_v33 }
 0x9cb   :  { %8063 = vst [vmem:[#allocation97_spill] sm:$0xff] %v6234_v57 }
 0x9cd   :  { %2605 = vmatpush.bf16.msra.mxu3 %v6221_v32  ;;  %v5276_v32 = vld [vmem:[#allocation2 + $0x48c] sm:$0xf0] }
 0x9ce   :  { %2753 = vmatpush.bf16.msrb.mxu2 %v6208_v63  ;;  %v4611_v63 = vld [vmem:[#allocation2 + $0x528] sm:$0xf]  ;;  %v6238_v27 = vor.u32 %v5276_v32, %v4459_v40  ;;  %v6247_v32 = vor.u32 %v5173_v59, %v4093_v26  ;;  %v5430_v26 = vld [vmem:[#allocation2 + $0x95c] sm:$0xf0] }
 0x9cf   :  { %v5083_v59 = vld [vmem:[#allocation2 + $0x8c8] sm:$0xf] }
 0x9d0   :  { %8064 = vst [vmem:[#allocation98_spill] sm:$0xff] %v6238_v27 }
 0x9d1   :  { %2754 = vmatmul.bf16.vlgmr.msrb.gmra.mxu2 %v6031_v38  ;;  %2606 = vmatpush.bf16.msra.mxu3 %v6228_v52  ;;  %v6240_v52 = vor.u32 %v5211_v60, %v4245_v37  ;;  %8067 = vst [vmem:[#allocation101_spill] sm:$0xff] %v6247_v32  ;;  %v4003_v60 = vld [vmem:[#allocation2 + $0x68] sm:$0xf] }
 0x9d2   :  { %2798 = vmatpush.bf16.msra.mxu2 %v6211_v24  ;;  %v5314_v24 = vld [vmem:[#allocation2 + $0x5bc] sm:$0xf0] }
 0x9d3   :  { %v6232_v51 = vor.u32 %v5314_v24, %v4611_v63  ;;  %8065 = vst [vmem:[#allocation99_spill] sm:$0xff] %v6240_v52  ;;  %v7730_v63 = vperm.slane %v5784_v0, 6 }
 0x9d4   :  { %v2547_v40 = vpop.f32.mrf.mxu2 }
 0x9d5   :  { %8062 = vst [vmem:[#allocation96_spill] sm:$0xff] %v6232_v51  ;;  %2607 = vmatpush.bf16.msra.mxu3 %v6234_v57  ;;  %v2548_v57 = vadd.f32 %v2547_v40, %v7730_v63  ;;  %v5392_v63 = vld [vmem:[#allocation2 + $0x82c] sm:$0xf0] }
 0x9d6   :  { %2799 = vmatpush.bf16.msra.mxu2 %v6219_v54  ;;  %v5238_v54 = vld [vmem:[#allocation2 + $0x35c] sm:$0xf0] }
 0x9d7   :  { %v6245_v24 = vor.u32 %v5238_v54, %v4307_v44  ;;  %2960 = vst [vmem:[#allocation15 + $0x30] sm:$0xff] %v2548_v57  ;;  %v5135_v54 = vld [vmem:[#allocation2 + $0x2c] sm:$0xf]  ;;  %v3941_v44 = vld [vmem:[#allocation2 + $0xc0] sm:$0xf0]  ;;  %v6264_v57 = vor.u32 %v5430_v26, %v5083_v59 }
 0x9d8   :  { %v5354_v59 = vld [vmem:[#allocation2 + $0x6fc] sm:$0xf0] }
 0x9d9   :  { %2608 = vmatpush.bf16.msra.mxu3 %v6240_v52  ;;  %8066 = vst [vmem:[#allocation100_spill] sm:$0xff] %v6245_v24  ;;  %v6255_v52 = vor.u32 %v5135_v54, %v3941_v44  ;;  %v4869_v54 = vld [vmem:[#allocation2 + $0x7f0] sm:$0xf0]  ;;  %v4931_v44 = vld [vmem:[#allocation2 + $0x798] sm:$0xf] }
 0x9da   :  { %2800 = vmatpush.bf16.msra.mxu2 %v6226_v49  ;;  %v4155_v49 = vld [vmem:[#allocation2 + $0x198] sm:$0xf]  ;;  %8072 = vst [vmem:[#allocation106_spill] sm:$0xff] %v6264_v57  ;;  %v6272_v50 = vor.u32 %v5392_v63, %v4931_v44 }
 0x9db   :  { %8069 = vst [vmem:[#allocation103_spill] sm:$0xff] %v6255_v52 }
 0x9dc   :  { %8074 = vst [vmem:[#allocation108_spill] sm:$0xff] %v6272_v50 }
 0x9dd   :  { %2609 = vmatpush.bf16.msra.mxu3 %v6247_v32  ;;  %v5432_v32 = vld [vmem:[#allocation2 + $0x96c] sm:$0xf0] }
 0x9de   :  { %2801 = vmatpush.bf16.msra.mxu2 %v6232_v51  ;;  %v5200_v51 = vld [vmem:[#allocation2 + $0x22c] sm:$0xf0] }
 0x9df   :  { %v6253_v37 = vor.u32 %v5200_v51, %v4155_v49  ;;  %v2549_v49 = vpop.f32.mrf.mxu2  ;;  %v5365_v51 = vld [vmem:[#allocation2 + $0x75c] sm:$0xf] }
 0x9e1   :  { %8068 = vst [vmem:[#allocation102_spill] sm:$0xff] %v6253_v37  ;;  %2610 = vmatpush.bf16.msra.mxu3 %v6255_v52  ;;  %v5415_v52 = vld [vmem:[#allocation2 + $0x8e4] sm:$0xf0] }
 0x9e2   :  { %2802 = vmatpush.bf16.msra.mxu2 %v6238_v27  ;;  %v5162_v27 = vld [vmem:[#allocation2 + $0xfc] sm:$0xf0] }
 0x9e3   :  { %v6261_v40 = vor.u32 %v5162_v27, %v4003_v60  ;;  %v4717_v27 = vld [vmem:[#allocation2 + $0x6c0] sm:$0xf0]  ;;  %v4779_v60 = vld [vmem:[#allocation2 + $0x668] sm:$0xf] }
 0x9e4   :  { %2611 = vmatmul.bf16.vlgmr.msra.gmra.mxu3 %v6031_v38  ;;  %v6274_v26 = vor.u32 %v5327_v56, %v4717_v27  ;;  %v6279_v49 = vor.u32 %v5354_v59, %v4779_v60  ;;  %v5251_v56 = vld [vmem:[#allocation2 + $0x3cc] sm:$0xf]  ;;  %v4413_v27 = vld [vmem:[#allocation2 + $0x460] sm:$0xf0]  ;;  %v5213_v59 = vld [vmem:[#allocation2 + $0x29c] sm:$0xf] }
 0x9e5   :  { %8071 = vst [vmem:[#allocation105_spill] sm:$0xff] %v6261_v40  ;;  %2655 = vmatpush.bf16.msrb.mxu3 %v6257_v33  ;;  %v4963_v33 = vld [vmem:[#allocation2 + $0x850] sm:$0xf] }
 0x9e6   :  { %2803 = vmatpush.bf16.msra.mxu2 %v6245_v24  ;;  %v6266_v24 = vor.u32 %v5365_v51, %v4869_v54  ;;  %8075 = vst [vmem:[#allocation109_spill] sm:$0xff] %v6274_v26  ;;  %v5289_v51 = vld [vmem:[#allocation2 + $0x4fc] sm:$0xf]  ;;  %v4565_v54 = vld [vmem:[#allocation2 + $0x590] sm:$0xf0]  ;;  %v6310_v46 = vor.u32 %v5415_v52, %v4963_v33 }
 0x9e7   :  { %8076 = vst [vmem:[#allocation110_spill] sm:$0xff] %v6279_v49  ;;  %v6281_v63 = vor.u32 %v5289_v51, %v4565_v54  ;;  %v4261_v51 = vld [vmem:[#allocation2 + $0x330] sm:$0xf0]  ;;  %v4323_v54 = vld [vmem:[#allocation2 + $0x2d8] sm:$0xf] }
 0x9e8   :  { %8073 = vst [vmem:[#allocation107_spill] sm:$0xff] %v6266_v24  ;;  %2460 = vmatpush.bf16.msra.mxu0 %v6310_v46  ;;  %v5367_v33 = vld [vmem:[#allocation2 + $0x76c] sm:$0xf]  ;;  %v4947_v52 = vld [vmem:[#allocation2 + $0x7a8] sm:$0xf] }
 0x9e9   :  { %2656 = vmatpush.bf16.msrb.mxu3 %v6266_v24  ;;  %8077 = vst [vmem:[#allocation111_spill] sm:$0xff] %v6281_v63  ;;  %v6287_v24 = vor.u32 %v5251_v56, %v4413_v27  ;;  %v5175_v56 = vld [vmem:[#allocation2 + $0x16c] sm:$0xf]  ;;  %v4109_v27 = vld [vmem:[#allocation2 + $0x200] sm:$0xf0] }
 0x9ea   :  { %2804 = vmatpush.bf16.msra.mxu2 %v6253_v37  ;;  %v4475_v37 = vld [vmem:[#allocation2 + $0x408] sm:$0xf] }
 0x9eb   :  { %8079 = vst [vmem:[#allocation113_spill] sm:$0xff] %v6287_v24 }
 0x9ed   :  { %2657 = vmatpush.bf16.msrb.mxu3 %v6274_v26  ;;  %v5278_v26 = vld [vmem:[#allocation2 + $0x49c] sm:$0xf0] }
 0x9ee   :  { %2805 = vmatpush.bf16.msra.mxu2 %v6261_v40  ;;  %v4627_v40 = vld [vmem:[#allocation2 + $0x538] sm:$0xf]  ;;  %v6291_v60 = vor.u32 %v5278_v26, %v4475_v37  ;;  %v6300_v26 = vor.u32 %v5175_v56, %v4109_v27  ;;  %v5405_v56 = vld [vmem:[#allocation2 + $0x89c] sm:$0xf] }
 0x9ef   :  { %v5099_v27 = vld [vmem:[#allocation2 + $0x8d8] sm:$0xf] }
 0x9f0   :  { %8080 = vst [vmem:[#allocation114_spill] sm:$0xff] %v6291_v60 }
 0x9f1   :  { %2806 = vmatmul.bf16.vlgmr.msra.gmra.mxu2 %v6031_v38  ;;  %2658 = vmatpush.bf16.msrb.mxu3 %v6281_v63  ;;  %v6293_v63 = vor.u32 %v5213_v59, %v4261_v51  ;;  %8083 = vst [vmem:[#allocation117_spill] sm:$0xff] %v6300_v26  ;;  %v4019_v59 = vld [vmem:[#allocation2 + $0x78] sm:$0xf]  ;;  %v5164_v51 = vld [vmem:[#allocation2 + $0x10c] sm:$0xf0] }
 0x9f2   :  { %2850 = vmatpush.bf16.msrb.mxu2 %v6264_v57  ;;  %v5316_v57 = vld [vmem:[#allocation2 + $0x5cc] sm:$0xf0] }
 0x9f3   :  { %v6285_v44 = vor.u32 %v5316_v57, %v4627_v40  ;;  %8081 = vst [vmem:[#allocation115_spill] sm:$0xff] %v6293_v63  ;;  %v7748_v40 = vperm.slane %v5786_v1, 2 }
 0x9f4   :  { %v2599_v37 = vpop.f32.mrf.mxu2 }
 0x9f5   :  { %8078 = vst [vmem:[#allocation112_spill] sm:$0xff] %v6285_v44  ;;  %2659 = vmatpush.bf16.msrb.mxu3 %v6287_v24  ;;  %v2600_v24 = vadd.f32 %v2599_v37, %v7748_v40  ;;  %v5037_v37 = vld [vmem:[#allocation2 + $0x930] sm:$0xf0] }
 0x9f6   :  { %2851 = vmatpush.bf16.msrb.mxu2 %v6272_v50  ;;  %v5240_v50 = vld [vmem:[#allocation2 + $0x36c] sm:$0xf0]  ;;  %v6313_v40 = vor.u32 %v5405_v56, %v5037_v37  ;;  %v4885_v56 = vld [vmem:[#allocation2 + $0x800] sm:$0xf0] }
 0x9f7   :  { %v6298_v57 = vor.u32 %v5240_v50, %v4323_v54  ;;  %2964 = vst [vmem:[#allocation15 + $0x50] sm:$0xff] %v2600_v24  ;;  %v5137_v50 = vld [vmem:[#allocation2 + $0x3c] sm:$0xf]  ;;  %v3957_v54 = vld [vmem:[#allocation2 + $0xd0] sm:$0xf0]  ;;  %v6319_v24 = vor.u32 %v5432_v32, %v5099_v27  ;;  %v6325_v37 = vor.u32 %v5367_v33, %v4885_v56 }
 0x9f8   :  { %8086 = vst [vmem:[#allocation120_spill] sm:$0xff] %v6313_v40  ;;  %v5329_v27 = vld [vmem:[#allocation2 + $0x63c] sm:$0xf]  ;;  %v5301_v56 = vld [vmem:[#allocation2 + $0x554] sm:$0xf0] }
 0x9f9   :  { %2660 = vmatpush.bf16.msrb.mxu3 %v6293_v63  ;;  %8082 = vst [vmem:[#allocation116_spill] sm:$0xff] %v6298_v57 }
 0x9fa   :  { %2852 = vmatpush.bf16.msrb.mxu2 %v6279_v49  ;;  %v4171_v49 = vld [vmem:[#allocation2 + $0x1a8] sm:$0xf]  ;;  %8088 = vst [vmem:[#allocation122_spill] sm:$0xff] %v6319_v24 }
 0x9fb   :  { %8089 = vst [vmem:[#allocation123_spill] sm:$0xff] %v6325_v37 }
 0x9fd   :  { %2661 = vmatpush.bf16.msrb.mxu3 %v6300_v26 }
 0x9fe   :  { %2853 = vmatpush.bf16.msrb.mxu2 %v6285_v44  ;;  %v5202_v44 = vld [vmem:[#allocation2 + $0x23c] sm:$0xf0] }
 0x9ff   :  { %v6306_v63 = vor.u32 %v5202_v44, %v4171_v49  ;;  %v6316_v49 = vor.u32 %v5164_v51, %v4019_v59  ;;  %v2601_v44 = vpop.f32.mrf.mxu2  ;;  %v4659_v59 = vld [vmem:[#allocation2 + $0x5f0] sm:$0xf]  ;;  %v5339_v51 = vld [vmem:[#allocation2 + $0x684] sm:$0xf0] }
 0xa00   :  { %v4795_v44 = vld [vmem:[#allocation2 + $0x678] sm:$0xf] }
 0xa01   :  { %8084 = vst [vmem:[#allocation118_spill] sm:$0xff] %v6306_v63 }
 0xa02   :  { %2854 = vmatpush.bf16.msrb.mxu2 %v6291_v60  ;;  %v6308_v60 = vor.u32 %v5137_v50, %v3957_v54  ;;  %8087 = vst [vmem:[#allocation121_spill] sm:$0xff] %v6316_v49  ;;  %v4811_v50 = vld [vmem:[#allocation2 + $0x720] sm:$0xf]  ;;  %v5377_v54 = vld [vmem:[#allocation2 + $0x7b4] sm:$0xf0] }
 0xa03   :  { %v6322_v26 = vor.u32 %v5377_v54, %v4811_v50  ;;  %v5356_v50 = vld [vmem:[#allocation2 + $0x70c] sm:$0xf0]  ;;  %v6333_v54 = vor.u32 %v5339_v51, %v4659_v59  ;;  %v4581_v51 = vld [vmem:[#allocation2 + $0x5a0] sm:$0xf0] }
 0xa04   :  { %8085 = vst [vmem:[#allocation119_spill] sm:$0xff] %v6308_v60  ;;  %2662 = vmatpush.bf16.msrb.mxu3 %v6308_v60 }
 0xa05   :  { %2461 = vmatpush.bf16.msra.mxu0 %v6322_v26 }
 0xa06   :  { %2855 = vmatpush.bf16.msrb.mxu2 %v6298_v57  ;;  %v5394_v57 = vld [vmem:[#allocation2 + $0x83c] sm:$0xf0] }
 0xa07   :  { %2663 = vmatmul.bf16.vlgmr.msrb.gmra.mxu3 %v6031_v38  ;;  %v6330_v32 = vor.u32 %v5394_v57, %v4947_v52  ;;  %v6340_v57 = vor.u32 %v5356_v50, %v4795_v44  ;;  %v4507_v52 = vld [vmem:[#allocation2 + $0x4c0] sm:$0xf]  ;;  %v5263_v44 = vld [vmem:[#allocation2 + $0x424] sm:$0xf0]  ;;  %v5253_v50 = vld [vmem:[#allocation2 + $0x3dc] sm:$0xf] }
 0xa08   :  { %2707 = vmatpush.bf16.msra.mxu3 %v6313_v40  ;;  %v6343_v59 = vor.u32 %v5301_v56, %v4507_v52  ;;  %v4429_v52 = vld [vmem:[#allocation2 + $0x470] sm:$0xf0] }
 0xa09   :  { %8090 = vst [vmem:[#allocation124_spill] sm:$0xff] %v6330_v32  ;;  %2462 = vmatpush.bf16.msra.mxu0 %v6333_v54  ;;  %v6354_v56 = vor.u32 %v5253_v50, %v4429_v52  ;;  %v5187_v52 = vld [vmem:[#allocation2 + $0x1c4] sm:$0xf0] }
 0xa0a   :  { %2856 = vmatpush.bf16.msrb.mxu2 %v6306_v63  ;;  %v4733_v63 = vld [vmem:[#allocation2 + $0x6d0] sm:$0xf0]  ;;  %8092 = vst [vmem:[#allocation126_spill] sm:$0xff] %v6340_v57 }
 0xa0b   :  { %v6336_v33 = vor.u32 %v5329_v27, %v4733_v63  ;;  %v4355_v27 = vld [vmem:[#allocation2 + $0x390] sm:$0xf]  ;;  %8095 = vst [vmem:[#allocation129_spill] sm:$0xff] %v6354_v56 }
 0xa0c   :  { %2708 = vmatpush.bf16.msra.mxu3 %v6325_v37  ;;  %v5318_v37 = vld [vmem:[#allocation2 + $0x5dc] sm:$0xf0]  ;;  %v6352_v60 = vor.u32 %v5263_v44, %v4355_v27  ;;  %v4277_v27 = vld [vmem:[#allocation2 + $0x340] sm:$0xf0]  ;;  %v7770_v44 = vperm.slane %v5786_v1, 6 }
 0xa0d   :  { %8091 = vst [vmem:[#allocation125_spill] sm:$0xff] %v6336_v33  ;;  %2463 = vmatpush.bf16.msra.mxu0 %v6343_v59 }
 0xa0e   :  { %2857 = vmatpush.bf16.msrb.mxu2 %v6316_v49  ;;  %v4643_v49 = vld [vmem:[#allocation2 + $0x548] sm:$0xf] }
 0xa0f   :  { %v6349_v63 = vor.u32 %v5318_v37, %v4643_v49  ;;  %v4203_v49 = vld [vmem:[#allocation2 + $0x260] sm:$0xf]  ;;  %v5225_v37 = vld [vmem:[#allocation2 + $0x2f4] sm:$0xf0] }
 0xa10   :  { %2709 = vmatpush.bf16.msra.mxu3 %v6336_v33  ;;  %v5280_v33 = vld [vmem:[#allocation2 + $0x4ac] sm:$0xf0]  ;;  %v6361_v42 = vor.u32 %v5225_v37, %v4203_v49 }
 0xa11   :  { %2858 = vmatmul.bf16.vlgmr.msrb.gmra.mxu2 %v6031_v38  ;;  %8094 = vst [vmem:[#allocation128_spill] sm:$0xff] %v6349_v63  ;;  %2464 = vmatpush.bf16.msra.mxu0 %v6352_v60 }
 0xa12   :  { %2902 = vmatpush.bf16.msra.mxu2 %v6319_v24  ;;  %v5291_v24 = vld [vmem:[#allocation2 + $0x50c] sm:$0xf] }
 0xa13   :  { %v6345_v40 = vor.u32 %v5291_v24, %v4581_v51  ;;  %v5215_v51 = vld [vmem:[#allocation2 + $0x2ac] sm:$0xf] }
 0xa14   :  { %v6364_v50 = vor.u32 %v5215_v51, %v4277_v27  ;;  %v2651_v49 = vpop.f32.mrf.mxu2 }
 0xa15   :  { %8093 = vst [vmem:[#allocation127_spill] sm:$0xff] %v6345_v40  ;;  %2710 = vmatpush.bf16.msra.mxu3 %v6345_v40  ;;  %v5242_v40 = vld [vmem:[#allocation2 + $0x37c] sm:$0xf0]  ;;  %2465 = vmatpush.bf16.msra.mxu0 %v6361_v42  ;;  %v2652_v51 = vadd.f32 %v2651_v49, %v7770_v44  ;;  %v5407_v44 = vld [vmem:[#allocation2 + $0x8ac] sm:$0xf] }
 0xa16   :  { %2903 = vmatpush.bf16.msra.mxu2 %v6330_v32  ;;  %v4491_v32 = vld [vmem:[#allocation2 + $0x418] sm:$0xf]  ;;  %8097 = vst [vmem:[#allocation131_spill] sm:$0xff] %v6364_v50  ;;  %v4979_v49 = vld [vmem:[#allocation2 + $0x860] sm:$0xf] }
 0xa17   :  { %v6358_v24 = vor.u32 %v5280_v33, %v4491_v32  ;;  %v4051_v33 = vld [vmem:[#allocation2 + $0x130] sm:$0xf]  ;;  %2968 = vst [vmem:[#allocation15 + $0x70] sm:$0xff] %v2652_v51 }
 0xa18   :  { %v6371_v37 = vor.u32 %v5187_v52, %v4051_v33  ;;  %v5149_v33 = vld [vmem:[#allocation2 + $0x94] sm:$0xf0] }
 0xa19   :  { %8096 = vst [vmem:[#allocation130_spill] sm:$0xff] %v6358_v24  ;;  %2711 = vmatpush.bf16.msra.mxu3 %v6354_v56  ;;  %v4187_v56 = vld [vmem:[#allocation2 + $0x1b8] sm:$0xf] }
 0xa1a   :  { %2904 = vmatpush.bf16.msra.mxu2 %v6340_v57  ;;  %v4339_v57 = vld [vmem:[#allocation2 + $0x2e8] sm:$0xf]  ;;  %2466 = vmatpush.bf16.msra.mxu0 %v6371_v37 }
 0xa1b   :  { %v6368_v32 = vor.u32 %v5242_v40, %v4339_v57  ;;  %v6379_v40 = vor.u32 %v5204_v39, %v4187_v56  ;;  %v3899_v57 = vld [vmem:[#allocation2] sm:$0xf]  ;;  %v6389_v39 = vor.u32 %v5407_v44, %v5053_v41  ;;  %v5331_v44 = vld [vmem:[#allocation2 + $0x64c] sm:$0xf] }
 0xa1c   :  { %v6382_v52 = vor.u32 %v5149_v33, %v3899_v57  ;;  %v2653_v51 = vpop.f32.mrf.mxu2  ;;  %v5369_v57 = vld [vmem:[#allocation2 + $0x77c] sm:$0xf] }
 0xa1d   :  { %8098 = vst [vmem:[#allocation132_spill] sm:$0xff] %v6368_v32  ;;  %2712 = vmatpush.bf16.msra.mxu3 %v6364_v50  ;;  %v5139_v50 = vld [vmem:[#allocation2 + $0x4c] sm:$0xf]  ;;  %v4749_v51 = vld [vmem:[#allocation2 + $0x6e0] sm:$0xf0] }
 0xa1e   :  { %2905 = vmatpush.bf16.msra.mxu2 %v6349_v63  ;;  %v5177_v63 = vld [vmem:[#allocation2 + $0x17c] sm:$0xf]  ;;  %8100 = vst [vmem:[#allocation134_spill] sm:$0xff] %v6379_v40  ;;  %2467 = vmatpush.bf16.msra.mxu0 %v6382_v52 }
 0xa1f   :  { %v6375_v27 = vor.u32 %v5177_v63, %v4125_v35  ;;  %v6384_v35 = vor.u32 %v5139_v50, %v3973_v36  ;;  %v5417_v63 = vld [vmem:[#allocation2 + $0x8f4] sm:$0xf0]  ;;  %8103 = vst [vmem:[#allocation137_spill] sm:$0xff] %v6389_v39  ;;  %v4827_v36 = vld [vmem:[#allocation2 + $0x730] sm:$0xf] }
 0xa20   :  { %v5379_v50 = vld [vmem:[#allocation2 + $0x7c4] sm:$0xf0] }
 0xa21   :  { %8099 = vst [vmem:[#allocation133_spill] sm:$0xff] %v6375_v27  ;;  %2713 = vmatpush.bf16.msra.mxu3 %v6375_v27  ;;  %v6397_v33 = vor.u32 %v5379_v50, %v4827_v36  ;;  %2468 = vmatmul.bf16.vlgmr.msra.gmra.mxu0 %v6031_v38  ;;  %v6409_v36 = vor.u32 %v5331_v44, %v4749_v51  ;;  %v4523_v50 = vld [vmem:[#allocation2 + $0x4d0] sm:$0xf]  ;;  %v5255_v44 = vld [vmem:[#allocation2 + $0x3ec] sm:$0xf] }
 0xa22   :  { %2906 = vmatpush.bf16.msra.mxu2 %v6358_v24  ;;  %v5166_v24 = vld [vmem:[#allocation2 + $0x11c] sm:$0xf0]  ;;  %8101 = vst [vmem:[#allocation135_spill] sm:$0xff] %v6384_v35  ;;  %v4445_v51 = vld [vmem:[#allocation2 + $0x480] sm:$0xf0] }
 0xa23   :  { %v6392_v56 = vor.u32 %v5166_v24, %v4035_v31  ;;  %8105 = vst [vmem:[#allocation139_spill] sm:$0xff] %v6397_v33  ;;  %v4675_v31 = vld [vmem:[#allocation2 + $0x600] sm:$0xf]  ;;  %v5341_v24 = vld [vmem:[#allocation2 + $0x694] sm:$0xf0] }
 0xa24   :  { %8108 = vst [vmem:[#allocation142_spill] sm:$0xff] %v6409_v36 }
 0xa25   :  { %8104 = vst [vmem:[#allocation138_spill] sm:$0xff] %v6392_v56  ;;  %2714 = vmatpush.bf16.msra.mxu3 %v6384_v35  ;;  %v6424_v35 = vor.u32 %v5255_v44, %v4445_v51  ;;  %v5189_v44 = vld [vmem:[#allocation2 + $0x1d4] sm:$0xf0] }
 0xa26   :  { %2907 = vmatpush.bf16.msra.mxu2 %v6368_v32  ;;  %v6387_v32 = vor.u32 %v5417_v63, %v4979_v49  ;;  %v4901_v49 = vld [vmem:[#allocation2 + $0x810] sm:$0xf0]  ;;  %v6406_v63 = vor.u32 %v5341_v24, %v4675_v31  ;;  %v4371_v24 = vld [vmem:[#allocation2 + $0x3a0] sm:$0xf] }
 0xa27   :  { %v6400_v41 = vor.u32 %v5369_v57, %v4901_v49  ;;  %v5303_v57 = vld [vmem:[#allocation2 + $0x564] sm:$0xf0]  ;;  %v5293_v49 = vld [vmem:[#allocation2 + $0x51c] sm:$0xf]  ;;  %8112 = vst [vmem:[#allocation146_spill] sm:$0xff] %v6424_v35 }
 0xa28   :  { %8102 = vst [vmem:[#allocation136_spill] sm:$0xff] %v6387_v32  ;;  %2512 = vmatpush.bf16.msrb.mxu0 %v6387_v32  ;;  %2715 = vmatmul.bf16.vlgmr.msra.gmra.mxu3 %v6031_v38  ;;  %v4995_v32 = vld [vmem:[#allocation2 + $0x870] sm:$0xf] }
 0xa29   :  { %2759 = vmatpush.bf16.msrb.mxu3 %v6389_v39  ;;  %8106 = vst [vmem:[#allocation140_spill] sm:$0xff] %v6400_v41 }
 0xa2a   :  { %2908 = vmatpush.bf16.msra.mxu2 %v6379_v40  ;;  %8107 = vst [vmem:[#allocation141_spill] sm:$0xff] %v6406_v63  ;;  %v6414_v40 = vor.u32 %v5303_v57, %v4523_v50  ;;  %v4219_v50 = vld [vmem:[#allocation2 + $0x270] sm:$0xf]  ;;  %v5227_v57 = vld [vmem:[#allocation2 + $0x304] sm:$0xf0] }
 0xa2b   :  { %v6429_v27 = vor.u32 %v5227_v57, %v4219_v50 }
 0xa2c   :  { %2513 = vmatpush.bf16.msrb.mxu0 %v6397_v33  ;;  %8109 = vst [vmem:[#allocation143_spill] sm:$0xff] %v6414_v40  ;;  %v4141_v33 = vld [vmem:[#allocation2 + $0x220] sm:$0xf0] }
 0xa2d   :  { %2760 = vmatpush.bf16.msrb.mxu3 %v6400_v41  ;;  %v5265_v41 = vld [vmem:[#allocation2 + $0x434] sm:$0xf0]  ;;  %8113 = vst [vmem:[#allocation147_spill] sm:$0xff] %v6429_v27 }
 0xa2e   :  { %2909 = vmatpush.bf16.msra.mxu2 %v6392_v56  ;;  %v4597_v56 = vld [vmem:[#allocation2 + $0x5b0] sm:$0xf0]  ;;  %v6421_v39 = vor.u32 %v5265_v41, %v4371_v24  ;;  %v4067_v24 = vld [vmem:[#allocation2 + $0x140] sm:$0xf] }
 0xa2f   :  { %v6417_v31 = vor.u32 %v5293_v49, %v4597_v56  ;;  %v5217_v56 = vld [vmem:[#allocation2 + $0x2bc] sm:$0xf]  ;;  %v4293_v49 = vld [vmem:[#allocation2 + $0x350] sm:$0xf0]  ;;  %v6439_v50 = vor.u32 %v5189_v44, %v4067_v24 }
 0xa30   :  { %2514 = vmatpush.bf16.msrb.mxu0 %v6406_v63  ;;  %8111 = vst [vmem:[#allocation145_spill] sm:$0xff] %v6421_v39  ;;  %v2508_v63 = vpop.f32.mrf.mxu3  ;;  %v6432_v41 = vor.u32 %v5217_v56, %v4293_v49  ;;  %v3915_v49 = vld [vmem:[#allocation2 + $0x10] sm:$0xf] }
 0xa31   :  { %2910 = vmatmul.bf16.vlgmr.msra.gmra.mxu2 %v6031_v38  ;;  %2761 = vmatpush.bf16.msrb.mxu3 %v6409_v36  ;;  %8110 = vst [vmem:[#allocation144_spill] sm:$0xff] %v6417_v31  ;;  %v7786_v36 = vperm.slane %v5784_v0, 3 }
 0xa32   :  { %2993 = vmatpush.bf16.msrb.mxu2 %v5794_v5  ;;  %8114 = vst [vmem:[#allocation148_spill] sm:$0xff] %v6432_v41 }
 0xa33   :  { %v2509_v51 = vadd.f32 %v2508_v63, %v7786_v36  ;;  %8115 = vst [vmem:[#allocation149_spill] sm:$0xff] %v6439_v50  ;;  %v3989_v36 = vld [vmem:[#allocation2 + $0xf0] sm:$0xf0] }
 0xa34   :  { %2515 = vmatpush.bf16.msrb.mxu0 %v6414_v40  ;;  %v5179_v40 = vld [vmem:[#allocation2 + $0x18c] sm:$0xf]  ;;  %v2703_v57 = vpop.f32.mrf.mxu2 }
 0xa35   :  { %2762 = vmatpush.bf16.msrb.mxu3 %v6417_v31  ;;  %v7790_v31 = vperm.slane %v5788_v2, 2  ;;  %2957 = vst [vmem:[#allocation15 + $0x18] sm:$0xff] %v2509_v51  ;;  %v6442_v56 = vor.u32 %v5179_v40, %v4141_v33  ;;  %v5419_v51 = vld [vmem:[#allocation2 + $0x904] sm:$0xf0] }
 0xa36   :  { %2994 = vmatpush.bf16.msrb.mxu2 %v5797_v6  ;;  %v6453_v44 = vor.u32 %v5419_v51, %v4995_v32  ;;  %v4613_v51 = vld [vmem:[#allocation2 + $0x5c0] sm:$0xf0] }
 0xa37   :  { %8116 = vst [vmem:[#allocation150_spill] sm:$0xff] %v6442_v56  ;;  %v2704_v63 = vadd.f32 %v2703_v57, %v7790_v31  ;;  %v6455_v57 = vor.u32 %v5409_v48, %v5069_v43  ;;  %v4843_v31 = vld [vmem:[#allocation2 + $0x740] sm:$0xf]  ;;  %v4691_v48 = vld [vmem:[#allocation2 + $0x610] sm:$0xf] }
 0xa38   :  { %2516 = vmatpush.bf16.msrb.mxu0 %v6421_v39  ;;  %v5141_v39 = vld [vmem:[#allocation2 + $0x5c] sm:$0xf]  ;;  %v2510_v40 = vpop.f32.mrf.mxu3  ;;  %8119 = vst [vmem:[#allocation153_spill] sm:$0xff] %v6453_v44  ;;  %v5343_v43 = vld [vmem:[#allocation2 + $0x6a4] sm:$0xf0] }
 0xa39   :  { %2763 = vmatpush.bf16.msrb.mxu3 %v6424_v35  ;;  %v5151_v35 = vld [vmem:[#allocation2 + $0xa4] sm:$0xf0]  ;;  %2972 = vst [vmem:[#allocation15 + $0x90] sm:$0xff] %v2704_v63  ;;  %v6451_v33 = vor.u32 %v5141_v39, %v3989_v36  ;;  %v2992_v39 = vpack.c.bf16 %v6000_v47, %v6000_v47  ;;  %v5333_v36 = vld [vmem:[#allocation2 + $0x65c] sm:$0xf] }
 0xa3a   :  { %2995 = vmatpush.bf16.msrb.mxu2 %v5807_v9  ;;  %v6448_v24 = vor.u32 %v5151_v35, %v3915_v49  ;;  %8120 = vst [vmem:[#allocation154_spill] sm:$0xff] %v6455_v57  ;;  %v4765_v49 = vld [vmem:[#allocation2 + $0x6f0] sm:$0xf0]  ;;  %v5305_v47 = vld [vmem:[#allocation2 + $0x574] sm:$0xf0] }
 0xa3b   :  { %8118 = vst [vmem:[#allocation152_spill] sm:$0xff] %v6451_v33 }
 0xa3c   :  { %2517 = vmatpush.bf16.msrb.mxu0 %v6429_v27  ;;  %8117 = vst [vmem:[#allocation151_spill] sm:$0xff] %v6448_v24  ;;  %v5371_v27 = vld [vmem:[#allocation2 + $0x78c] sm:$0xf]  ;;  %v2705_v63 = vpop.f32.mrf.mxu2 }
 0xa3d   :  { %2764 = vmatpush.bf16.msrb.mxu3 %v6432_v41  ;;  %v5381_v41 = vld [vmem:[#allocation2 + $0x7d4] sm:$0xf0]  ;;  %v6464_v32 = vor.u32 %v5371_v27, %v4917_v30  ;;  %v6476_v30 = vor.u32 %v5333_v36, %v4765_v49  ;;  %v4539_v27 = vld [vmem:[#allocation2 + $0x4e0] sm:$0xf]  ;;  %v4461_v36 = vld [vmem:[#allocation2 + $0x490] sm:$0xf0] }
 0xa3e   :  { %2996 = vmatpush.bf16.msrb.mxu2 %v5815_v11  ;;  %v6461_v35 = vor.u32 %v5381_v41, %v4843_v31  ;;  %v6472_v31 = vor.u32 %v5343_v43, %v4691_v48  ;;  %v5295_v41 = vld [vmem:[#allocation2 + $0x52c] sm:$0xf]  ;;  %v6479_v40 = vor.u32 %v5305_v47, %v4539_v27  ;;  %v4387_v48 = vld [vmem:[#allocation2 + $0x3b0] sm:$0xf]  ;;  %v5267_v43 = vld [vmem:[#allocation2 + $0x444] sm:$0xf0] }
 0xa3f   :  { %8122 = vst [vmem:[#allocation156_spill] sm:$0xff] %v6464_v32  ;;  %v6483_v63 = vor.u32 %v5295_v41, %v4613_v51  ;;  %v6486_v49 = vor.u32 %v5267_v43, %v4387_v48  ;;  %v4235_v27 = vld [vmem:[#allocation2 + $0x280] sm:$0xf]  ;;  %v5229_v47 = vld [vmem:[#allocation2 + $0x314] sm:$0xf0] }
 0xa40   :  { %2518 = vmatpush.bf16.msrb.mxu0 %v6439_v50  ;;  %8121 = vst [vmem:[#allocation155_spill] sm:$0xff] %v6461_v35  ;;  %v5219_v41 = vld [vmem:[#allocation2 + $0x2cc] sm:$0xf]  ;;  %v4309_v51 = vld [vmem:[#allocation2 + $0x360] sm:$0xf0] }
 0xa41   :  { %2765 = vmatpush.bf16.msrb.mxu3 %v6442_v56  ;;  %8123 = vst [vmem:[#allocation157_spill] sm:$0xff] %v6472_v31  ;;  %v6498_v48 = vor.u32 %v5219_v41, %v4309_v51  ;;  %v4083_v43 = vld [vmem:[#allocation2 + $0x150] sm:$0xf]  ;;  %v5181_v56 = vld [vmem:[#allocation2 + $0x19c] sm:$0xf] }
 0xa42   :  { %2997 = vmatpush.bf16.msrb.mxu2 %v5823_v13  ;;  %8124 = vst [vmem:[#allocation158_spill] sm:$0xff] %v6476_v30  ;;  %v3931_v51 = vld [vmem:[#allocation2 + $0x20] sm:$0xf] }
 0xa43   :  { %8125 = vst [vmem:[#allocation159_spill] sm:$0xff] %v6479_v40 }
 0xa44   :  { %2519 = vmatpush.bf16.msrb.mxu0 %v6448_v24  ;;  %8126 = vst [vmem:[#allocation160_spill] sm:$0xff] %v6483_v63  ;;  %v4933_v24 = vld [vmem:[#allocation2 + $0x830] sm:$0xf0] }
 0xa45   :  { %2766 = vmatpush.bf16.msrb.mxu3 %v6451_v33  ;;  %8127 = vst [vmem:[#allocation161_spill] sm:$0xff] %v6486_v49 }
 0xa46   :  { %2998 = vmatpush.bf16.msrb.mxu2 %v5831_v15  ;;  %8130 = vst [vmem:[#allocation164_spill] sm:$0xff] %v6498_v48 }
 0xa47   :  { %2520 = vmatmul.bf16.vlgmr.msrb.gmra.mxu0 %v6031_v38  ;;  %v2560_v33 = vpop.f32.mrf.mxu3  ;;  %v8322_v45 = vld [vmem:[#allocation155_spill] sm:$0xff] }
 0xa48   :  { %2564 = vmatpush.bf16.msra.mxu0 %v6453_v44  ;;  %2767 = vmatmul.bf16.vlgmr.msrb.gmra.mxu3 %v6031_v38  ;;  %v5373_v44 = vld [vmem:[#allocation2 + $0x79c] sm:$0xf] }
 0xa49   :  { %2811 = vmatpush.bf16.msra.mxu3 %v6455_v57  ;;  %v6494_v57 = vor.u32 %v5229_v47, %v4235_v27 }
 0xa4a   :  { %2999 = vmatpush.bf16.msrb.mxu2 %v5837_v16 }
 0xa4b   :  { %8129 = vst [vmem:[#allocation163_spill] sm:$0xff] %v6494_v57 }
 0xa4c   :  { %2565 = vmatpush.bf16.msra.mxu0 %v6461_v35  ;;  %v5411_v35 = vld [vmem:[#allocation2 + $0x8cc] sm:$0xf] }
 0xa4d   :  { %2812 = vmatpush.bf16.msra.mxu3 %v6464_v32  ;;  %v5257_v32 = vld [vmem:[#allocation2 + $0x3fc] sm:$0xf] }
 0xa4e   :  { %3000 = vmatpush.bf16.msrb.mxu2 %v5841_v17 }
 0xa50   :  { %2566 = vmatpush.bf16.msra.mxu0 %v6472_v31  ;;  %v5011_v31 = vld [vmem:[#allocation2 + $0x880] sm:$0xf] }
 0xa51   :  { %3001 = vmatmul.bf16.vlgmr.msrb.gmra.mxu2 %v2992_v39  ;;  %2813 = vmatpush.bf16.msra.mxu3 %v6476_v30  ;;  %v6490_v39 = vor.u32 %v5257_v32, %v4461_v36  ;;  %v7803_v30 = vperm.slane %v5784_v0, 7  ;;  %v5191_v32 = vld [vmem:[#allocation2 + $0x1e4] sm:$0xf0] }
 0xa52   :  { %3063 = vmatpush.bf16.msra.mxu2 %v5794_v5  ;;  %v6504_v27 = vor.u32 %v5191_v32, %v4083_v43  ;;  %v2562_v32 = vpop.f32.mrf.mxu3 }
 0xa53   :  { %8128 = vst [vmem:[#allocation162_spill] sm:$0xff] %v6490_v39  ;;  %v2561_v36 = vadd.f32 %v2560_v33, %v7803_v30  ;;  %v4005_v30 = vld [vmem:[#allocation2 + $0x100] sm:$0xf0] }
 0xa54   :  { %2567 = vmatpush.bf16.msra.mxu0 %v6479_v40  ;;  %v4157_v40 = vld [vmem:[#allocation2 + $0x230] sm:$0xf0]  ;;  %8131 = vst [vmem:[#allocation165_spill] sm:$0xff] %v6504_v27  ;;  %v2755_v47 = vpop.f32.mrf.mxu2 }
 0xa55   :  { %2814 = vmatpush.bf16.msra.mxu3 %v6483_v63  ;;  %v7807_v63 = vperm.slane %v5788_v2, 6  ;;  %2961 = vst [vmem:[#allocation15 + $0x38] sm:$0xff] %v2561_v36  ;;  %v6508_v41 = vor.u32 %v5181_v56, %v4157_v40  ;;  %v5421_v36 = vld [vmem:[#allocation2 + $0x914] sm:$0xf0] }
 0xa56   :  { %3064 = vmatpush.bf16.msra.mxu2 %v5797_v6  ;;  %v6519_v40 = vor.u32 %v5421_v36, %v5011_v31  ;;  %v6530_v31 = vor.u32 %v5373_v44, %v4933_v24  ;;  %v4555_v44 = vld [vmem:[#allocation2 + $0x4f0] sm:$0xf]  ;;  %v4629_v36 = vld [vmem:[#allocation2 + $0x5d0] sm:$0xf0] }
 0xa57   :  { %8132 = vst [vmem:[#allocation166_spill] sm:$0xff] %v6508_v41  ;;  %v2756_v33 = vadd.f32 %v2755_v47, %v7807_v63  ;;  %v4859_v63 = vld [vmem:[#allocation2 + $0x750] sm:$0xf] }
 0xa58   :  { %2568 = vmatpush.bf16.msra.mxu0 %v6486_v49  ;;  %v5143_v49 = vld [vmem:[#allocation2 + $0x6c] sm:$0xf]  ;;  %8135 = vst [vmem:[#allocation169_spill] sm:$0xff] %v6519_v40 }
 0xa59   :  { %2815 = vmatpush.bf16.msra.mxu3 %v6490_v39  ;;  %v5153_v39 = vld [vmem:[#allocation2 + $0xb4] sm:$0xf0]  ;;  %2976 = vst [vmem:[#allocation15 + $0xb0] sm:$0xff] %v2756_v33  ;;  %v6517_v56 = vor.u32 %v5143_v49, %v4005_v30  ;;  %v5335_v30 = vld [vmem:[#allocation2 + $0x66c] sm:$0xf] }
 0xa5a   :  { %3065 = vmatpush.bf16.msra.mxu2 %v5807_v9  ;;  %v6513_v43 = vor.u32 %v5153_v39, %v3931_v51  ;;  %8138 = vst [vmem:[#allocation172_spill] sm:$0xff] %v6530_v31  ;;  %v4781_v49 = vld [vmem:[#allocation2 + $0x700] sm:$0xf0] }
 0xa5b   :  { %8134 = vst [vmem:[#allocation168_spill] sm:$0xff] %v6517_v56  ;;  %v6540_v24 = vor.u32 %v5335_v30, %v4781_v49 }
 0xa5c   :  { %2569 = vmatpush.bf16.msra.mxu0 %v6494_v57  ;;  %v5085_v57 = vld [vmem:[#allocation2 + $0x960] sm:$0xf0]  ;;  %8133 = vst [vmem:[#allocation167_spill] sm:$0xff] %v6513_v43  ;;  %v2757_v39 = vpop.f32.mrf.mxu2 }
 0xa5d   :  { %2816 = vmatpush.bf16.msra.mxu3 %v6498_v48  ;;  %v6521_v47 = vor.u32 %v5411_v35, %v5085_v57  ;;  %v5383_v48 = vld [vmem:[#allocation2 + $0x7e4] sm:$0xf0]  ;;  %v4707_v57 = vld [vmem:[#allocation2 + $0x620] sm:$0xf]  ;;  %v5345_v35 = vld [vmem:[#allocation2 + $0x6b4] sm:$0xf0] }
 0xa5e   :  { %3066 = vmatpush.bf16.msra.mxu2 %v5815_v11  ;;  %v6527_v51 = vor.u32 %v5383_v48, %v4859_v63  ;;  %v6536_v33 = vor.u32 %v5345_v35, %v4707_v57  ;;  %8140 = vst [vmem:[#allocation174_spill] sm:$0xff] %v6540_v24  ;;  %v5307_v63 = vld [vmem:[#allocation2 + $0x584] sm:$0xf0]  ;;  %v5297_v48 = vld [vmem:[#allocation2 + $0x53c] sm:$0xf] }
 0xa5f   :  { %8136 = vst [vmem:[#allocation170_spill] sm:$0xff] %v6521_v47  ;;  %v6543_v32 = vor.u32 %v5307_v63, %v4555_v44  ;;  %v6547_v39 = vor.u32 %v5297_v48, %v4629_v36  ;;  %v4403_v57 = vld [vmem:[#allocation2 + $0x3c0] sm:$0xf]  ;;  %v5269_v35 = vld [vmem:[#allocation2 + $0x454] sm:$0xf0] }
 0xa60   :  { %2570 = vmatpush.bf16.msra.mxu0 %v6504_v27  ;;  %8137 = vst [vmem:[#allocation171_spill] sm:$0xff] %v6527_v51  ;;  %v6550_v30 = vor.u32 %v5269_v35, %v4403_v57  ;;  %v4251_v44 = vld [vmem:[#allocation2 + $0x290] sm:$0xf]  ;;  %v5231_v63 = vld [vmem:[#allocation2 + $0x324] sm:$0xf0] }
 0xa61   :  { %2817 = vmatpush.bf16.msra.mxu3 %v6508_v41  ;;  %8139 = vst [vmem:[#allocation173_spill] sm:$0xff] %v6536_v33  ;;  %v5221_v48 = vld [vmem:[#allocation2 + $0x2dc] sm:$0xf]  ;;  %v4325_v36 = vld [vmem:[#allocation2 + $0x370] sm:$0xf0] }
 0xa62   :  { %3067 = vmatpush.bf16.msra.mxu2 %v5823_v13  ;;  %8141 = vst [vmem:[#allocation175_spill] sm:$0xff] %v6543_v32  ;;  %v6562_v57 = vor.u32 %v5221_v48, %v4325_v36  ;;  %v4099_v35 = vld [vmem:[#allocation2 + $0x160] sm:$0xf]  ;;  %v3947_v36 = vld [vmem:[#allocation2 + $0x30] sm:$0xf] }
 0xa63   :  { %8142 = vst [vmem:[#allocation176_spill] sm:$0xff] %v6547_v39  ;;  %v4949_v27 = vld [vmem:[#allocation2 + $0x840] sm:$0xf0] }
 0xa64   :  { %2571 = vmatpush.bf16.msra.mxu0 %v6513_v43  ;;  %8143 = vst [vmem:[#allocation177_spill] sm:$0xff] %v6550_v30  ;;  %v5375_v43 = vld [vmem:[#allocation2 + $0x7ac] sm:$0xf] }
 0xa65   :  { %2818 = vmatpush.bf16.msra.mxu3 %v6517_v56  ;;  %v6558_v56 = vor.u32 %v5231_v63, %v4251_v44  ;;  %8146 = vst [vmem:[#allocation180_spill] sm:$0xff] %v6562_v57 }
 0xa66   :  { %3068 = vmatpush.bf16.msra.mxu2 %v5831_v15 }
 0xa67   :  { %2572 = vmatmul.bf16.vlgmr.msra.gmra.mxu0 %v6031_v38  ;;  %8145 = vst [vmem:[#allocation179_spill] sm:$0xff] %v6558_v56  ;;  %v2612_v41 = vpop.f32.mrf.mxu3 }
 0xa68   :  { %2616 = vmatpush.bf16.msrb.mxu0 %v6519_v40  ;;  %2819 = vmatmul.bf16.vlgmr.msra.gmra.mxu3 %v6031_v38  ;;  %v5413_v40 = vld [vmem:[#allocation2 + $0x8dc] sm:$0xf] }
 0xa69   :  { %2863 = vmatpush.bf16.msrb.mxu3 %v6521_v47  ;;  %v5259_v47 = vld [vmem:[#allocation2 + $0x40c] sm:$0xf] }
 0xa6a   :  { %3069 = vmatpush.bf16.msra.mxu2 %v5837_v16 }
 0xa6c   :  { %2617 = vmatpush.bf16.msrb.mxu0 %v6527_v51  ;;  %v5027_v51 = vld [vmem:[#allocation2 + $0x890] sm:$0xf] }
 0xa6d   :  { %2864 = vmatpush.bf16.msrb.mxu3 %v6530_v31  ;;  %v4477_v31 = vld [vmem:[#allocation2 + $0x4a0] sm:$0xf0] }
 0xa6e   :  { %3070 = vmatpush.bf16.msra.mxu2 %v5841_v17  ;;  %v6554_v49 = vor.u32 %v5259_v47, %v4477_v31  ;;  %v5193_v47 = vld [vmem:[#allocation2 + $0x1f4] sm:$0xf0] }
 0xa6f   :  { %v6568_v44 = vor.u32 %v5193_v47, %v4099_v35  ;;  %v2614_v47 = vpop.f32.mrf.mxu3 }
 0xa70   :  { %2618 = vmatpush.bf16.msrb.mxu0 %v6536_v33  ;;  %8144 = vst [vmem:[#allocation178_spill] sm:$0xff] %v6554_v49  ;;  %v4173_v33 = vld [vmem:[#allocation2 + $0x240] sm:$0xf0]  ;;  %v4797_v47 = vld [vmem:[#allocation2 + $0x710] sm:$0xf0] }
 0xa71   :  { %2865 = vmatpush.bf16.msrb.mxu3 %v6540_v24  ;;  %v7821_v24 = vperm.slane %v5786_v1, 3  ;;  %8147 = vst [vmem:[#allocation181_spill] sm:$0xff] %v6568_v44 }
 0xa72   :  { %3133 = vmatpush.bf16.msrb.mxu2 %v5794_v5 }
 0xa73   :  { %v2613_v31 = vadd.f32 %v2612_v41, %v7821_v24  ;;  %v4021_v24 = vld [vmem:[#allocation2 + $0x110] sm:$0xf0] }
 0xa74   :  { %2619 = vmatpush.bf16.msrb.mxu0 %v6543_v32  ;;  %v5183_v32 = vld [vmem:[#allocation2 + $0x1ac] sm:$0xf]  ;;  %v2807_v63 = vpop.f32.mrf.mxu2 }
 0xa75   :  { %2866 = vmatpush.bf16.msrb.mxu3 %v6547_v39  ;;  %v7825_v39 = vperm.slane %v5790_v3, 2  ;;  %2965 = vst [vmem:[#allocation15 + $0x58] sm:$0xff] %v2613_v31  ;;  %v6572_v48 = vor.u32 %v5183_v32, %v4173_v33  ;;  %v5423_v31 = vld [vmem:[#allocation2 + $0x924] sm:$0xf0] }
 0xa76   :  { %3134 = vmatpush.bf16.msrb.mxu2 %v5797_v6  ;;  %v6583_v32 = vor.u32 %v5423_v31, %v5027_v51  ;;  %v5337_v31 = vld [vmem:[#allocation2 + $0x67c] sm:$0xf] }
 0xa77   :  { %8148 = vst [vmem:[#allocation182_spill] sm:$0xff] %v6572_v48  ;;  %v2808_v41 = vadd.f32 %v2807_v63, %v7825_v39  ;;  %v4875_v39 = vld [vmem:[#allocation2 + $0x760] sm:$0xf] }
 0xa78   :  { %2620 = vmatpush.bf16.msrb.mxu0 %v6550_v30  ;;  %v5145_v30 = vld [vmem:[#allocation2 + $0x7c] sm:$0xf]  ;;  %8151 = vst [vmem:[#allocation185_spill] sm:$0xff] %v6583_v32 }
 0xa79   :  { %2867 = vmatpush.bf16.msrb.mxu3 %v6554_v49  ;;  %v5155_v49 = vld [vmem:[#allocation2 + $0xc4] sm:$0xf0]  ;;  %2980 = vst [vmem:[#allocation15 + $0xd0] sm:$0xff] %v2808_v41  ;;  %v6581_v33 = vor.u32 %v5145_v30, %v4021_v24  ;;  %v5396_v41 = vld [vmem:[#allocation2 + $0x854] sm:$0xf] }
 0xa7a   :  { %3135 = vmatpush.bf16.msrb.mxu2 %v5807_v9  ;;  %v6577_v35 = vor.u32 %v5155_v49, %v3947_v36  ;;  %v4965_v49 = vld [vmem:[#allocation2 + $0x8e8] sm:$0xf0]  ;;  %v5347_v30 = vld [vmem:[#allocation2 + $0x6c4] sm:$0xf0] }
 0xa7b   :  { %8150 = vst [vmem:[#allocation184_spill] sm:$0xff] %v6581_v33  ;;  %v6593_v51 = vor.u32 %v5396_v41, %v4965_v49  ;;  %v5299_v41 = vld [vmem:[#allocation2 + $0x54c] sm:$0xf]  ;;  %v4645_v49 = vld [vmem:[#allocation2 + $0x5e0] sm:$0xf0] }
 0xa7c   :  { %2621 = vmatpush.bf16.msrb.mxu0 %v6558_v56  ;;  %v5101_v56 = vld [vmem:[#allocation2 + $0x970] sm:$0xf0]  ;;  %8149 = vst [vmem:[#allocation183_spill] sm:$0xff] %v6577_v35  ;;  %v2809_v36 = vpop.f32.mrf.mxu2 }
 0xa7d   :  { %2868 = vmatpush.bf16.msrb.mxu3 %v6562_v57  ;;  %v6585_v63 = vor.u32 %v5413_v40, %v5101_v56  ;;  %v5385_v57 = vld [vmem:[#allocation2 + $0x7f4] sm:$0xf0]  ;;  %v6596_v56 = vor.u32 %v5375_v43, %v4949_v27  ;;  %v4723_v40 = vld [vmem:[#allocation2 + $0x630] sm:$0xf]  ;;  %2473 = vmatpush.bf16.msra.mxu1 %v6593_v51  ;;  %v6606_v27 = vor.u32 %v5337_v31, %v4797_v47  ;;  %v4571_v43 = vld [vmem:[#allocation2 + $0x500] sm:$0xf] }
 0xa7e   :  { %3136 = vmatpush.bf16.msrb.mxu2 %v5815_v11  ;;  %v6591_v24 = vor.u32 %v5385_v57, %v4875_v39  ;;  %v6603_v39 = vor.u32 %v5347_v30, %v4723_v40  ;;  %v5309_v57 = vld [vmem:[#allocation2 + $0x594] sm:$0xf0]  ;;  %v5261_v40 = vld [vmem:[#allocation2 + $0x41c] sm:$0xf]  ;;  %v4493_v30 = vld [vmem:[#allocation2 + $0x4b0] sm:$0xf0] }
 0xa7f   :  { %8152 = vst [vmem:[#allocation186_spill] sm:$0xff] %v6585_v63  ;;  %v6609_v36 = vor.u32 %v5309_v57, %v4571_v43  ;;  %v6618_v47 = vor.u32 %v5261_v40, %v4493_v30  ;;  %v5223_v43 = vld [vmem:[#allocation2 + $0x2ec] sm:$0xf]  ;;  %v4341_v57 = vld [vmem:[#allocation2 + $0x380] sm:$0xf0] }
 0xa80   :  { %2622 = vmatpush.bf16.msrb.mxu0 %v6568_v44  ;;  %8153 = vst [vmem:[#allocation187_spill] sm:$0xff] %v6591_v24  ;;  %v5185_v40 = vld [vmem:[#allocation2 + $0x1bc] sm:$0xf]  ;;  %v4189_v30 = vld [vmem:[#allocation2 + $0x250] sm:$0xf0] }
 0xa81   :  { %2869 = vmatpush.bf16.msrb.mxu3 %v6572_v48  ;;  %8154 = vst [vmem:[#allocation188_spill] sm:$0xff] %v6596_v56  ;;  %v5271_v48 = vld [vmem:[#allocation2 + $0x464] sm:$0xf0]  ;;  %v4891_v44 = vld [vmem:[#allocation2 + $0x770] sm:$0xf] }
 0xa82   :  { %3137 = vmatpush.bf16.msrb.mxu2 %v5823_v13  ;;  %8155 = vst [vmem:[#allocation189_spill] sm:$0xff] %v6603_v39 }
 0xa83   :  { %8156 = vst [vmem:[#allocation190_spill] sm:$0xff] %v6606_v27 }
 0xa84   :  { %2623 = vmatpush.bf16.msrb.mxu0 %v6577_v35  ;;  %8157 = vst [vmem:[#allocation191_spill] sm:$0xff] %v6609_v36  ;;  %v5043_v35 = vld [vmem:[#allocation2 + $0x8a0] sm:$0xf] }
 0xa85   :  { %2870 = vmatpush.bf16.msrb.mxu3 %v6581_v33  ;;  %v4419_v33 = vld [vmem:[#allocation2 + $0x3d0] sm:$0xf]  ;;  %8160 = vst [vmem:[#allocation194_spill] sm:$0xff] %v6618_v47 }
 0xa86   :  { %3138 = vmatpush.bf16.msrb.mxu2 %v5831_v15  ;;  %v6615_v31 = vor.u32 %v5271_v48, %v4419_v33  ;;  %v7844_v48 = vperm.slane %v5790_v3, 6 }
 0xa87   :  { %2624 = vmatmul.bf16.vlgmr.msrb.gmra.mxu0 %v6031_v38 }
 0xa88   :  { %2668 = vmatpush.bf16.msra.mxu0 %v6583_v32  ;;  %2871 = vmatmul.bf16.vlgmr.msrb.gmra.mxu3 %v6031_v38  ;;  %8159 = vst [vmem:[#allocation193_spill] sm:$0xff] %v6615_v31  ;;  %v5147_v32 = vld [vmem:[#allocation2 + $0x8c] sm:$0xf] }
 0xa89   :  { %2915 = vmatpush.bf16.msra.mxu3 %v6585_v63  ;;  %v6612_v63 = vor.u32 %v5299_v41, %v4645_v49  ;;  %v6624_v49 = vor.u32 %v5223_v43, %v4341_v57 }
 0xa8a   :  { %3139 = vmatpush.bf16.msrb.mxu2 %v5837_v16  ;;  %v2664_v50 = vpop.f32.mrf.mxu3 }
 0xa8b   :  { %8158 = vst [vmem:[#allocation192_spill] sm:$0xff] %v6612_v63 }
 0xa8c   :  { %2669 = vmatpush.bf16.msra.mxu0 %v6591_v24  ;;  %8162 = vst [vmem:[#allocation196_spill] sm:$0xff] %v6624_v49  ;;  %v5157_v24 = vld [vmem:[#allocation2 + $0xd4] sm:$0xf0] }
 0xa8d   :  { %2916 = vmatpush.bf16.msra.mxu3 %v6596_v56  ;;  %v4267_v56 = vld [vmem:[#allocation2 + $0x2a0] sm:$0xf] }
 0xa8e   :  { %3140 = vmatpush.bf16.msrb.mxu2 %v5841_v17 }
 0xa90   :  { %2670 = vmatpush.bf16.msra.mxu0 %v6603_v39  ;;  %v5233_v39 = vld [vmem:[#allocation2 + $0x334] sm:$0xf0] }
 0xa91   :  { %2917 = vmatpush.bf16.msra.mxu3 %v6606_v27  ;;  %v6621_v41 = vor.u32 %v5233_v39, %v4267_v56  ;;  %v4115_v27 = vld [vmem:[#allocation2 + $0x170] sm:$0xf]  ;;  %v5358_v56 = vld [vmem:[#allocation2 + $0x724] sm:$0xf]  ;;  %v4813_v39 = vld [vmem:[#allocation2 + $0x7b8] sm:$0xf0] }
 0xa92   :  { %v6635_v57 = vor.u32 %v5358_v56, %v4813_v39  ;;  %v5282_v39 = vld [vmem:[#allocation2 + $0x4c4] sm:$0xf] }
 0xa93   :  { %8161 = vst [vmem:[#allocation195_spill] sm:$0xff] %v6621_v41 }
 0xa94   :  { %2671 = vmatpush.bf16.msra.mxu0 %v6609_v36  ;;  %v5195_v36 = vld [vmem:[#allocation2 + $0x204] sm:$0xf0]  ;;  %2474 = vmatpush.bf16.msra.mxu1 %v6635_v57 }
 0xa95   :  { %2918 = vmatpush.bf16.msra.mxu3 %v6612_v63  ;;  %v6628_v33 = vor.u32 %v5195_v36, %v4115_v27  ;;  %v2859_v63 = vpop.f32.mrf.mxu2  ;;  %v5320_v27 = vld [vmem:[#allocation2 + $0x5f4] sm:$0xf]  ;;  %v4661_v36 = vld [vmem:[#allocation2 + $0x688] sm:$0xf0] }
 0xa96   :  { %v2860_v43 = vadd.f32 %v2859_v63, %v7844_v48  ;;  %v4509_v48 = vld [vmem:[#allocation2 + $0x558] sm:$0xf0] }
 0xa97   :  { %8163 = vst [vmem:[#allocation197_spill] sm:$0xff] %v6628_v33 }
 0xa98   :  { %2672 = vmatpush.bf16.msra.mxu0 %v6615_v31  ;;  %v6631_v31 = vor.u32 %v5185_v40, %v4189_v30  ;;  %2984 = vst [vmem:[#allocation15 + $0xf0] sm:$0xff] %v2860_v43  ;;  %v6641_v30 = vor.u32 %v5320_v27, %v4661_v36  ;;  %v5387_v43 = vld [vmem:[#allocation2 + $0x804] sm:$0xf0]  ;;  %v4739_v27 = vld [vmem:[#allocation2 + $0x640] sm:$0xf] }
 0xa99   :  { %2919 = vmatpush.bf16.msra.mxu3 %v6618_v47  ;;  %v3963_v47 = vld [vmem:[#allocation2 + $0x40] sm:$0xf]  ;;  %v5349_v36 = vld [vmem:[#allocation2 + $0x6d4] sm:$0xf0] }
 0xa9a   :  { %8164 = vst [vmem:[#allocation198_spill] sm:$0xff] %v6631_v31  ;;  %v6639_v40 = vor.u32 %v5157_v24, %v3963_v47  ;;  %2475 = vmatpush.bf16.msra.mxu1 %v6641_v30  ;;  %v6651_v24 = vor.u32 %v5282_v39, %v4509_v48  ;;  %v4205_v39 = vld [vmem:[#allocation2 + $0x2f8] sm:$0xf0] }
 0xa9c   :  { %2673 = vmatpush.bf16.msra.mxu0 %v6621_v41  ;;  %v4037_v41 = vld [vmem:[#allocation2 + $0x120] sm:$0xf0]  ;;  %8165 = vst [vmem:[#allocation199_spill] sm:$0xff] %v6639_v40 }
 0xa9d   :  { %2920 = vmatpush.bf16.msra.mxu3 %v6624_v49  ;;  %v5425_v49 = vld [vmem:[#allocation2 + $0x934] sm:$0xf0]  ;;  %v6644_v63 = vor.u32 %v5147_v32, %v4037_v41  ;;  %v2861_v47 = vpop.f32.mrf.mxu2  ;;  %v5244_v41 = vld [vmem:[#allocation2 + $0x394] sm:$0xf] }
 0xa9e   :  { %v6646_v56 = vor.u32 %v5425_v49, %v5043_v35  ;;  %v6655_v35 = vor.u32 %v5387_v43, %v4891_v44  ;;  %v4357_v49 = vld [vmem:[#allocation2 + $0x428] sm:$0xf0]  ;;  %2476 = vmatpush.bf16.msra.mxu1 %v6651_v24  ;;  %v6666_v44 = vor.u32 %v5349_v36, %v4739_v27  ;;  %v4587_v43 = vld [vmem:[#allocation2 + $0x510] sm:$0xf]  ;;  %v5311_v47 = vld [vmem:[#allocation2 + $0x5a4] sm:$0xf0] }
 0xa9f   :  { %8166 = vst [vmem:[#allocation200_spill] sm:$0xff] %v6644_v63  ;;  %v6663_v48 = vor.u32 %v5244_v41, %v4357_v49  ;;  %v5168_v41 = vld [vmem:[#allocation2 + $0x134] sm:$0xf]  ;;  %v4053_v49 = vld [vmem:[#allocation2 + $0x1c8] sm:$0xf0] }
 0xaa0   :  { %2674 = vmatpush.bf16.msra.mxu0 %v6628_v33  ;;  %8167 = vst [vmem:[#allocation201_spill] sm:$0xff] %v6646_v56  ;;  %v7848_v33 = vperm.slane %v5786_v1, 7  ;;  %v4435_v27 = vld [vmem:[#allocation2 + $0x3e0] sm:$0xf]  ;;  %v5273_v36 = vld [vmem:[#allocation2 + $0x474] sm:$0xf0] }
 0xaa1   :  { %2921 = vmatpush.bf16.msra.mxu3 %v6631_v31  ;;  %8168 = vst [vmem:[#allocation202_spill] sm:$0xff] %v6655_v35  ;;  %v6677_v31 = vor.u32 %v5168_v41, %v4053_v49  ;;  %v5398_v41 = vld [vmem:[#allocation2 + $0x864] sm:$0xf]  ;;  %v4981_v49 = vld [vmem:[#allocation2 + $0x8f8] sm:$0xf0] }
 0xaa2   :  { %v2665_v32 = vadd.f32 %v2664_v50, %v7848_v33  ;;  %8169 = vst [vmem:[#allocation203_spill] sm:$0xff] %v6666_v44  ;;  %v5206_v50 = vld [vmem:[#allocation2 + $0x264] sm:$0xf]  ;;  %v2666_v33 = vpop.f32.mrf.mxu3  ;;  %2477 = vmatpush.bf16.msra.mxu1 %v6663_v48 }
 0xaa3   :  { %v6680_v33 = vor.u32 %v5273_v36, %v4435_v27  ;;  %v6691_v36 = vor.u32 %v5398_v41, %v4981_v49  ;;  %v3979_v41 = vld [vmem:[#allocation2 + $0x50] sm:$0xf]  ;;  %v5159_v49 = vld [vmem:[#allocation2 + $0xe4] sm:$0xf0] }
 0xaa4   :  { %2675 = vmatpush.bf16.msra.mxu0 %v6639_v40  ;;  %2969 = vst [vmem:[#allocation15 + $0x78] sm:$0xff] %v2665_v32  ;;  %v6670_v32 = vor.u32 %v5206_v50, %v4205_v39  ;;  %v5130_v50 = vld [vmem:[#allocation2 + $0x4] sm:$0xf]  ;;  %v3901_v39 = vld [vmem:[#allocation2 + $0x98] sm:$0xf0] }
 0xaa5   :  { %2922 = vmatpush.bf16.msra.mxu3 %v6644_v63  ;;  %v6673_v63 = vor.u32 %v5311_v47, %v4587_v43  ;;  %8171 = vst [vmem:[#allocation205_spill] sm:$0xff] %v6680_v33  ;;  %v4283_v43 = vld [vmem:[#allocation2 + $0x2b0] sm:$0xf]  ;;  %v6686_v47 = vor.u32 %v5130_v50, %v3901_v39  ;;  %v5360_v39 = vld [vmem:[#allocation2 + $0x734] sm:$0xf] }
 0xaa6   :  { %2478 = vmatpush.bf16.msra.mxu1 %v6670_v32  ;;  %8173 = vst [vmem:[#allocation207_spill] sm:$0xff] %v6691_v36  ;;  %v4829_v40 = vld [vmem:[#allocation2 + $0x7c8] sm:$0xf0] }
 0xaa7   :  { %2676 = vmatmul.bf16.vlgmr.msra.gmra.mxu0 %v6031_v38  ;;  %8170 = vst [vmem:[#allocation204_spill] sm:$0xff] %v6673_v63 }
 0xaa8   :  { %2720 = vmatpush.bf16.msrb.mxu0 %v6646_v56  ;;  %2923 = vmatmul.bf16.vlgmr.msra.gmra.mxu3 %v6031_v38 }
 0xaa9   :  { %3009 = vmatpush.bf16.msrb.mxu3 %v5800_v7 }
 0xaaa   :  { %2479 = vmatpush.bf16.msra.mxu1 %v6677_v31 }
 0xaac   :  { %2721 = vmatpush.bf16.msrb.mxu0 %v6655_v35  ;;  %v5197_v35 = vld [vmem:[#allocation2 + $0x214] sm:$0xf0] }
 0xaad   :  { %3010 = vmatpush.bf16.msrb.mxu3 %v5803_v8 }
 0xaae   :  { %2480 = vmatpush.bf16.msra.mxu1 %v6686_v47 }
 0xab0   :  { %2722 = vmatpush.bf16.msrb.mxu0 %v6666_v44  ;;  %v5235_v44 = vld [vmem:[#allocation2 + $0x344] sm:$0xf0] }
 0xab1   :  { %3011 = vmatpush.bf16.msrb.mxu3 %v5811_v10  ;;  %v6689_v27 = vor.u32 %v5235_v44, %v4283_v43  ;;  %v6701_v43 = vor.u32 %v5360_v39, %v4829_v40  ;;  %2481 = vmatmul.bf16.vlgmr.msra.gmra.mxu1 %v6031_v38  ;;  %v5427_v40 = vld [vmem:[#allocation2 + $0x944] sm:$0xf0]  ;;  %v7867_v39 = vperm.slane %v5784_v0, 0 }
 0xab2   :  { %2525 = vmatpush.bf16.msrb.mxu1 %v6691_v36  ;;  %v5059_v36 = vld [vmem:[#allocation2 + $0x8b0] sm:$0xf] }
 0xab3   :  { %8172 = vst [vmem:[#allocation206_spill] sm:$0xff] %v6689_v27 }
 0xab4   :  { %2723 = vmatpush.bf16.msrb.mxu0 %v6673_v63  ;;  %v7860_v63 = vperm.slane %v5792_v4, 2  ;;  %v2911_v56 = vpop.f32.mrf.mxu2  ;;  %8175 = vst [vmem:[#allocation209_spill] sm:$0xff] %v6701_v43 }
 0xab5   :  { %3012 = vmatpush.bf16.msrb.mxu3 %v5819_v12 }
 0xab6   :  { %v2912_v44 = vadd.f32 %v2911_v56, %v7860_v63  ;;  %2526 = vmatpush.bf16.msrb.mxu1 %v6701_v43  ;;  %v6711_v56 = vor.u32 %v5427_v40, %v5059_v36  ;;  %v7870_v40 = vperm.slane %v5788_v2, 3  ;;  %v4373_v43 = vld [vmem:[#allocation2 + $0x438] sm:$0xf0] }
 0xab8   :  { %2724 = vmatpush.bf16.msrb.mxu0 %v6680_v33  ;;  %v4131_v33 = vld [vmem:[#allocation2 + $0x180] sm:$0xf]  ;;  %2988 = vst [vmem:[#allocation15 + $0x110] sm:$0xff] %v2912_v44  ;;  %v2469_v44 = vpop.f32.mrf.mxu0 }
 0xab9   :  { %3013 = vmatpush.bf16.msrb.mxu3 %v5827_v14  ;;  %v6697_v50 = vor.u32 %v5197_v35, %v4131_v33  ;;  %v6707_v35 = vor.u32 %v5159_v49, %v3979_v41  ;;  %v5322_v33 = vld [vmem:[#allocation2 + $0x604] sm:$0xf]  ;;  %8178 = vst [vmem:[#allocation212_spill] sm:$0xff] %v6711_v56  ;;  %v5284_v41 = vld [vmem:[#allocation2 + $0x4d4] sm:$0xf] }
 0xaba   :  { %v4525_v49 = vld [vmem:[#allocation2 + $0x568] sm:$0xf0] }
 0xabb   :  { %8174 = vst [vmem:[#allocation208_spill] sm:$0xff] %v6697_v50  ;;  %v6720_v36 = vor.u32 %v5284_v41, %v4525_v49 }
 0xabc   :  { %2725 = vmatpush.bf16.msrb.mxu0 %v6689_v27  ;;  %8176 = vst [vmem:[#allocation210_spill] sm:$0xff] %v6707_v35  ;;  %v4677_v27 = vld [vmem:[#allocation2 + $0x698] sm:$0xf0]  ;;  %v2913_v63 = vpop.f32.mrf.mxu2 }
 0xabd   :  { %3014 = vmatpush.bf16.msrb.mxu3 %v5870_v20  ;;  %v6709_v19 = vor.u32 %v5322_v33, %v4677_v27  ;;  %v2470_v27 = vadd.f32 %v2469_v44, %v7867_v39  ;;  %8179 = vst [vmem:[#allocation213_spill] sm:$0xff] %v6720_v36  ;;  %v5389_v33 = vld [vmem:[#allocation2 + $0x814] sm:$0xf0]  ;;  %v5208_v39 = vld [vmem:[#allocation2 + $0x274] sm:$0xf] }
 0xabf   :  { %8177 = vst [vmem:[#allocation211_spill] sm:$0xff] %v6709_v19  ;;  %2527 = vmatpush.bf16.msrb.mxu1 %v6709_v19  ;;  %v5246_v19 = vld [vmem:[#allocation2 + $0x3a4] sm:$0xf] }
 0xac0   :  { %2726 = vmatpush.bf16.msrb.mxu0 %v6697_v50  ;;  %v4907_v50 = vld [vmem:[#allocation2 + $0x780] sm:$0xf]  ;;  %2954 = vst [vmem:[#allocation15] sm:$0xff] %v2470_v27  ;;  %v6730_v41 = vor.u32 %v5246_v19, %v4373_v43  ;;  %v2471_v27 = vpop.f32.mrf.mxu0  ;;  %v5170_v43 = vld [vmem:[#allocation2 + $0x144] sm:$0xf] }
 0xac1   :  { %3015 = vmatpush.bf16.msrb.mxu3 %v5874_v21  ;;  %v6724_v63 = vor.u32 %v5389_v33, %v4907_v50  ;;  %v4221_v50 = vld [vmem:[#allocation2 + $0x308] sm:$0xf0]  ;;  %v4603_v33 = vld [vmem:[#allocation2 + $0x520] sm:$0xf]  ;;  %v5237_v27 = vld [vmem:[#allocation2 + $0x354] sm:$0xf0] }
 0xac2   :  { %8181 = vst [vmem:[#allocation215_spill] sm:$0xff] %v6730_v41  ;;  %v6740_v19 = vor.u32 %v5313_v34, %v4603_v33  ;;  %v3917_v34 = vld [vmem:[#allocation2 + $0xa8] sm:$0xf0]  ;;  %v4299_v33 = vld [vmem:[#allocation2 + $0x2c0] sm:$0xf] }
 0xac3   :  { %8180 = vst [vmem:[#allocation214_spill] sm:$0xff] %v6724_v63  ;;  %2528 = vmatpush.bf16.msrb.mxu1 %v6720_v36  ;;  %v6737_v36 = vor.u32 %v5208_v39, %v4221_v50  ;;  %v5132_v50 = vld [vmem:[#allocation2 + $0x14] sm:$0xf] }
 0xac4   :  { %2727 = vmatpush.bf16.msrb.mxu0 %v6707_v35  ;;  %v2716_v35 = vpop.f32.mrf.mxu3  ;;  %8184 = vst [vmem:[#allocation218_spill] sm:$0xff] %v6740_v19 }
 0xac5   :  { %3016 = vmatpush.bf16.msrb.mxu3 %v5878_v22  ;;  %v2717_v44 = vadd.f32 %v2716_v35, %v7870_v40  ;;  %8183 = vst [vmem:[#allocation217_spill] sm:$0xff] %v6737_v36  ;;  %v4069_v35 = vld [vmem:[#allocation2 + $0x1d8] sm:$0xf0]  ;;  %v5275_v40 = vld [vmem:[#allocation2 + $0x484] sm:$0xf0] }
 0xac7   :  { %2728 = vmatmul.bf16.vlgmr.msrb.gmra.mxu0 %v6031_v38  ;;  %2973 = vst [vmem:[#allocation15 + $0x98] sm:$0xff] %v2717_v44  ;;  %2529 = vmatpush.bf16.msrb.mxu1 %v6730_v41  ;;  %v6744_v44 = vor.u32 %v5170_v43, %v4069_v35  ;;  %v6752_v41 = vor.u32 %v5132_v50, %v3917_v34  ;;  %v7879_v35 = vperm.slane %v5788_v2, 7 }
 0xac8   :  { %2772 = vmatpush.bf16.msra.mxu0 %v6711_v56  ;;  %v5351_v56 = vld [vmem:[#allocation2 + $0x6e4] sm:$0xf0]  ;;  %v2521_v43 = vpop.f32.mrf.mxu0 }
 0xac9   :  { %3079 = vmatpush.bf16.msra.mxu3 %v5800_v7  ;;  %v6733_v49 = vor.u32 %v5351_v56, %v4755_v62  ;;  %v4451_v56 = vld [vmem:[#allocation2 + $0x3f0] sm:$0xf]  ;;  %8185 = vst [vmem:[#allocation219_spill] sm:$0xff] %v6744_v44 }
 0xaca   :  { %v6748_v39 = vor.u32 %v5275_v40, %v4451_v56  ;;  %8187 = vst [vmem:[#allocation221_spill] sm:$0xff] %v6752_v41  ;;  %v4147_v56 = vld [vmem:[#allocation2 + $0x190] sm:$0xf] }
 0xacb   :  { %8182 = vst [vmem:[#allocation216_spill] sm:$0xff] %v6733_v49  ;;  %2530 = vmatpush.bf16.msrb.mxu1 %v6737_v36 }
 0xacc   :  { %2773 = vmatpush.bf16.msra.mxu0 %v6724_v63  ;;  %v2718_v62 = vpop.f32.mrf.mxu3  ;;  %8186 = vst [vmem:[#allocation220_spill] sm:$0xff] %v6748_v39  ;;  %v6756_v63 = vor.u32 %v5237_v27, %v4299_v33  ;;  %v6770_v33 = vor.u32 %v5362_v25, %v4845_v18  ;;  %v5161_v27 = vld [vmem:[#allocation2 + $0xf4] sm:$0xf0] }
 0xacd   :  { %3080 = vmatpush.bf16.msra.mxu3 %v5803_v8  ;;  %v4997_v62 = vld [vmem:[#allocation2 + $0x908] sm:$0xf0] }
 0xace   :  { %8188 = vst [vmem:[#allocation222_spill] sm:$0xff] %v6756_v63 }
 0xacf   :  { %2531 = vmatpush.bf16.msrb.mxu1 %v6744_v44  ;;  %8192 = vst [vmem:[#allocation225_spill] sm:$0xff] %v6770_v33 }
 0xad0   :  { %2774 = vmatpush.bf16.msra.mxu0 %v6733_v49  ;;  %v5400_v49 = vld [vmem:[#allocation2 + $0x874] sm:$0xf] }
 0xad1   :  { %3081 = vmatpush.bf16.msra.mxu3 %v5811_v10  ;;  %v6758_v40 = vor.u32 %v5400_v49, %v4997_v62  ;;  %v6768_v49 = vor.u32 %v5199_v28, %v4147_v56  ;;  %v2523_v28 = vpop.f32.mrf.mxu0 }
 0xad3   :  { %8189 = vst [vmem:[#allocation223_spill] sm:$0xff] %v6758_v40  ;;  %2532 = vmatpush.bf16.msrb.mxu1 %v6752_v41  ;;  %v5391_v41 = vld [vmem:[#allocation2 + $0x824] sm:$0xf0] }
 0xad4   :  { %2775 = vmatpush.bf16.msra.mxu0 %v6740_v19  ;;  %v8190_v19 = vperm.slane %v5784_v0, 4  ;;  %v2768_v50 = vpop.f32.mrf.mxu3  ;;  %8191 = vst [vmem:[#allocation224_spill] sm:$0xff] %v6768_v49  ;;  %v6772_v62 = vpop.f32.mrf.mxu2 }
 0xad5   :  { %3082 = vmatpush.bf16.msra.mxu3 %v5819_v12  ;;  %v2769_v34 = vadd.f32 %v2768_v50, %v7879_v35  ;;  %v3006_v50 = vadd.f32 %v6772_v62, %v5892_v23  ;;  %v5075_v35 = vld [vmem:[#allocation2 + $0x8c0] sm:$0xf] }
 0xad6   :  { %v2522_v36 = vadd.f32 %v2521_v43, %v8190_v19  ;;  %v3995_v19 = vld [vmem:[#allocation2 + $0x60] sm:$0xf]  ;;  %v5324_v43 = vld [vmem:[#allocation2 + $0x614] sm:$0xf]  ;;  %2533 = vmatmul.bf16.vlgmr.msrb.gmra.mxu1 %v6031_v38 }
 0xad7   :  { %2577 = vmatpush.bf16.msra.mxu1 %v6758_v40  ;;  %2977 = vst [vmem:[#allocation15 + $0xb8] sm:$0xff] %v2769_v34  ;;  %5478 = vtanh.f32 %v3006_v50  ;;  %v6780_v18 = vor.u32 %v5161_v27, %v3995_v19  ;;  %v5286_v34 = vld [vmem:[#allocation2 + $0x4e4] sm:$0xf]  ;;  %v4923_v40 = vld [vmem:[#allocation2 + $0x790] sm:$0xf] }
 0xad8   :  { %2776 = vmatpush.bf16.msra.mxu0 %v6748_v39  ;;  %2958 = vst [vmem:[#allocation15 + $0x20] sm:$0xff] %v2522_v36  ;;  %v4693_v36 = vld [vmem:[#allocation2 + $0x6a8] sm:$0xf0]  ;;  %v4541_v39 = vld [vmem:[#allocation2 + $0x578] sm:$0xf0]  ;;  %v6792_v19 = vor.u32 %v5391_v41, %v4923_v40 }
 0xad9   :  { %3083 = vmatpush.bf16.msra.mxu3 %v5827_v14  ;;  %8193 = vst [vmem:[#allocation226_spill] sm:$0xff] %v6780_v18  ;;  %v6782_v25 = vor.u32 %v5324_v43, %v4693_v36  ;;  %v6789_v50 = vor.u32 %v5286_v34, %v4541_v39  ;;  %v4771_v43 = vld [vmem:[#allocation2 + $0x660] sm:$0xf]  ;;  %v5353_v36 = vld [vmem:[#allocation2 + $0x6f4] sm:$0xf0] }
 0xada   :  { %8197 = vst [vmem:[#allocation230_spill] sm:$0xff] %v6792_v19  ;;  %v6800_v39 = vor.u32 %v5353_v36, %v4771_v43  ;;  %v5210_v41 = vld [vmem:[#allocation2 + $0x284] sm:$0xf]  ;;  %v4237_v40 = vld [vmem:[#allocation2 + $0x318] sm:$0xf0] }
 0xadb   :  { %2578 = vmatpush.bf16.msra.mxu1 %v6770_v33  ;;  %8194 = vst [vmem:[#allocation227_spill] sm:$0xff] %v6782_v25  ;;  %v4619_v34 = vld [vmem:[#allocation2 + $0x530] sm:$0xf]  ;;  %v4467_v43 = vld [vmem:[#allocation2 + $0x400] sm:$0xf] }
 0xadc   :  { %2777 = vmatpush.bf16.msra.mxu0 %v6756_v63  ;;  %v5429_v63 = vld [vmem:[#allocation2 + $0x954] sm:$0xf0]  ;;  %v2770_v44 = vpop.f32.mrf.mxu3  ;;  %8196 = vst [vmem:[#allocation229_spill] sm:$0xff] %v6789_v50  ;;  %v3004_v28 = vpop.f32.mrf.mxu2 }
 0xadd   :  { %3084 = vmatpush.bf16.msra.mxu3 %v5870_v20  ;;  %v6784_v56 = vor.u32 %v5429_v63, %v5075_v35  ;;  %v5248_v63 = vld [vmem:[#allocation2 + $0x3b4] sm:$0xf]  ;;  %v4389_v35 = vld [vmem:[#allocation2 + $0x448] sm:$0xf0]  ;;  %v5479_v27 = vpop.eup %5478  ;;  %8199 = vst [vmem:[#allocation232_spill] sm:$0xff] %v6800_v39 }
 0xade   :  { %v6797_v44 = vor.u32 %v5248_v63, %v4389_v35  ;;  %v5315_v28 = vld [vmem:[#allocation2 + $0x5c4] sm:$0xf0]  ;;  %v5172_v63 = vld [vmem:[#allocation2 + $0x154] sm:$0xf]  ;;  %v7894_v35 = vperm.slane %v5786_v1, 0 }
 0xadf   :  { %8195 = vst [vmem:[#allocation228_spill] sm:$0xff] %v6784_v56  ;;  %2579 = vmatpush.bf16.msra.mxu1 %v6782_v25  ;;  %v5277_v36 = vld [vmem:[#allocation2 + $0x494] sm:$0xf0]  ;;  %v5013_v25 = vld [vmem:[#allocation2 + $0x918] sm:$0xf0] }
 0xae0   :  { %2778 = vmatpush.bf16.msra.mxu0 %v6768_v49  ;;  %v3008_v49 = vpack.c.bf16 %v5479_v27, %v5479_v27  ;;  %8198 = vst [vmem:[#allocation231_spill] sm:$0xff] %v6797_v44  ;;  %v6804_v27 = vor.u32 %v5210_v41, %v4237_v40  ;;  %v6815_v41 = vor.u32 %v5277_v36, %v4467_v43  ;;  %v5134_v40 = vld [vmem:[#allocation2 + $0x24] sm:$0xf] }
 0xae1   :  { %3085 = vmatpush.bf16.msra.mxu3 %v5874_v21 }
 0xae2   :  { %3017 = vmatmul.bf16.vlgmr.msrb.gmra.mxu3 %v3008_v49  ;;  %8200 = vst [vmem:[#allocation233_spill] sm:$0xff] %v6804_v27  ;;  %v4085_v49 = vld [vmem:[#allocation2 + $0x1e8] sm:$0xf0] }
 0xae3   :  { %2580 = vmatpush.bf16.msra.mxu1 %v6789_v50  ;;  %8203 = vst [vmem:[#allocation236_spill] sm:$0xff] %v6815_v41  ;;  %v5402_v50 = vld [vmem:[#allocation2 + $0x884] sm:$0xf] }
 0xae4   :  { %2779 = vmatpush.bf16.msra.mxu0 %v6780_v18  ;;  %v2573_v18 = vpop.f32.mrf.mxu0  ;;  %v6827_v36 = vor.u32 %v5402_v50, %v5013_v25  ;;  %v4011_v50 = vld [vmem:[#allocation2 + $0x70] sm:$0xf] }
 0xae5   :  { %3086 = vmatpush.bf16.msra.mxu3 %v5878_v22 }
 0xae6   :  { %8206 = vst [vmem:[#allocation239_spill] sm:$0xff] %v6827_v36 }
 0xae7   :  { %2780 = vmatmul.bf16.vlgmr.msra.gmra.mxu0 %v6031_v38  ;;  %2581 = vmatpush.bf16.msra.mxu1 %v6797_v44  ;;  %v5239_v44 = vld [vmem:[#allocation2 + $0x364] sm:$0xf0] }
 0xae8   :  { %2824 = vmatpush.bf16.msrb.mxu0 %v6784_v56  ;;  %v6807_v56 = vor.u32 %v5315_v28, %v4619_v34  ;;  %v3933_v34 = vld [vmem:[#allocation2 + $0xb8] sm:$0xf0]  ;;  %v4315_v28 = vld [vmem:[#allocation2 + $0x2d0] sm:$0xf] }
 0xae9   :  { %3149 = vmatpush.bf16.msrb.mxu3 %v5800_v7  ;;  %v6825_v43 = vor.u32 %v5239_v44, %v4315_v28  ;;  %v5326_v28 = vld [vmem:[#allocation2 + $0x624] sm:$0xf] }
 0xaea   :  { %8201 = vst [vmem:[#allocation234_spill] sm:$0xff] %v6807_v56 }
 0xaeb   :  { %2582 = vmatpush.bf16.msra.mxu1 %v6804_v27  ;;  %8205 = vst [vmem:[#allocation238_spill] sm:$0xff] %v6825_v43  ;;  %v4861_v27 = vld [vmem:[#allocation2 + $0x7e8] sm:$0xf0]  ;;  %v2820_v33 = vpop.f32.mrf.mxu3 }
 0xaec   :  { %2825 = vmatpush.bf16.msrb.mxu0 %v6792_v19  ;;  %v6812_v19 = vor.u32 %v5172_v63, %v4085_v49  ;;  %v6821_v63 = vor.u32 %v5134_v40, %v3933_v34  ;;  %v7900_v49 = vperm.slane %v5790_v3, 3  ;;  %v2575_v40 = vpop.f32.mrf.mxu0  ;;  %v5163_v34 = vld [vmem:[#allocation2 + $0x104] sm:$0xf0] }
 0xaed   :  { %3150 = vmatpush.bf16.msrb.mxu3 %v5803_v8  ;;  %v5393_v40 = vld [vmem:[#allocation2 + $0x834] sm:$0xf0] }
 0xaee   :  { %8202 = vst [vmem:[#allocation235_spill] sm:$0xff] %v6812_v19 }
 0xaef   :  { %2583 = vmatpush.bf16.msra.mxu1 %v6812_v19  ;;  %8204 = vst [vmem:[#allocation237_spill] sm:$0xff] %v6821_v63  ;;  %v5431_v19 = vld [vmem:[#allocation2 + $0x964] sm:$0xf0] }
 0xaf0   :  { %2826 = vmatpush.bf16.msrb.mxu0 %v6800_v39  ;;  %v2574_v39 = vadd.f32 %v2573_v18, %v7894_v35  ;;  %v5201_v18 = vld [vmem:[#allocation2 + $0x234] sm:$0xf0]  ;;  %v5364_v35 = vld [vmem:[#allocation2 + $0x754] sm:$0xf] }
 0xaf1   :  { %3151 = vmatpush.bf16.msrb.mxu3 %v5811_v10  ;;  %v6837_v25 = vor.u32 %v5364_v35, %v4861_v27  ;;  %v5288_v35 = vld [vmem:[#allocation2 + $0x4f4] sm:$0xf] }
 0xaf2   :  { %2962 = vst [vmem:[#allocation15 + $0x40] sm:$0xff] %v2574_v39  ;;  %v2821_v39 = vadd.f32 %v2820_v33, %v7900_v49  ;;  %v6843_v33 = vor.u32 %v5163_v34, %v4011_v50  ;;  %v5355_v34 = vld [vmem:[#allocation2 + $0x704] sm:$0xf0] }
 0xaf3   :  { %2584 = vmatpush.bf16.msra.mxu1 %v6821_v63  ;;  %8208 = vst [vmem:[#allocation241_spill] sm:$0xff] %v6837_v25  ;;  %v5091_v63 = vld [vmem:[#allocation2 + $0x8d0] sm:$0xf]  ;;  %v2822_v49 = vpop.f32.mrf.mxu3 }
 0xaf4   :  { %2827 = vmatpush.bf16.msrb.mxu0 %v6807_v56  ;;  %v4163_v56 = vld [vmem:[#allocation2 + $0x1a0] sm:$0xf]  ;;  %2981 = vst [vmem:[#allocation15 + $0xd8] sm:$0xff] %v2821_v39  ;;  %v6847_v27 = vor.u32 %v5431_v19, %v5091_v63  ;;  %v4405_v19 = vld [vmem:[#allocation2 + $0x458] sm:$0xf0] }
 0xaf5   :  { %3152 = vmatpush.bf16.msrb.mxu3 %v5819_v12  ;;  %v6835_v44 = vor.u32 %v5201_v18, %v4163_v56  ;;  %8209 = vst [vmem:[#allocation242_spill] sm:$0xff] %v6843_v33  ;;  %v4557_v18 = vld [vmem:[#allocation2 + $0x588] sm:$0xf0]  ;;  %v4939_v39 = vld [vmem:[#allocation2 + $0x7a0] sm:$0xf] }
 0xaf6   :  { %2585 = vmatmul.bf16.vlgmr.msra.gmra.mxu1 %v6031_v38  ;;  %8211 = vst [vmem:[#allocation244_spill] sm:$0xff] %v6847_v27  ;;  %v6855_v50 = vor.u32 %v5393_v40, %v4939_v39  ;;  %v4787_v63 = vld [vmem:[#allocation2 + $0x670] sm:$0xf]  ;;  %v4635_v39 = vld [vmem:[#allocation2 + $0x540] sm:$0xf] }
 0xaf7   :  { %2629 = vmatpush.bf16.msrb.mxu1 %v6827_v36  ;;  %8207 = vst [vmem:[#allocation240_spill] sm:$0xff] %v6835_v44  ;;  %v5317_v40 = vld [vmem:[#allocation2 + $0x5d4] sm:$0xf0]  ;;  %v5366_v36 = vld [vmem:[#allocation2 + $0x764] sm:$0xf] }
 0xaf8   :  { %2828 = vmatpush.bf16.msrb.mxu0 %v6815_v41  ;;  %v4709_v41 = vld [vmem:[#allocation2 + $0x6b8] sm:$0xf0]  ;;  %8213 = vst [vmem:[#allocation246_spill] sm:$0xff] %v6855_v50 }
 0xaf9   :  { %3153 = vmatpush.bf16.msrb.mxu3 %v5827_v14  ;;  %v6845_v56 = vor.u32 %v5326_v28, %v4709_v41  ;;  %v5250_v41 = vld [vmem:[#allocation2 + $0x3c4] sm:$0xf]  ;;  %v6863_v28 = vor.u32 %v5355_v34, %v4787_v63  ;;  %v4483_v63 = vld [vmem:[#allocation2 + $0x410] sm:$0xf]  ;;  %v5279_v34 = vld [vmem:[#allocation2 + $0x4a4] sm:$0xf0] }
 0xafa   :  { %v6860_v49 = vor.u32 %v5250_v41, %v4405_v19  ;;  %v5174_v41 = vld [vmem:[#allocation2 + $0x164] sm:$0xf]  ;;  %v4101_v19 = vld [vmem:[#allocation2 + $0x1f8] sm:$0xf0] }
 0xafb   :  { %2630 = vmatpush.bf16.msrb.mxu1 %v6837_v25  ;;  %8210 = vst [vmem:[#allocation243_spill] sm:$0xff] %v6845_v56  ;;  %v5029_v25 = vld [vmem:[#allocation2 + $0x928] sm:$0xf0] }
 0xafc   :  { %2829 = vmatpush.bf16.msrb.mxu0 %v6825_v43  ;;  %8214 = vst [vmem:[#allocation247_spill] sm:$0xff] %v6860_v49  ;;  %v6874_v43 = vor.u32 %v5174_v41, %v4101_v19  ;;  %v7918_v41 = vperm.slane %v5790_v3, 7 }
 0xafd   :  { %3154 = vmatpush.bf16.msrb.mxu3 %v5870_v20  ;;  %8215 = vst [vmem:[#allocation248_spill] sm:$0xff] %v6863_v28 }
 0xafe   :  { %8218 = vst [vmem:[#allocation251_spill] sm:$0xff] %v6874_v43 }
 0xaff   :  { %2631 = vmatpush.bf16.msrb.mxu1 %v6845_v56  ;;  %v5404_v56 = vld [vmem:[#allocation2 + $0x894] sm:$0xf] }
 0xb00   :  { %2830 = vmatpush.bf16.msrb.mxu0 %v6835_v44  ;;  %v6852_v44 = vor.u32 %v5288_v35, %v4557_v18  ;;  %v5212_v35 = vld [vmem:[#allocation2 + $0x294] sm:$0xf]  ;;  %v4253_v18 = vld [vmem:[#allocation2 + $0x328] sm:$0xf0] }
 0xb01   :  { %3155 = vmatpush.bf16.msrb.mxu3 %v5874_v21 }
 0xb02   :  { %8212 = vst [vmem:[#allocation245_spill] sm:$0xff] %v6852_v44 }
 0xb03   :  { %2632 = vmatpush.bf16.msrb.mxu1 %v6852_v44 }
 0xb04   :  { %2831 = vmatpush.bf16.msrb.mxu0 %v6843_v33  ;;  %v6870_v33 = vor.u32 %v5317_v40, %v4635_v39  ;;  %v2625_v44 = vpop.f32.mrf.mxu0  ;;  %v5241_v40 = vld [vmem:[#allocation2 + $0x374] sm:$0xf0] }
 0xb05   :  { %3156 = vmatpush.bf16.msrb.mxu3 %v5878_v22 }
 0xb06   :  { %8217 = vst [vmem:[#allocation250_spill] sm:$0xff] %v6870_v33 }
 0xb07   :  { %2832 = vmatmul.bf16.vlgmr.msrb.gmra.mxu0 %v6031_v38  ;;  %2633 = vmatpush.bf16.msrb.mxu1 %v6860_v49  ;;  %v6877_v49 = vor.u32 %v5279_v34, %v4483_v63  ;;  %v6888_v63 = vor.u32 %v5404_v56, %v5029_v25  ;;  %v4179_v34 = vld [vmem:[#allocation2 + $0x1b0] sm:$0xf]  ;;  %v4027_v25 = vld [vmem:[#allocation2 + $0x80] sm:$0xf]  ;;  %v5165_v56 = vld [vmem:[#allocation2 + $0x114] sm:$0xf0] }
 0xb08   :  { %2876 = vmatpush.bf16.msra.mxu0 %v6847_v27  ;;  %v6867_v27 = vor.u32 %v5212_v35, %v4253_v18  ;;  %v5136_v35 = vld [vmem:[#allocation2 + $0x34] sm:$0xf]  ;;  %v3949_v18 = vld [vmem:[#allocation2 + $0xc8] sm:$0xf0] }
 0xb09   :  { %8219 = vst [vmem:[#allocation252_spill] sm:$0xff] %v6877_v49 }
 0xb0a   :  { %8216 = vst [vmem:[#allocation249_spill] sm:$0xff] %v6867_v27 }
 0xb0b   :  { %2634 = vmatpush.bf16.msrb.mxu1 %v6867_v27  ;;  %v6882_v27 = vor.u32 %v5136_v35, %v3949_v18  ;;  %8221 = vst [vmem:[#allocation254_spill] sm:$0xff] %v6888_v63 }
 0xb0c   :  { %2877 = vmatpush.bf16.msra.mxu0 %v6855_v50  ;;  %v7914_v50 = vperm.slane %v5786_v1, 4  ;;  %v2627_v35 = vpop.f32.mrf.mxu0 }
 0xb0e   :  { %v2626_v39 = vadd.f32 %v2625_v44, %v7914_v50  ;;  %v4877_v44 = vld [vmem:[#allocation2 + $0x7f8] sm:$0xf0]  ;;  %v2872_v50 = vpop.f32.mrf.mxu3 }
 0xb0f   :  { %2635 = vmatpush.bf16.msrb.mxu1 %v6874_v43  ;;  %v5107_v43 = vld [vmem:[#allocation2 + $0x8e0] sm:$0xf] }
 0xb10   :  { %2878 = vmatpush.bf16.msra.mxu0 %v6863_v28  ;;  %v4331_v28 = vld [vmem:[#allocation2 + $0x2e0] sm:$0xf]  ;;  %2966 = vst [vmem:[#allocation15 + $0x60] sm:$0xff] %v2626_v39  ;;  %v2873_v39 = vadd.f32 %v2872_v50, %v7918_v41  ;;  %v6902_v50 = vor.u32 %v5165_v56, %v4027_v25  ;;  %v5395_v41 = vld [vmem:[#allocation2 + $0x844] sm:$0xf0] }
 0xb11   :  { %v6886_v19 = vor.u32 %v5241_v40, %v4331_v28  ;;  %v6897_v28 = vor.u32 %v5366_v36, %v4877_v44  ;;  %v5328_v40 = vld [vmem:[#allocation2 + $0x634] sm:$0xf]  ;;  %v5290_v36 = vld [vmem:[#allocation2 + $0x504] sm:$0xf]  ;;  %v4955_v44 = vld [vmem:[#allocation2 + $0x7b0] sm:$0xf] }
 0xb12   :  { %2985 = vst [vmem:[#allocation15 + $0xf8] sm:$0xff] %v2873_v39  ;;  %v5252_v25 = vld [vmem:[#allocation2 + $0x3d4] sm:$0xf]  ;;  %v4803_v56 = vld [vmem:[#allocation2 + $0x680] sm:$0xf] }
 0xb13   :  { %8220 = vst [vmem:[#allocation253_spill] sm:$0xff] %v6886_v19  ;;  %2636 = vmatpush.bf16.msrb.mxu1 %v6882_v27 }
 0xb14   :  { %2879 = vmatpush.bf16.msra.mxu0 %v6870_v33  ;;  %v5203_v33 = vld [vmem:[#allocation2 + $0x244] sm:$0xf0]  ;;  %8223 = vst [vmem:[#allocation256_spill] sm:$0xff] %v6897_v28 }
 0xb15   :  { %v6895_v18 = vor.u32 %v5203_v33, %v4179_v34  ;;  %8224 = vst [vmem:[#allocation257_spill] sm:$0xff] %v6902_v50  ;;  %v6906_v33 = vor.u32 %v5433_v61, %v5107_v43  ;;  %v4573_v34 = vld [vmem:[#allocation2 + $0x598] sm:$0xf0]  ;;  %v5357_v61 = vld [vmem:[#allocation2 + $0x714] sm:$0xf0] }
 0xb16   :  { %2637 = vmatmul.bf16.vlgmr.msrb.gmra.mxu1 %v6031_v38  ;;  %v6910_v39 = vor.u32 %v5290_v36, %v4573_v34  ;;  %v4269_v36 = vld [vmem:[#allocation2 + $0x338] sm:$0xf0]  ;;  %v4651_v34 = vld [vmem:[#allocation2 + $0x550] sm:$0xf] }
 0xb17   :  { %2681 = vmatpush.bf16.msra.mxu1 %v6888_v63  ;;  %8222 = vst [vmem:[#allocation255_spill] sm:$0xff] %v6895_v18  ;;  %v5368_v63 = vld [vmem:[#allocation2 + $0x774] sm:$0xf] }
 0xb18   :  { %2880 = vmatpush.bf16.msra.mxu0 %v6877_v49  ;;  %v4725_v49 = vld [vmem:[#allocation2 + $0x6c8] sm:$0xf0]  ;;  %8226 = vst [vmem:[#allocation259_spill] sm:$0xff] %v6906_v33 }
 0xb19   :  { %v6904_v35 = vor.u32 %v5328_v40, %v4725_v49  ;;  %8227 = vst [vmem:[#allocation260_spill] sm:$0xff] %v6910_v39  ;;  %v4421_v49 = vld [vmem:[#allocation2 + $0x468] sm:$0xf0]  ;;  %v5214_v40 = vld [vmem:[#allocation2 + $0x2a4] sm:$0xf] }
 0xb1a   :  { %v6917_v43 = vor.u32 %v5252_v25, %v4421_v49  ;;  %v7932_v25 = vperm.slane %v5788_v2, 0  ;;  %v4499_v49 = vld [vmem:[#allocation2 + $0x420] sm:$0xf] }
 0xb1b   :  { %2682 = vmatpush.bf16.msra.mxu1 %v6897_v28  ;;  %8225 = vst [vmem:[#allocation258_spill] sm:$0xff] %v6904_v35  ;;  %v5045_v28 = vld [vmem:[#allocation2 + $0x938] sm:$0xf0] }
 0xb1c   :  { %2881 = vmatpush.bf16.msra.mxu0 %v6886_v19  ;;  %v2874_v19 = vpop.f32.mrf.mxu3  ;;  %8229 = vst [vmem:[#allocation262_spill] sm:$0xff] %v6917_v43 }
 0xb1d   :  { %v6920_v19 = vor.u32 %v5357_v61, %v4803_v56 }
 0xb1f   :  { %2683 = vmatpush.bf16.msra.mxu1 %v6904_v35  ;;  %8230 = vst [vmem:[#allocation263_spill] sm:$0xff] %v6920_v19  ;;  %v5406_v35 = vld [vmem:[#allocation2 + $0x8a4] sm:$0xf] }
 0xb20   :  { %2882 = vmatpush.bf16.msra.mxu0 %v6895_v18  ;;  %v6913_v18 = vor.u32 %v5395_v41, %v4955_v44  ;;  %v6923_v41 = vor.u32 %v5214_v40, %v4269_v36  ;;  %v5138_v40 = vld [vmem:[#allocation2 + $0x44] sm:$0xf]  ;;  %v3965_v36 = vld [vmem:[#allocation2 + $0xd8] sm:$0xf0] }
 0xb22   :  { %8228 = vst [vmem:[#allocation261_spill] sm:$0xff] %v6913_v18 }
 0xb23   :  { %2684 = vmatpush.bf16.msra.mxu1 %v6910_v39  ;;  %8231 = vst [vmem:[#allocation264_spill] sm:$0xff] %v6923_v41  ;;  %v4117_v39 = vld [vmem:[#allocation2 + $0x208] sm:$0xf0] }
 0xb24   :  { %2883 = vmatpush.bf16.msra.mxu0 %v6902_v50  ;;  %v5176_v50 = vld [vmem:[#allocation2 + $0x174] sm:$0xf]  ;;  %v2677_v61 = vpop.f32.mrf.mxu0 }
 0xb25   :  { %v6930_v56 = vor.u32 %v5176_v50, %v4117_v39  ;;  %v7934_v50 = vperm.slane %v5792_v4, 3  ;;  %v6944_v39 = vor.u32 %v5406_v35, %v5045_v28  ;;  %v4043_v28 = vld [vmem:[#allocation2 + $0x90] sm:$0xf]  ;;  %v5167_v35 = vld [vmem:[#allocation2 + $0x124] sm:$0xf0] }
 0xb27   :  { %2884 = vmatmul.bf16.vlgmr.msra.gmra.mxu0 %v6031_v38  ;;  %2685 = vmatpush.bf16.msra.mxu1 %v6917_v43 }
 0xb28   :  { %2928 = vmatpush.bf16.msrb.mxu0 %v6906_v33  ;;  %v5319_v33 = vld [vmem:[#allocation2 + $0x5e4] sm:$0xf0] }
 0xb29   :  { %v6926_v44 = vor.u32 %v5319_v33, %v4651_v34  ;;  %v2678_v33 = vadd.f32 %v2677_v61, %v7932_v25  ;;  %v5243_v34 = vld [vmem:[#allocation2 + $0x384] sm:$0xf0]  ;;  %v4893_v61 = vld [vmem:[#allocation2 + $0x808] sm:$0xf0] }
 0xb2b   :  { %8232 = vst [vmem:[#allocation265_spill] sm:$0xff] %v6926_v44  ;;  %2686 = vmatpush.bf16.msra.mxu1 %v6923_v41  ;;  %v6938_v41 = vor.u32 %v5138_v40, %v3965_v36  ;;  %v2924_v25 = vpop.f32.mrf.mxu3 }
 0xb2c   :  { %2929 = vmatpush.bf16.msrb.mxu0 %v6913_v18  ;;  %v5281_v18 = vld [vmem:[#allocation2 + $0x4b4] sm:$0xf0]  ;;  %2970 = vst [vmem:[#allocation15 + $0x80] sm:$0xff] %v2678_v33  ;;  %v2925_v33 = vadd.f32 %v2924_v25, %v7934_v50  ;;  %v2679_v40 = vpop.f32.mrf.mxu0  ;;  %v6958_v25 = vor.u32 %v5167_v35, %v4043_v28  ;;  %v5292_v50 = vld [vmem:[#allocation2 + $0x514] sm:$0xf] }
 0xb2d   :  { %v6933_v43 = vor.u32 %v5281_v18, %v4499_v49  ;;  %v4195_v49 = vld [vmem:[#allocation2 + $0x1c0] sm:$0xf]  ;;  %v4285_v35 = vld [vmem:[#allocation2 + $0x348] sm:$0xf0] }
 0xb2e   :  { %2989 = vst [vmem:[#allocation15 + $0x118] sm:$0xff] %v2925_v33  ;;  %v4437_v33 = vld [vmem:[#allocation2 + $0x478] sm:$0xf0] }
 0xb2f   :  { %8233 = vst [vmem:[#allocation266_spill] sm:$0xff] %v6933_v43  ;;  %2687 = vmatpush.bf16.msra.mxu1 %v6930_v56 }
 0xb30   :  { %2930 = vmatpush.bf16.msrb.mxu0 %v6920_v19  ;;  %v4347_v19 = vld [vmem:[#allocation2 + $0x2f0] sm:$0xf]  ;;  %8237 = vst [vmem:[#allocation270_spill] sm:$0xff] %v6958_v25 }
 0xb31   :  { %v6942_v18 = vor.u32 %v5243_v34, %v4347_v19  ;;  %v6953_v19 = vor.u32 %v5368_v63, %v4893_v61  ;;  %v5330_v34 = vld [vmem:[#allocation2 + $0x644] sm:$0xf] }
 0xb32   :  { %v5254_v61 = vld [vmem:[#allocation2 + $0x3e4] sm:$0xf] }
 0xb33   :  { %8234 = vst [vmem:[#allocation267_spill] sm:$0xff] %v6942_v18  ;;  %2688 = vmatpush.bf16.msra.mxu1 %v6938_v41  ;;  %v6969_v28 = vor.u32 %v5254_v61, %v4437_v33  ;;  %v5140_v61 = vld [vmem:[#allocation2 + $0x54] sm:$0xf]  ;;  %v3981_v33 = vld [vmem:[#allocation2 + $0xe8] sm:$0xf0] }
 0xb34   :  { %2931 = vmatpush.bf16.msrb.mxu0 %v6926_v44  ;;  %v5205_v44 = vld [vmem:[#allocation2 + $0x254] sm:$0xf0]  ;;  %8236 = vst [vmem:[#allocation269_spill] sm:$0xff] %v6953_v19 }
 0xb35   :  { %v6951_v36 = vor.u32 %v5205_v44, %v4195_v49  ;;  %v4589_v44 = vld [vmem:[#allocation2 + $0x5a8] sm:$0xf0]  ;;  %v2926_v49 = vpop.f32.mrf.mxu3  ;;  %8240 = vst [vmem:[#allocation273_spill] sm:$0xff] %v6969_v28 }
 0xb36   :  { %2689 = vmatmul.bf16.vlgmr.msra.gmra.mxu1 %v6031_v38  ;;  %v6964_v63 = vor.u32 %v5292_v50, %v4589_v44  ;;  %v5178_v50 = vld [vmem:[#allocation2 + $0x184] sm:$0xf]  ;;  %v4133_v44 = vld [vmem:[#allocation2 + $0x218] sm:$0xf0] }
 0xb37   :  { %2733 = vmatpush.bf16.msrb.mxu1 %v6944_v39  ;;  %8235 = vst [vmem:[#allocation268_spill] sm:$0xff] %v6951_v36  ;;  %v6977_v49 = vor.u32 %v5178_v50, %v4133_v44  ;;  %v2482_v50 = vpop.f32.mrf.mxu1  ;;  %v5370_v44 = vld [vmem:[#allocation2 + $0x784] sm:$0xf] }
 0xb38   :  { %2932 = vmatpush.bf16.msrb.mxu0 %v6933_v43  ;;  %v4741_v43 = vld [vmem:[#allocation2 + $0x6d8] sm:$0xf0]  ;;  %8239 = vst [vmem:[#allocation272_spill] sm:$0xff] %v6964_v63 }
 0xb39   :  { %v6960_v40 = vor.u32 %v5330_v34, %v4741_v43  ;;  %v5216_v43 = vld [vmem:[#allocation2 + $0x2b4] sm:$0xf]  ;;  %8242 = vst [vmem:[#allocation275_spill] sm:$0xff] %v6977_v49 }
 0xb3a   :  { %v6973_v34 = vor.u32 %v5216_v43, %v4285_v35  ;;  %v5408_v43 = vld [vmem:[#allocation2 + $0x8b4] sm:$0xf]  ;;  %v5061_v35 = vld [vmem:[#allocation2 + $0x948] sm:$0xf0] }
 0xb3b   :  { %2734 = vmatpush.bf16.msrb.mxu1 %v6953_v19  ;;  %8238 = vst [vmem:[#allocation271_spill] sm:$0xff] %v6960_v40 }
 0xb3c   :  { %2933 = vmatpush.bf16.msrb.mxu0 %v6942_v18  ;;  %8241 = vst [vmem:[#allocation274_spill] sm:$0xff] %v6973_v34  ;;  %v4909_v18 = vld [vmem:[#allocation2 + $0x818] sm:$0xf0] }
 0xb3f   :  { %2735 = vmatpush.bf16.msrb.mxu1 %v6960_v40  ;;  %v4301_v40 = vld [vmem:[#allocation2 + $0x358] sm:$0xf0] }
 0xb40   :  { %2934 = vmatpush.bf16.msrb.mxu0 %v6951_v36  ;;  %v6984_v36 = vor.u32 %v5408_v43, %v5061_v35  ;;  %v7947_v35 = vperm.slane %v5784_v0, 1 }
 0xb42   :  { %8244 = vst [vmem:[#allocation277_spill] sm:$0xff] %v6984_v36 }
 0xb43   :  { %2736 = vmatpush.bf16.msrb.mxu1 %v6964_v63 }
 0xb44   :  { %2935 = vmatpush.bf16.msrb.mxu0 %v6958_v25  ;;  %v6982_v25 = vor.u32 %v5140_v61, %v3981_v33  ;;  %v5332_v61 = vld [vmem:[#allocation2 + $0x654] sm:$0xf]  ;;  %v4757_v33 = vld [vmem:[#allocation2 + $0x6e8] sm:$0xf0] }
 0xb45   :  { %v6994_v43 = vor.u32 %v5332_v61, %v4757_v33  ;;  %v5256_v61 = vld [vmem:[#allocation2 + $0x3f4] sm:$0xf]  ;;  %v4453_v33 = vld [vmem:[#allocation2 + $0x488] sm:$0xf0] }
 0xb46   :  { %8243 = vst [vmem:[#allocation276_spill] sm:$0xff] %v6982_v25 }
 0xb47   :  { %2936 = vmatmul.bf16.vlgmr.msrb.gmra.mxu0 %v6031_v38  ;;  %2737 = vmatpush.bf16.msrb.mxu1 %v6969_v28  ;;  %8246 = vst [vmem:[#allocation279_spill] sm:$0xff] %v6994_v43 }
 0xb48   :  { %3028 = vmatpush.bf16.msra.mxu0 %v5794_v5 }
 0xb4b   :  { %2738 = vmatpush.bf16.msrb.mxu1 %v6973_v34  ;;  %v2483_v34 = vadd.f32 %v2482_v50, %v7947_v35  ;;  %v7951_v50 = vperm.slane %v5784_v0, 5  ;;  %v4149_v35 = vld [vmem:[#allocation2 + $0x228] sm:$0xf0] }
 0xb4c   :  { %3029 = vmatpush.bf16.msra.mxu0 %v5797_v6 }
 0xb4d   :  { %2955 = vst [vmem:[#allocation15 + $0x8] sm:$0xff] %v2483_v34  ;;  %v5180_v34 = vld [vmem:[#allocation2 + $0x194] sm:$0xf] }
 0xb4f   :  { %2739 = vmatpush.bf16.msrb.mxu1 %v6977_v49  ;;  %v6989_v49 = vor.u32 %v5370_v44, %v4909_v18  ;;  %v5294_v18 = vld [vmem:[#allocation2 + $0x524] sm:$0xf]  ;;  %v4605_v44 = vld [vmem:[#allocation2 + $0x5b8] sm:$0xf0] }
 0xb50   :  { %3030 = vmatpush.bf16.msra.mxu0 %v5807_v9  ;;  %v7003_v28 = vor.u32 %v5294_v18, %v4605_v44 }
 0xb51   :  { %8245 = vst [vmem:[#allocation278_spill] sm:$0xff] %v6989_v49 }
 0xb52   :  { %8247 = vst [vmem:[#allocation280_spill] sm:$0xff] %v7003_v28 }
 0xb53   :  { %2740 = vmatpush.bf16.msrb.mxu1 %v6982_v25  ;;  %v2729_v25 = vpop.f32.mrf.mxu0 }
 0xb54   :  { %3031 = vmatpush.bf16.msra.mxu0 %v5815_v11 }
 0xb56   :  { %2741 = vmatmul.bf16.vlgmr.msrb.gmra.mxu1 %v6031_v38 }
 0xb57   :  { %2785 = vmatpush.bf16.msra.mxu1 %v6984_v36  ;;  %v2484_v36 = vpop.f32.mrf.mxu1 }
 0xb58   :  { %3032 = vmatpush.bf16.msra.mxu0 %v5823_v13  ;;  %v7008_v36 = vor.u32 %v5256_v61, %v4453_v33  ;;  %v7019_v61 = vor.u32 %v5180_v34, %v4149_v35  ;;  %v3997_v33 = vld [vmem:[#allocation2 + $0xf8] sm:$0xf0]  ;;  %v5372_v35 = vld [vmem:[#allocation2 + $0x794] sm:$0xf]  ;;  %v4925_v34 = vld [vmem:[#allocation2 + $0x828] sm:$0xf0] }
 0xb5a   :  { %8248 = vst [vmem:[#allocation281_spill] sm:$0xff] %v7008_v36 }
 0xb5b   :  { %2786 = vmatpush.bf16.msra.mxu1 %v6989_v49  ;;  %v7949_v49 = vperm.slane %v5788_v2, 4  ;;  %v2731_v44 = vpop.f32.mrf.mxu0 }
 0xb5c   :  { %3033 = vmatpush.bf16.msra.mxu0 %v5831_v15  ;;  %v7954_v44 = vperm.slane %v5790_v3, 0 }
 0xb5d   :  { %v2730_v63 = vadd.f32 %v2729_v25, %v7949_v49 }
 0xb5f   :  { %2787 = vmatpush.bf16.msra.mxu1 %v6994_v43  ;;  %v5218_v43 = vld [vmem:[#allocation2 + $0x2c4] sm:$0xf]  ;;  %2974 = vst [vmem:[#allocation15 + $0xa0] sm:$0xff] %v2730_v63  ;;  %v2534_v19 = vpop.f32.mrf.mxu1 }
 0xb60   :  { %3034 = vmatpush.bf16.msra.mxu0 %v5837_v16  ;;  %v7013_v18 = vor.u32 %v5218_v43, %v4301_v40  ;;  %v2535_v25 = vadd.f32 %v2534_v19, %v7951_v50  ;;  %v5142_v63 = vld [vmem:[#allocation2 + $0x64] sm:$0xf]  ;;  %v5077_v43 = vld [vmem:[#allocation2 + $0x958] sm:$0xf0] }
 0xb61   :  { %v5410_v40 = vld [vmem:[#allocation2 + $0x8c4] sm:$0xf]  ;;  %v7024_v49 = vor.u32 %v5142_v63, %v3997_v33  ;;  %v7034_v63 = vor.u32 %v5372_v35, %v4925_v34 }
 0xb62   :  { %8249 = vst [vmem:[#allocation282_spill] sm:$0xff] %v7013_v18  ;;  %v5334_v33 = vld [vmem:[#allocation2 + $0x664] sm:$0xf] }
 0xb63   :  { %2788 = vmatpush.bf16.msra.mxu1 %v7003_v28  ;;  %2959 = vst [vmem:[#allocation15 + $0x28] sm:$0xff] %v2535_v25 }
 0xb64   :  { %3035 = vmatpush.bf16.msra.mxu0 %v5841_v17  ;;  %8250 = vst [vmem:[#allocation283_spill] sm:$0xff] %v7024_v49  ;;  %v2781_v50 = vpop.f32.mrf.mxu0 }
 0xb65   :  { %v2782_v25 = vadd.f32 %v2781_v50, %v7954_v44  ;;  %8252 = vst [vmem:[#allocation285_spill] sm:$0xff] %v7034_v63 }
 0xb67   :  { %2789 = vmatpush.bf16.msra.mxu1 %v7008_v36  ;;  %v7026_v36 = vor.u32 %v5410_v40, %v5077_v43  ;;  %v2536_v19 = vpop.f32.mrf.mxu1  ;;  %2978 = vst [vmem:[#allocation15 + $0xc0] sm:$0xff] %v2782_v25  ;;  %v4773_v40 = vld [vmem:[#allocation2 + $0x6f8] sm:$0xf0]  ;;  %v7959_v25 = vperm.slane %v5786_v1, 1 }
 0xb68   :  { %3098 = vmatpush.bf16.msrb.mxu0 %v5794_v5  ;;  %v7040_v50 = vor.u32 %v5334_v33, %v4773_v40 }
 0xb69   :  { %8251 = vst [vmem:[#allocation284_spill] sm:$0xff] %v7026_v36 }
 0xb6a   :  { %8253 = vst [vmem:[#allocation286_spill] sm:$0xff] %v7040_v50 }
 0xb6b   :  { %2790 = vmatpush.bf16.msra.mxu1 %v7013_v18  ;;  %v3018_v18 = vpop.f32.mrf.mxu3 }
 0xb6c   :  { %3099 = vmatpush.bf16.msrb.mxu0 %v5797_v6  ;;  %v3022_v28 = vadd.f32 %v3018_v18, %v6772_v62  ;;  %v2783_v19 = vpop.f32.mrf.mxu0  ;;  %v5296_v62 = vld [vmem:[#allocation2 + $0x534] sm:$0xf]  ;;  %v4621_v18 = vld [vmem:[#allocation2 + $0x5c8] sm:$0xf0] }
 0xb6d   :  { %v7044_v34 = vor.u32 %v5296_v62, %v4621_v18  ;;  %v5220_v18 = vld [vmem:[#allocation2 + $0x2d4] sm:$0xf] }
 0xb6e   :  { %v3023_v43 = vadd.f32 %v3022_v28, %v5909_v29  ;;  %v5258_v28 = vld [vmem:[#allocation2 + $0x404] sm:$0xf] }
 0xb6f   :  { %2791 = vmatpush.bf16.msra.mxu1 %v7019_v61  ;;  %8254 = vst [vmem:[#allocation287_spill] sm:$0xff] %v7044_v34 }
 0xb70   :  { %3100 = vmatpush.bf16.msrb.mxu0 %v5807_v9  ;;  %5480 = vtanh.f32 %v3023_v43  ;;  %v4469_v43 = vld [vmem:[#allocation2 + $0x498] sm:$0xf0] }
 0xb71   :  { %v7053_v19 = vor.u32 %v5258_v28, %v4469_v43 }
 0xb73   :  { %2792 = vmatpush.bf16.msra.mxu1 %v7024_v49  ;;  %v3020_v35 = vpop.f32.mrf.mxu3  ;;  %v2586_v40 = vpop.f32.mrf.mxu1  ;;  %8255 = vst [vmem:[#allocation288_spill] sm:$0xff] %v7053_v19  ;;  %v7962_v49 = vperm.slane %v5790_v3, 4 }
 0xb74   :  { %3101 = vmatpush.bf16.msrb.mxu0 %v5815_v11  ;;  %v2587_v62 = vadd.f32 %v2586_v40, %v7959_v25  ;;  %v4317_v35 = vld [vmem:[#allocation2 + $0x368] sm:$0xf0]  ;;  %v5144_v40 = vld [vmem:[#allocation2 + $0x74] sm:$0xf] }
 0xb76   :  { %2793 = vmatmul.bf16.vlgmr.msra.gmra.mxu1 %v6031_v38  ;;  %v7048_v44 = vpop.eup %5480  ;;  %2963 = vst [vmem:[#allocation15 + $0x48] sm:$0xff] %v2587_v62  ;;  %v4013_v62 = vld [vmem:[#allocation2 + $0x108] sm:$0xf0] }
 0xb77   :  { %2837 = vmatpush.bf16.msrb.mxu1 %v7026_v36  ;;  %v3027_v33 = vpack.c.bf16 %v7048_v44, %v7048_v44  ;;  %v4165_v36 = vld [vmem:[#allocation2 + $0x238] sm:$0xf0] }
 0xb78   :  { %3102 = vmatpush.bf16.msrb.mxu0 %v5823_v13 }
 0xb79   :  { %3036 = vmatmul.bf16.vlgmr.msra.gmra.mxu0 %v3027_v33 }
 0xb7b   :  { %2838 = vmatpush.bf16.msrb.mxu1 %v7034_v63  ;;  %v5182_v63 = vld [vmem:[#allocation2 + $0x1a4] sm:$0xf]  ;;  %v2588_v28 = vpop.f32.mrf.mxu1 }
 0xb7c   :  { %3103 = vmatpush.bf16.msrb.mxu0 %v5831_v15  ;;  %v7064_v43 = vor.u32 %v5182_v63, %v4165_v36  ;;  %v4941_v36 = vld [vmem:[#allocation2 + $0x838] sm:$0xf0] }
 0xb7e   :  { %8257 = vst [vmem:[#allocation290_spill] sm:$0xff] %v7064_v43 }
 0xb7f   :  { %2839 = vmatpush.bf16.msrb.mxu1 %v7040_v50  ;;  %v7059_v50 = vor.u32 %v5220_v18, %v4317_v35  ;;  %v5093_v18 = vld [vmem:[#allocation2 + $0x968] sm:$0xf0]  ;;  %v7070_v35 = vor.u32 %v5144_v40, %v4013_v62  ;;  %v4637_v40 = vld [vmem:[#allocation2 + $0x5d8] sm:$0xf0] }
 0xb80   :  { %3104 = vmatpush.bf16.msrb.mxu0 %v5837_v16 }
 0xb81   :  { %8256 = vst [vmem:[#allocation289_spill] sm:$0xff] %v7059_v50 }
 0xb82   :  { %8258 = vst [vmem:[#allocation291_spill] sm:$0xff] %v7070_v35 }
 0xb83   :  { %2840 = vmatpush.bf16.msrb.mxu1 %v7044_v34  ;;  %v4789_v34 = vld [vmem:[#allocation2 + $0x708] sm:$0xf0] }
 0xb84   :  { %3105 = vmatpush.bf16.msrb.mxu0 %v5841_v17  ;;  %v2833_v33 = vpop.f32.mrf.mxu0 }
 0xb85   :  { %v2834_v25 = vadd.f32 %v2833_v33, %v7962_v49  ;;  %v5336_v49 = vld [vmem:[#allocation2 + $0x674] sm:$0xf] }
 0xb87   :  { %2841 = vmatpush.bf16.msrb.mxu1 %v7053_v19  ;;  %v5412_v19 = vld [vmem:[#allocation2 + $0x8d4] sm:$0xf]  ;;  %2982 = vst [vmem:[#allocation15 + $0xe0] sm:$0xff] %v2834_v25  ;;  %v7082_v25 = vor.u32 %v5336_v49, %v4789_v34  ;;  %v5222_v34 = vld [vmem:[#allocation2 + $0x2e4] sm:$0xf] }
 0xb88   :  { %3168 = vmatpush.bf16.msra.mxu0 %v5794_v5  ;;  %v7072_v28 = vor.u32 %v5412_v19, %v5093_v18  ;;  %v5298_v19 = vld [vmem:[#allocation2 + $0x544] sm:$0xf]  ;;  %v5260_v18 = vld [vmem:[#allocation2 + $0x414] sm:$0xf] }
 0xb89   :  { %8261 = vst [vmem:[#allocation294_spill] sm:$0xff] %v7082_v25  ;;  %v7086_v62 = vor.u32 %v5298_v19, %v4637_v40  ;;  %v5184_v40 = vld [vmem:[#allocation2 + $0x1b4] sm:$0xf] }
 0xb8a   :  { %8259 = vst [vmem:[#allocation292_spill] sm:$0xff] %v7072_v28 }
 0xb8b   :  { %2842 = vmatpush.bf16.msrb.mxu1 %v7059_v50  ;;  %v5374_v50 = vld [vmem:[#allocation2 + $0x7a4] sm:$0xf]  ;;  %8262 = vst [vmem:[#allocation295_spill] sm:$0xff] %v7086_v62 }
 0xb8c   :  { %3169 = vmatpush.bf16.msra.mxu0 %v5797_v6  ;;  %v2835_v63 = vpop.f32.mrf.mxu0  ;;  %v7077_v33 = vor.u32 %v5374_v50, %v4941_v36  ;;  %v7969_v50 = vperm.slane %v5786_v1, 5  ;;  %v4485_v36 = vld [vmem:[#allocation2 + $0x4a8] sm:$0xf0]  ;;  %v5109_v1 = vld [vmem:[#allocation2 + $0x978] sm:$0xf0] }
 0xb8e   :  { %8260 = vst [vmem:[#allocation293_spill] sm:$0xff] %v7077_v33 }
 0xb8f   :  { %2843 = vmatpush.bf16.msrb.mxu1 %v7064_v43 }
 0xb90   :  { %3170 = vmatpush.bf16.msra.mxu0 %v5807_v9 }
 0xb93   :  { %2844 = vmatpush.bf16.msrb.mxu1 %v7070_v35  ;;  %v2638_v63 = vpop.f32.mrf.mxu1  ;;  %v7975_v35 = vperm.slane %v5792_v4, 0 }
 0xb94   :  { %3171 = vmatpush.bf16.msra.mxu0 %v5815_v11  ;;  %v2639_v49 = vadd.f32 %v2638_v63, %v7969_v50  ;;  %v5146_v63 = vld [vmem:[#allocation2 + $0x84] sm:$0xf]  ;;  %v4029_v50 = vld [vmem:[#allocation2 + $0x118] sm:$0xf0] }
 0xb96   :  { %2845 = vmatmul.bf16.vlgmr.msrb.gmra.mxu1 %v6031_v38  ;;  %2967 = vst [vmem:[#allocation15 + $0x68] sm:$0xff] %v2639_v49  ;;  %v5414_v49 = vld [vmem:[#allocation2 + $0x8e4] sm:$0xf] }
 0xb97   :  { %2889 = vmatpush.bf16.msra.mxu1 %v7072_v28  ;;  %v4333_v28 = vld [vmem:[#allocation2 + $0x378] sm:$0xf0] }
 0xb98   :  { %3172 = vmatpush.bf16.msra.mxu0 %v5823_v13  ;;  %v7097_v19 = vor.u32 %v5222_v34, %v4333_v28  ;;  %v7106_v28 = vor.u32 %v5146_v63, %v4029_v50  ;;  %v7108_v34 = vor.u32 %v5414_v49, %v5109_v1  ;;  %v5300_v50 = vld [vmem:[#allocation2 + $0x554] sm:$0xf]  ;;  %v4653_v1 = vld [vmem:[#allocation2 + $0x5e8] sm:$0xf0]  ;;  %v7981_v49 = vperm.slane %v5788_v2, 1 }
 0xb99   :  { %v7119_v63 = vor.u32 %v5300_v50, %v4653_v1  ;;  %v7982_v50 = vperm.slane %v5792_v4, 4  ;;  %v5186_v1 = vld [vmem:[#allocation2 + $0x1c4] sm:$0xf] }
 0xb9a   :  { %8264 = vst [vmem:[#allocation297_spill] sm:$0xff] %v7097_v19 }
 0xb9b   :  { %2890 = vmatpush.bf16.msra.mxu1 %v7077_v33  ;;  %v7091_v33 = vor.u32 %v5260_v18, %v4485_v36  ;;  %v2640_v43 = vpop.f32.mrf.mxu1  ;;  %8265 = vst [vmem:[#allocation298_spill] sm:$0xff] %v7106_v28 }
 0xb9c   :  { %3173 = vmatpush.bf16.msra.mxu0 %v5831_v15  ;;  %8266 = vst [vmem:[#allocation299_spill] sm:$0xff] %v7108_v34  ;;  %v5376_v43 = vld [vmem:[#allocation2 + $0x7b4] sm:$0xf] }
 0xb9d   :  { %8263 = vst [vmem:[#allocation296_spill] sm:$0xff] %v7091_v33 }
 0xb9e   :  { %8269 = vst [vmem:[#allocation302_spill] sm:$0xff] %v7119_v63 }
 0xb9f   :  { %2891 = vmatpush.bf16.msra.mxu1 %v7082_v25  ;;  %v4181_v25 = vld [vmem:[#allocation2 + $0x248] sm:$0xf0] }
 0xba0   :  { %3174 = vmatpush.bf16.msra.mxu0 %v5837_v16  ;;  %v7101_v18 = vor.u32 %v5184_v40, %v4181_v25 }
 0xba3   :  { %2892 = vmatpush.bf16.msra.mxu1 %v7086_v62 }
 0xba4   :  { %3175 = vmatpush.bf16.msra.mxu0 %v5841_v17  ;;  %v2885_v36 = vpop.f32.mrf.mxu0 }
 0xba5   :  { %v2886_v62 = vadd.f32 %v2885_v36, %v7975_v35  ;;  %v4805_v36 = vld [vmem:[#allocation2 + $0x718] sm:$0xf0] }
 0xba6   :  { %v4501_v35 = vld [vmem:[#allocation2 + $0x4b8] sm:$0xf0] }
 0xba7   :  { %2893 = vmatpush.bf16.msra.mxu1 %v7091_v33  ;;  %2986 = vst [vmem:[#allocation15 + $0x100] sm:$0xff] %v2886_v62  ;;  %v4957_v33 = vld [vmem:[#allocation2 + $0x848] sm:$0xf0] }
 0xba8   :  { %v7112_v40 = vor.u32 %v5376_v43, %v4957_v33 }
 0xbaa   :  { %8267 = vst [vmem:[#allocation300_spill] sm:$0xff] %v7112_v40 }
 0xbab   :  { %2894 = vmatpush.bf16.msra.mxu1 %v7097_v19  ;;  %v5338_v19 = vld [vmem:[#allocation2 + $0x684] sm:$0xf] }
 0xbac   :  { %v2887_v25 = vpop.f32.mrf.mxu0  ;;  %v7116_v62 = vor.u32 %v5338_v19, %v4805_v36  ;;  %v5224_v19 = vld [vmem:[#allocation2 + $0x2f4] sm:$0xf]  ;;  %v4349_v36 = vld [vmem:[#allocation2 + $0x388] sm:$0xf0] }
 0xbad   :  { %v5262_v25 = vld [vmem:[#allocation2 + $0x424] sm:$0xf] }
 0xbae   :  { %8268 = vst [vmem:[#allocation301_spill] sm:$0xff] %v7116_v62  ;;  %v7123_v43 = vor.u32 %v5262_v25, %v4501_v35 }
 0xbaf   :  { %2895 = vmatpush.bf16.msra.mxu1 %v7101_v18 }
 0xbb3   :  { %2896 = vmatpush.bf16.msra.mxu1 %v7106_v28  ;;  %v2690_v33 = vpop.f32.mrf.mxu1 }
 0xbb6   :  { %2897 = vmatmul.bf16.vlgmr.msra.gmra.mxu1 %v6031_v38 }
 0xbb7   :  { %2941 = vmatpush.bf16.msrb.mxu1 %v7108_v34  ;;  %v4197_v34 = vld [vmem:[#allocation2 + $0x258] sm:$0xf0] }
 0xbb8   :  { %v7132_v35 = vor.u32 %v5186_v1, %v4197_v34 }
 0xbba   :  { %8271 = vst [vmem:[#allocation304_spill] sm:$0xff] %v7132_v35 }
 0xbbb   :  { %2942 = vmatpush.bf16.msrb.mxu1 %v7112_v40  ;;  %v2691_v40 = vadd.f32 %v2690_v33, %v7981_v49  ;;  %v2692_v28 = vpop.f32.mrf.mxu1  ;;  %v5148_v33 = vld [vmem:[#allocation2 + $0x94] sm:$0xf]  ;;  %v4045_v49 = vld [vmem:[#allocation2 + $0x128] sm:$0xf0] }
 0xbbc   :  { %v7985_v28 = vperm.slane %v5788_v2, 5 }
 0xbbd   :  { %2971 = vst [vmem:[#allocation15 + $0x88] sm:$0xff] %v2691_v40  ;;  %v7137_v40 = vor.u32 %v5148_v33, %v4045_v49  ;;  %v7984_v49 = vperm.slane %v5790_v3, 1 }
 0xbbf   :  { %2943 = vmatpush.bf16.msrb.mxu1 %v7116_v62  ;;  %v7128_v62 = vor.u32 %v5224_v19, %v4349_v36  ;;  %8272 = vst [vmem:[#allocation305_spill] sm:$0xff] %v7137_v40 }
 0xbc1   :  { %8270 = vst [vmem:[#allocation303_spill] sm:$0xff] %v7128_v62 }
 0xbc3   :  { %2944 = vmatpush.bf16.msrb.mxu1 %v7119_v63 }
 0xbc4   :  { %v2937_v63 = vpop.f32.mrf.mxu0 }
 0xbc5   :  { %v2938_v25 = vadd.f32 %v2937_v63, %v7982_v50 }
 0xbc7   :  { %2945 = vmatpush.bf16.msrb.mxu1 %v7123_v43  ;;  %2990 = vst [vmem:[#allocation15 + $0x120] sm:$0xff] %v2938_v25 }
 0xbcb   :  { %2946 = vmatpush.bf16.msrb.mxu1 %v7128_v62 }
 0xbcc   :  { %v2939_v19 = vpop.f32.mrf.mxu0 }
 0xbcf   :  { %2947 = vmatpush.bf16.msrb.mxu1 %v7132_v35  ;;  %v3025_v35 = vperm.slane %v7048_v44, 0 }
 0xbd3   :  { %2948 = vmatpush.bf16.msrb.mxu1 %v7137_v40  ;;  %v2742_v34 = vpop.f32.mrf.mxu1 }
 0xbd6   :  { %2949 = vmatmul.bf16.vlgmr.msrb.gmra.mxu1 %v6031_v38  ;;  %v2743_v38 = vadd.f32 %v2742_v34, %v7985_v28 }
 0xbd7   :  { %3044 = vmatpush.bf16.msra.mxu1 %v5800_v7 }
 0xbd8   :  { %2975 = vst [vmem:[#allocation15 + $0xa8] sm:$0xff] %v2743_v38 }
 0xbdb   :  { %3045 = vmatpush.bf16.msra.mxu1 %v5803_v8  ;;  %v2744_v63 = vpop.f32.mrf.mxu1 }
 0xbdf   :  { %3046 = vmatpush.bf16.msra.mxu1 %v5811_v10 }
 0xbe3   :  { %3047 = vmatpush.bf16.msra.mxu1 %v5819_v12 }
 0xbe7   :  { %3048 = vmatpush.bf16.msra.mxu1 %v5827_v14 }
 0xbeb   :  { %3049 = vmatpush.bf16.msra.mxu1 %v5870_v20 }
 0xbef   :  { %3050 = vmatpush.bf16.msra.mxu1 %v5874_v21 }
 0xbf3   :  { %3051 = vmatpush.bf16.msra.mxu1 %v5878_v22  ;;  %v2794_v36 = vpop.f32.mrf.mxu1 }
 0xbf4   :  { %v2795_v1 = vadd.f32 %v2794_v36, %v7984_v49  ;;  %v7983_v36 = vperm.slane %v5790_v3, 5 }
 0xbf6   :  { %2979 = vst [vmem:[#allocation15 + $0xc8] sm:$0xff] %v2795_v1  ;;  %v3037_v25 = vpop.f32.mrf.mxu0 }
 0xbf7   :  { %3114 = vmatpush.bf16.msrb.mxu1 %v5800_v7  ;;  %v3041_v33 = vadd.f32 %v3037_v25, %v5892_v23 }
 0xbf9   :  { %5482 = vtanh.f32 %v3041_v33 }
 0xbfb   :  { %3115 = vmatpush.bf16.msrb.mxu1 %v5803_v8  ;;  %v2796_v19 = vpop.f32.mrf.mxu1 }
 0xbfc   :  { %v7991_v19 = vperm.slane %v5792_v4, 1 }
 0xbfe   :  { %v3039_v34 = vpop.f32.mrf.mxu0 }
 0xbff   :  { %3116 = vmatpush.bf16.msrb.mxu1 %v5811_v10  ;;  %v5483_v38 = vpop.eup %5482 }
 0xc00   :  { %v3043_v63 = vpack.c.bf16 %v5483_v38, %v5483_v38 }
 0xc02   :  { %3052 = vmatmul.bf16.vlgmr.msra.gmra.mxu1 %v3043_v63  ;;  %v901_v63 = vperm.slane %v5792_v4, 5 }
 0xc03   :  { %3117 = vmatpush.bf16.msrb.mxu1 %v5819_v12 }
 0xc07   :  { %3118 = vmatpush.bf16.msrb.mxu1 %v5827_v14 }
 0xc0b   :  { %3119 = vmatpush.bf16.msrb.mxu1 %v5870_v20 }
 0xc0f   :  { %3120 = vmatpush.bf16.msrb.mxu1 %v5874_v21 }
 0xc13   :  { %3121 = vmatpush.bf16.msrb.mxu1 %v5878_v22  ;;  %v2846_v1 = vpop.f32.mrf.mxu1 }
 0xc14   :  { %v2847_v50 = vadd.f32 %v2846_v1, %v7983_v36 }
 0xc16   :  { %2983 = vst [vmem:[#allocation15 + $0xe8] sm:$0xff] %v2847_v50 }
 0xc17   :  { %3184 = vmatpush.bf16.msra.mxu1 %v5800_v7 }
 0xc1b   :  { %3185 = vmatpush.bf16.msra.mxu1 %v5803_v8  ;;  %v2848_v33 = vpop.f32.mrf.mxu1 }
 0xc1f   :  { %3186 = vmatpush.bf16.msra.mxu1 %v5811_v10 }
 0xc23   :  { %3187 = vmatpush.bf16.msra.mxu1 %v5819_v12 }
 0xc27   :  { %3188 = vmatpush.bf16.msra.mxu1 %v5827_v14 }
 0xc2b   :  { %3189 = vmatpush.bf16.msra.mxu1 %v5870_v20 }
 0xc2f   :  { %3190 = vmatpush.bf16.msra.mxu1 %v5874_v21 }
 0xc33   :  { %3191 = vmatpush.bf16.msra.mxu1 %v5878_v22  ;;  %v2898_v34 = vpop.f32.mrf.mxu1 }
 0xc34   :  { %v2899_v38 = vadd.f32 %v2898_v34, %v7991_v19 }
 0xc36   :  { %2987 = vst [vmem:[#allocation15 + $0x108] sm:$0xff] %v2899_v38 }
 0xc3b   :  { %v2900_v50 = vpop.f32.mrf.mxu1 }
 0xc3c   :  { %v3026_v50 = vsel %vm295_vm0, %v3025_v35, 0.0 }
 0xc53   :  { %v2950_v1 = vpop.f32.mrf.mxu1 }
 0xc54   :  { %v2951_v33 = vadd.f32 %v2950_v1, %v901_v63 }
 0xc56   :  { %2991 = vst [vmem:[#allocation15 + $0x128] sm:$0xff] %v2951_v33 }
 0xc5b   :  { %v2952_v36 = vpop.f32.mrf.mxu1 }
 0xc7f   :  { %v3053_v49 = vpop.f32.mrf.mxu1 }
 0xc80   :  { %v3057_v28 = vadd.f32 %v3053_v49, %v3037_v25 }
 0xc82   :  { %v3058_v3 = vadd.f32 %v3057_v28, %v5909_v29 }
 0xc84   :  { %5484 = vtanh.f32 %v3058_v3 }
 0xc87   :  { %v3055_v40 = vpop.f32.mrf.mxu1 }
 0xc8a   :  { %v5485_v62 = vpop.eup %5484 }
 0xc8b   :  { %v3060_v34 = vperm.slane %v5485_v62, 0  ;;  %v3062_v38 = vpack.c.bf16 %v5485_v62, %v5485_v62 }
 0xc8d   :  { %v3061_v19 = vsel %vm331_vm1, %v3060_v34, %v3026_v50  ;;  %3071 = vmatmul.bf16.vlgmr.msra.gmra.mxu2 %v3062_v38 }
 0xc8e   :  { %3203 = vmatpush.bf16.msra.mxu2 %v5794_v5 }
 0xc92   :  { %3204 = vmatpush.bf16.msra.mxu2 %v5797_v6 }
 0xc96   :  { %3205 = vmatpush.bf16.msra.mxu2 %v5807_v9 }
 0xc9a   :  { %3206 = vmatpush.bf16.msra.mxu2 %v5815_v11 }
 0xc9e   :  { %3207 = vmatpush.bf16.msra.mxu2 %v5823_v13 }
 0xca2   :  { %3208 = vmatpush.bf16.msra.mxu2 %v5831_v15 }
 0xca6   :  { %3209 = vmatpush.bf16.msra.mxu2 %v5837_v16 }
 0xcaa   :  { %3210 = vmatpush.bf16.msra.mxu2 %v5841_v17 }
 0xd10   :  { %v3072_v3 = vpop.f32.mrf.mxu2 }
 0xd11   :  { %v3076_v44 = vadd.f32 %v3072_v3, %v5892_v23 }
 0xd13   :  { %5486 = vtanh.f32 %v3076_v44 }
 0xd18   :  { %v3074_v62 = vpop.f32.mrf.mxu2 }
 0xd19   :  { %v5487_v35 = vpop.eup %5486  ;;  %v8281_v62 = vld [vmem:[#allocation63_spill] sm:$0xff] }
 0xd1a   :  { %v3078_v40 = vpack.c.bf16 %v5487_v35, %v5487_v35  ;;  %v8282_v35 = vld [vmem:[#allocation65_spill] sm:$0xff] }
 0xd1c   :  { %3087 = vmatmul.bf16.vlgmr.msra.gmra.mxu3 %v3078_v40  ;;  %v8283_v40 = vld [vmem:[#allocation67_spill] sm:$0xff] }
 0xd1d   :  { %3219 = vmatpush.bf16.msra.mxu3 %v5800_v7 }
 0xd21   :  { %3220 = vmatpush.bf16.msra.mxu3 %v5803_v8 }
 0xd25   :  { %3221 = vmatpush.bf16.msra.mxu3 %v5811_v10 }
 0xd29   :  { %3222 = vmatpush.bf16.msra.mxu3 %v5819_v12 }
 0xd2d   :  { %3223 = vmatpush.bf16.msra.mxu3 %v5827_v14 }
 0xd31   :  { %3224 = vmatpush.bf16.msra.mxu3 %v5870_v20 }
 0xd35   :  { %3225 = vmatpush.bf16.msra.mxu3 %v5874_v21 }
 0xd39   :  { %3226 = vmatpush.bf16.msra.mxu3 %v5878_v22 }
 0xd9f   :  { %v3088_v28 = vpop.f32.mrf.mxu3 }
 0xda0   :  { %v3092_v49 = vadd.f32 %v3088_v28, %v3072_v3  ;;  %v8284_v28 = vld [vmem:[#allocation69_spill] sm:$0xff] }
 0xda2   :  { %v3093_v25 = vadd.f32 %v3092_v49, %v5909_v29  ;;  %v8285_v49 = vld [vmem:[#allocation71_spill] sm:$0xff] }
 0xda4   :  { %5488 = vtanh.f32 %v3093_v25 }
 0xda7   :  { %v3090_v36 = vpop.f32.mrf.mxu3 }
 0xdaa   :  { %v5489_v1 = vpop.eup %5488 }
 0xdab   :  { %v3095_v33 = vperm.slane %v5489_v1, 0  ;;  %v3097_v34 = vpack.c.bf16 %v5489_v1, %v5489_v1 }
 0xdad   :  { %3106 = vmatmul.bf16.vlgmr.msrb.gmra.mxu0 %v3097_v34  ;;  %v3096_v38 = vsel %vm367_vm2, %v3095_v33, %v3061_v19 }
 0xdae   :  { %3238 = vmatpush.bf16.msrb.mxu0 %v5794_v5 }
 0xdb2   :  { %3239 = vmatpush.bf16.msrb.mxu0 %v5797_v6 }
 0xdb6   :  { %3240 = vmatpush.bf16.msrb.mxu0 %v5807_v9 }
 0xdba   :  { %3241 = vmatpush.bf16.msrb.mxu0 %v5815_v11 }
 0xdbe   :  { %3242 = vmatpush.bf16.msrb.mxu0 %v5823_v13 }
 0xdc2   :  { %3243 = vmatpush.bf16.msrb.mxu0 %v5831_v15 }
 0xdc6   :  { %3244 = vmatpush.bf16.msrb.mxu0 %v5837_v16 }
 0xdca   :  { %3245 = vmatpush.bf16.msrb.mxu0 %v5841_v17 }
 0xe2a   :  { %v3107_v50 = vpop.f32.mrf.mxu0 }
 0xe2b   :  { %v3111_v3 = vadd.f32 %v3107_v50, %v5892_v23 }
 0xe2d   :  { %5490 = vtanh.f32 %v3111_v3 }
 0xe32   :  { %v3109_v19 = vpop.f32.mrf.mxu0 }
 0xe33   :  { %v5491_v5 = vpop.eup %5490  ;;  %v8286_v19 = vld [vmem:[#allocation136_spill] sm:$0xff] }
 0xe34   :  { %v3113_v44 = vpack.c.bf16 %v5491_v5, %v5491_v5  ;;  %v8287_v5 = vld [vmem:[#allocation139_spill] sm:$0xff] }
 0xe36   :  { %3122 = vmatmul.bf16.vlgmr.msrb.gmra.mxu1 %v3113_v44  ;;  %v8288_v44 = vld [vmem:[#allocation141_spill] sm:$0xff] }
 0xe37   :  { %3254 = vmatpush.bf16.msrb.mxu1 %v5800_v7 }
 0xe3b   :  { %3255 = vmatpush.bf16.msrb.mxu1 %v5803_v8 }
 0xe3f   :  { %3256 = vmatpush.bf16.msrb.mxu1 %v5811_v10 }
 0xe43   :  { %3257 = vmatpush.bf16.msrb.mxu1 %v5819_v12 }
 0xe47   :  { %3258 = vmatpush.bf16.msrb.mxu1 %v5827_v14 }
 0xe4b   :  { %3259 = vmatpush.bf16.msrb.mxu1 %v5870_v20 }
 0xe4f   :  { %3260 = vmatpush.bf16.msrb.mxu1 %v5874_v21 }
 0xe53   :  { %3261 = vmatpush.bf16.msrb.mxu1 %v5878_v22 }
 0xeb3   :  { %v3123_v6 = vpop.f32.mrf.mxu1 }
 0xeb4   :  { %v3127_v9 = vadd.f32 %v3123_v6, %v3107_v50  ;;  %v8289_v6 = vld [vmem:[#allocation143_spill] sm:$0xff] }
 0xeb6   :  { %v3128_v11 = vadd.f32 %v3127_v9, %v5909_v29  ;;  %v8290_v9 = vld [vmem:[#allocation145_spill] sm:$0xff] }
 0xeb8   :  { %5492 = vtanh.f32 %v3128_v11  ;;  %v8291_v11 = vld [vmem:[#allocation147_spill] sm:$0xff] }
 0xebb   :  { %v3125_v7 = vpop.f32.mrf.mxu1 }
 0xebc   :  { %v8292_v7 = vld [vmem:[#allocation149_spill] sm:$0xff] }
 0xebe   :  { %v5493_v13 = vpop.eup %5492 }
 0xebf   :  { %v3130_v8 = vperm.slane %v5493_v13, 0  ;;  %v3132_v15 = vpack.c.bf16 %v5493_v13, %v5493_v13  ;;  %v8293_v13 = vld [vmem:[#allocation151_spill] sm:$0xff] }
 0xec1   :  { %3141 = vmatmul.bf16.vlgmr.msrb.gmra.mxu2 %v3132_v15  ;;  %v3131_v10 = vsel %vm403_vm3, %v3130_v8, %v3096_v38 }
 0xec2   :  { %3273 = vmatpush.bf16.msrb.mxu2 %v6310_v46 }
 0xec6   :  { %3274 = vmatpush.bf16.msrb.mxu2 %v6322_v26 }
 0xeca   :  { %3275 = vmatpush.bf16.msrb.mxu2 %v6333_v54 }
 0xece   :  { %3276 = vmatpush.bf16.msrb.mxu2 %v6343_v59 }
 0xed2   :  { %3277 = vmatpush.bf16.msrb.mxu2 %v6352_v60 }
 0xed6   :  { %3278 = vmatpush.bf16.msrb.mxu2 %v6361_v42 }
 0xeda   :  { %3279 = vmatpush.bf16.msrb.mxu2 %v6371_v37  ;;  %v8273_v37 = vld [vmem:[#allocation28_spill] sm:$0xff] }
 0xede   :  { %3280 = vmatpush.bf16.msrb.mxu2 %v6382_v52  ;;  %v8274_v52 = vld [vmem:[#allocation29_spill] sm:$0xff] }
 0xf44   :  { %v3142_v12 = vpop.f32.mrf.mxu2 }
 0xf45   :  { %v3146_v14 = vadd.f32 %v3142_v12, %v5892_v23 }
 0xf47   :  { %5494 = vtanh.f32 %v3146_v14 }
 0xf4c   :  { %v3144_v16 = vpop.f32.mrf.mxu2 }
 0xf4d   :  { %v5495_v17 = vpop.eup %5494  ;;  %v8294_v16 = vld [vmem:[#allocation207_spill] sm:$0xff] }
 0xf4e   :  { %v3148_v20 = vpack.c.bf16 %v5495_v17, %v5495_v17  ;;  %v8295_v17 = vld [vmem:[#allocation209_spill] sm:$0xff] }
 0xf50   :  { %3157 = vmatmul.bf16.vlgmr.msrb.gmra.mxu3 %v3148_v20  ;;  %v8296_v20 = vld [vmem:[#allocation211_spill] sm:$0xff] }
 0xf51   :  { %3286 = vmatpush.bf16.msrb.mxu3 %v6593_v51  ;;  %v8275_v51 = vld [vmem:[#allocation30_spill] sm:$0xff] }
 0xf55   :  { %3287 = vmatpush.bf16.msrb.mxu3 %v6635_v57  ;;  %v8277_v57 = vld [vmem:[#allocation32_spill] sm:$0xff] }
 0xf59   :  { %3288 = vmatpush.bf16.msrb.mxu3 %v6641_v30 }
 0xf5d   :  { %3289 = vmatpush.bf16.msrb.mxu3 %v6651_v24 }
 0xf61   :  { %3290 = vmatpush.bf16.msrb.mxu3 %v6663_v48 }
 0xf65   :  { %3291 = vmatpush.bf16.msrb.mxu3 %v6670_v32 }
 0xf69   :  { %3292 = vmatpush.bf16.msrb.mxu3 %v6677_v31  ;;  %v8276_v31 = vld [vmem:[#allocation31_spill] sm:$0xff] }
 0xf6d   :  { %3293 = vmatpush.bf16.msrb.mxu3 %v6686_v47  ;;  %v8280_v47 = vld [vmem:[#allocation61_spill] sm:$0xff] }
 0xfd3   :  { %v3158_v21 = vpop.f32.mrf.mxu3 }
 0xfd4   :  { %v3162_v22 = vadd.f32 %v3158_v21, %v3142_v12  ;;  %v8297_v21 = vld [vmem:[#allocation213_spill] sm:$0xff] }
 0xfd6   :  { %v3163_v42 = vadd.f32 %v3162_v22, %v5909_v29  ;;  %v8298_v22 = vld [vmem:[#allocation215_spill] sm:$0xff] }
 0xfd8   :  { %5496 = vtanh.f32 %v3163_v42  ;;  %v8299_v42 = vld [vmem:[#allocation217_spill] sm:$0xff] }
 0xfdb   :  { %v3160_v46 = vpop.f32.mrf.mxu3 }
 0xfdc   :  { %v8300_v46 = vld [vmem:[#allocation219_spill] sm:$0xff] }
 0xfde   :  { %v5497_v60 = vpop.eup %5496 }
 0xfdf   :  { %v3165_v26 = vperm.slane %v5497_v60, 0  ;;  %v3167_v54 = vpack.c.bf16 %v5497_v60, %v5497_v60  ;;  %v8301_v60 = vld [vmem:[#allocation221_spill] sm:$0xff] }
 0xfe1   :  { %3176 = vmatmul.bf16.vlgmr.msra.gmra.mxu0 %v3167_v54  ;;  %v3166_v59 = vsel %vm439_vm4, %v3165_v26, %v3131_v10 }
 0xfe2   :  { %3299 = vmatpush.bf16.msra.mxu0 %v6006_v53 }
 0xfe6   :  { %3300 = vmatpush.bf16.msra.mxu0 %v6009_v55  ;;  %v8278_v55 = vld [vmem:[#allocation56_spill] sm:$0xff] }
 0xfea   :  { %3301 = vmatpush.bf16.msra.mxu0 %v6012_v58  ;;  %v8279_v58 = vld [vmem:[#allocation59_spill] sm:$0xff] }
 0xfee   :  { %3302 = vmatpush.bf16.msra.mxu0 %v8273_v37 }
 0xff2   :  { %3303 = vmatpush.bf16.msra.mxu0 %v8274_v52 }
 0xff6   :  { %3304 = vmatpush.bf16.msra.mxu0 %v8275_v51 }
 0xffa   :  { %3305 = vmatpush.bf16.msra.mxu0 %v8276_v31 }
 0xffe   :  { %3306 = vmatpush.bf16.msra.mxu0 %v8277_v57 }
0x105e   :  { %v3177_v30 = vpop.f32.mrf.mxu0 }
0x105f   :  { %v3181_v24 = vadd.f32 %v3177_v30, %v5892_v23 }
0x1061   :  { %5498 = vtanh.f32 %v3181_v24  ;;  %v8303_v24 = vld [vmem:[#allocation34_spill] sm:$0xff] }
0x1066   :  { %v3179_v48 = vpop.f32.mrf.mxu0 }
0x1067   :  { %v5499_v53 = vpop.eup %5498  ;;  %v8304_v48 = vld [vmem:[#allocation35_spill] sm:$0xff] }
0x1068   :  { %v3183_v32 = vpack.c.bf16 %v5499_v53, %v5499_v53  ;;  %v8305_v53 = vld [vmem:[#allocation36_spill] sm:$0xff] }
0x106a   :  { %3192 = vmatmul.bf16.vlgmr.msra.gmra.mxu1 %v3183_v32  ;;  %v8306_v32 = vld [vmem:[#allocation37_spill] sm:$0xff] }
0x106b   :  { %3312 = vmatpush.bf16.msra.mxu1 %v8278_v55  ;;  %v8307_v55 = vld [vmem:[#allocation38_spill] sm:$0xff] }
0x106f   :  { %3313 = vmatpush.bf16.msra.mxu1 %v8279_v58  ;;  %v8308_v58 = vld [vmem:[#allocation39_spill] sm:$0xff] }
0x1073   :  { %3314 = vmatpush.bf16.msra.mxu1 %v8280_v47  ;;  %v8309_v47 = vld [vmem:[#allocation40_spill] sm:$0xff] }
0x1077   :  { %3315 = vmatpush.bf16.msra.mxu1 %v8281_v62 }
0x107b   :  { %3316 = vmatpush.bf16.msra.mxu1 %v8282_v35 }
0x107f   :  { %3317 = vmatpush.bf16.msra.mxu1 %v8283_v40 }
0x1083   :  { %3318 = vmatpush.bf16.msra.mxu1 %v8284_v28 }
0x1087   :  { %3319 = vmatpush.bf16.msra.mxu1 %v8285_v49 }
0x10e7   :  { %v3193_v25 = vpop.f32.mrf.mxu1 }
0x10e8   :  { %v3197_v36 = vadd.f32 %v3193_v25, %v3177_v30  ;;  %v8302_v30 = vld [vmem:[#allocation33_spill] sm:$0xff]  ;;  %v8310_v25 = vld [vmem:[#allocation72_spill] sm:$0xff] }
0x10ea   :  { %v3198_v1 = vadd.f32 %v3197_v36, %v5909_v29  ;;  %v8311_v36 = vld [vmem:[#allocation75_spill] sm:$0xff] }
0x10ec   :  { %5500 = vtanh.f32 %v3198_v1  ;;  %v8312_v1 = vld [vmem:[#allocation77_spill] sm:$0xff] }
0x10ef   :  { %v3195_v33 = vpop.f32.mrf.mxu1 }
0x10f0   :  { %v8313_v33 = vld [vmem:[#allocation79_spill] sm:$0xff] }
0x10f2   :  { %v5501_v34 = vpop.eup %5500 }
0x10f3   :  { %v3200_v38 = vperm.slane %v5501_v34, 0  ;;  %v3202_v50 = vpack.c.bf16 %v5501_v34, %v5501_v34  ;;  %v8314_v34 = vld [vmem:[#allocation81_spill] sm:$0xff] }
0x10f5   :  { %3211 = vmatmul.bf16.vlgmr.msra.gmra.mxu2 %v3202_v50  ;;  %v3201_v3 = vsel %vm475_vm5, %v3200_v38, %v3166_v59  ;;  %v8315_v38 = vld [vmem:[#allocation83_spill] sm:$0xff]  ;;  %v8316_v50 = vld [vmem:[#allocation85_spill] sm:$0xff] }
0x10f6   :  { %3325 = vmatpush.bf16.msra.mxu2 %v8286_v19 }
0x10fa   :  { %3326 = vmatpush.bf16.msra.mxu2 %v8287_v5 }
0x10fe   :  { %3327 = vmatpush.bf16.msra.mxu2 %v8288_v44 }
0x1102   :  { %3328 = vmatpush.bf16.msra.mxu2 %v8289_v6 }
0x1106   :  { %3329 = vmatpush.bf16.msra.mxu2 %v8290_v9 }
0x110a   :  { %3330 = vmatpush.bf16.msra.mxu2 %v8291_v11 }
0x110e   :  { %3331 = vmatpush.bf16.msra.mxu2 %v8292_v7 }
0x1112   :  { %3332 = vmatpush.bf16.msra.mxu2 %v8293_v13  ;;  %v8318_v13 = vld [vmem:[#allocation153_spill] sm:$0xff] }
0x1178   :  { %v3212_v8 = vpop.f32.mrf.mxu2 }
0x1179   :  { %v3216_v15 = vadd.f32 %v3212_v8, %v5892_v23 }
0x117b   :  { %5502 = vtanh.f32 %v3216_v15  ;;  %v8321_v15 = vld [vmem:[#allocation88_spill] sm:$0xff] }
0x1180   :  { %v3214_v10 = vpop.f32.mrf.mxu2 }
0x1181   :  { %v5503_v12 = vpop.eup %5502  ;;  %v8323_v10 = vld [vmem:[#allocation225_spill] sm:$0xff] }
0x1182   :  { %v3218_v14 = vpack.c.bf16 %v5503_v12, %v5503_v12  ;;  %v8324_v12 = vld [vmem:[#allocation42_spill] sm:$0xff] }
0x1184   :  { %3227 = vmatmul.bf16.vlgmr.msra.gmra.mxu3 %v3218_v14  ;;  %v8325_v14 = vld [vmem:[#allocation91_spill] sm:$0xff] }
0x1185   :  { %3338 = vmatpush.bf16.msra.mxu3 %v8294_v16  ;;  %v8326_v16 = vld [vmem:[#allocation157_spill] sm:$0xff] }
0x1189   :  { %3339 = vmatpush.bf16.msra.mxu3 %v8295_v17  ;;  %v8327_v17 = vld [vmem:[#allocation227_spill] sm:$0xff] }
0x118d   :  { %3340 = vmatpush.bf16.msra.mxu3 %v8296_v20  ;;  %v8328_v20 = vld [vmem:[#allocation43_spill] sm:$0xff] }
0x1191   :  { %3341 = vmatpush.bf16.msra.mxu3 %v8297_v21  ;;  %v8329_v21 = vld [vmem:[#allocation93_spill] sm:$0xff] }
0x1195   :  { %3342 = vmatpush.bf16.msra.mxu3 %v8298_v22  ;;  %v8330_v22 = vld [vmem:[#allocation159_spill] sm:$0xff] }
0x1199   :  { %3343 = vmatpush.bf16.msra.mxu3 %v8299_v42  ;;  %v8331_v42 = vld [vmem:[#allocation229_spill] sm:$0xff] }
0x119d   :  { %3344 = vmatpush.bf16.msra.mxu3 %v8300_v46  ;;  %v8332_v46 = vld [vmem:[#allocation44_spill] sm:$0xff] }
0x11a1   :  { %3345 = vmatpush.bf16.msra.mxu3 %v8301_v60  ;;  %v8333_v60 = vld [vmem:[#allocation95_spill] sm:$0xff] }
0x1207   :  { %v3228_v26 = vpop.f32.mrf.mxu3 }
0x1208   :  { %v3232_v54 = vadd.f32 %v3228_v26, %v3212_v8  ;;  %v8320_v8 = vld [vmem:[#allocation41_spill] sm:$0xff] }
0x1209   :  { %v8334_v26 = vld [vmem:[#allocation161_spill] sm:$0xff] }
0x120a   :  { %v3233_v59 = vadd.f32 %v3232_v54, %v5909_v29  ;;  %v8335_v54 = vld [vmem:[#allocation231_spill] sm:$0xff] }
0x120c   :  { %5504 = vtanh.f32 %v3233_v59  ;;  %v8336_v59 = vld [vmem:[#allocation45_spill] sm:$0xff] }
0x120f   :  { %v3230_v37 = vpop.f32.mrf.mxu3 }
0x1210   :  { %v8337_v37 = vld [vmem:[#allocation97_spill] sm:$0xff] }
0x1212   :  { %v5505_v52 = vpop.eup %5504 }
0x1213   :  { %v3237_v51 = vpack.c.bf16 %v5505_v52, %v5505_v52  ;;  %v3235_v31 = vperm.slane %v5505_v52, 0  ;;  %v8338_v52 = vld [vmem:[#allocation163_spill] sm:$0xff] }
0x1215   :  { %3246 = vmatmul.bf16.vlgmr.msrb.gmra.mxu0 %v3237_v51  ;;  %v3236_v57 = vsel %vm511_vm6, %v3235_v31, %v3201_v3  ;;  %v8339_v51 = vld [vmem:[#allocation233_spill] sm:$0xff]  ;;  %v8340_v31 = vld [vmem:[#allocation46_spill] sm:$0xff] }
0x1216   :  { %3351 = vmatpush.bf16.msrb.mxu0 %v8302_v30  ;;  %v8342_v30 = vld [vmem:[#allocation165_spill] sm:$0xff] }
0x121a   :  { %3352 = vmatpush.bf16.msrb.mxu0 %v8303_v24  ;;  %v8343_v24 = vld [vmem:[#allocation235_spill] sm:$0xff] }
0x121e   :  { %3353 = vmatpush.bf16.msrb.mxu0 %v8304_v48  ;;  %v8344_v48 = vld [vmem:[#allocation47_spill] sm:$0xff] }
0x1222   :  { %3354 = vmatpush.bf16.msrb.mxu0 %v8305_v53  ;;  %v8345_v53 = vld [vmem:[#allocation101_spill] sm:$0xff] }
0x1226   :  { %3355 = vmatpush.bf16.msrb.mxu0 %v8306_v32  ;;  %v8346_v32 = vld [vmem:[#allocation167_spill] sm:$0xff] }
0x122a   :  { %3356 = vmatpush.bf16.msrb.mxu0 %v8307_v55  ;;  %v8347_v55 = vld [vmem:[#allocation237_spill] sm:$0xff] }
0x122e   :  { %3357 = vmatpush.bf16.msrb.mxu0 %v8308_v58  ;;  %v8348_v58 = vld [vmem:[#allocation48_spill] sm:$0xff] }
0x1232   :  { %3358 = vmatpush.bf16.msrb.mxu0 %v8309_v47  ;;  %v8349_v47 = vld [vmem:[#allocation103_spill] sm:$0xff] }
0x1292   :  { %v3247_v62 = vpop.f32.mrf.mxu0 }
0x1293   :  { %v3251_v35 = vadd.f32 %v3247_v62, %v5892_v23  ;;  %v8317_v23 = vld [vmem:[#allocation87_spill] sm:$0xff] }
0x1295   :  { %5506 = vtanh.f32 %v3251_v35  ;;  %v8351_v35 = vld [vmem:[#allocation239_spill] sm:$0xff] }
0x129a   :  { %v3249_v40 = vpop.f32.mrf.mxu0 }
0x129b   :  { %v5507_v28 = vpop.eup %5506  ;;  %v8352_v40 = vld [vmem:[#allocation49_spill] sm:$0xff] }
0x129c   :  { %v3253_v49 = vpack.c.bf16 %v5507_v28, %v5507_v28  ;;  %v8353_v28 = vld [vmem:[#allocation104_spill] sm:$0xff] }
0x129e   :  { %3262 = vmatmul.bf16.vlgmr.msrb.gmra.mxu1 %v3253_v49  ;;  %v8354_v49 = vld [vmem:[#allocation171_spill] sm:$0xff] }
0x129f   :  { %3364 = vmatpush.bf16.msrb.mxu1 %v8310_v25  ;;  %v8355_v25 = vld [vmem:[#allocation241_spill] sm:$0xff] }
0x12a3   :  { %3365 = vmatpush.bf16.msrb.mxu1 %v8311_v36  ;;  %v8356_v36 = vld [vmem:[#allocation50_spill] sm:$0xff] }
0x12a7   :  { %3366 = vmatpush.bf16.msrb.mxu1 %v8312_v1  ;;  %v8357_v1 = vld [vmem:[#allocation107_spill] sm:$0xff] }
0x12ab   :  { %3367 = vmatpush.bf16.msrb.mxu1 %v8313_v33  ;;  %v8358_v33 = vld [vmem:[#allocation173_spill] sm:$0xff] }
0x12af   :  { %3368 = vmatpush.bf16.msrb.mxu1 %v8314_v34  ;;  %v8359_v34 = vld [vmem:[#allocation243_spill] sm:$0xff] }
0x12b3   :  { %3369 = vmatpush.bf16.msrb.mxu1 %v8315_v38  ;;  %v8360_v38 = vld [vmem:[#allocation51_spill] sm:$0xff] }
0x12b7   :  { %3370 = vmatpush.bf16.msrb.mxu1 %v8316_v50  ;;  %v8361_v50 = vld [vmem:[#allocation109_spill] sm:$0xff] }
0x12bb   :  { %3371 = vmatpush.bf16.msrb.mxu1 %v8317_v23  ;;  %v8362_v23 = vld [vmem:[#allocation175_spill] sm:$0xff] }
0x131b   :  { %v3263_v3 = vpop.f32.mrf.mxu1 }
0x131c   :  { %v3267_v19 = vadd.f32 %v3263_v3, %v3247_v62  ;;  %v8350_v62 = vld [vmem:[#allocation169_spill] sm:$0xff] }
0x131d   :  { %v8363_v3 = vld [vmem:[#allocation245_spill] sm:$0xff] }
0x131e   :  { %v3268_v5 = vadd.f32 %v3267_v19, %v5909_v29  ;;  %v8319_v29 = vld [vmem:[#allocation223_spill] sm:$0xff]  ;;  %v8364_v19 = vld [vmem:[#allocation52_spill] sm:$0xff] }
0x1320   :  { %5508 = vtanh.f32 %v3268_v5  ;;  %v8365_v5 = vld [vmem:[#allocation111_spill] sm:$0xff] }
0x1323   :  { %v3265_v44 = vpop.f32.mrf.mxu1 }
0x1324   :  { %v8366_v44 = vld [vmem:[#allocation177_spill] sm:$0xff] }
0x1326   :  { %v5509_v6 = vpop.eup %5508 }
0x1327   :  { %v3270_v9 = vperm.slane %v5509_v6, 0  ;;  %v8367_v6 = vld [vmem:[#allocation247_spill] sm:$0xff] }
0x1329   :  { %v3271_v11 = vsel %vm547_vm7, %v3270_v9, %v3236_v57  ;;  %v8341_v57 = vld [vmem:[#allocation99_spill] sm:$0xff]  ;;  %v8368_v9 = vld [vmem:[#allocation53_spill] sm:$0xff] }
0x132a   :  { %v7307_v7 = vpack.c.bf16 %v3271_v11, %v3271_v11  ;;  %v8369_v11 = vld [vmem:[#allocation113_spill] sm:$0xff] }
0x132c   :  { %3281 = vmatmul.bf16.vlgmr.msrb.gmra.mxu2 %v7307_v7  ;;  %3294 = vmatmul.bf16.vlgmr.msrb.gmra.mxu3 %v7307_v7 }
0x132d   :  { %3307 = vmatmul.bf16.vlgmr.msra.gmra.mxu0 %v7307_v7  ;;  %3320 = vmatmul.bf16.vlgmr.msra.gmra.mxu1 %v7307_v7 }
0x132e   :  { %3377 = vmatpush.bf16.msrb.mxu2 %v8318_v13  ;;  %3390 = vmatpush.bf16.msrb.mxu3 %v8319_v29  ;;  %v8370_v13 = vld [vmem:[#allocation179_spill] sm:$0xff]  ;;  %v8371_v29 = vld [vmem:[#allocation249_spill] sm:$0xff] }
0x132f   :  { %3403 = vmatpush.bf16.msra.mxu0 %v8320_v8  ;;  %3416 = vmatpush.bf16.msra.mxu1 %v8321_v15  ;;  %v8372_v8 = vld [vmem:[#allocation54_spill] sm:$0xff]  ;;  %v8373_v15 = vld [vmem:[#allocation115_spill] sm:$0xff] }
0x1332   :  { %3378 = vmatpush.bf16.msrb.mxu2 %v8322_v45  ;;  %3391 = vmatpush.bf16.msrb.mxu3 %v8323_v10  ;;  %v8374_v45 = vld [vmem:[#allocation181_spill] sm:$0xff]  ;;  %v8375_v10 = vld [vmem:[#allocation251_spill] sm:$0xff] }
0x1333   :  { %3404 = vmatpush.bf16.msra.mxu0 %v8324_v12  ;;  %3417 = vmatpush.bf16.msra.mxu1 %v8325_v14  ;;  %v8376_v12 = vld [vmem:[#allocation55_spill] sm:$0xff]  ;;  %v8377_v14 = vld [vmem:[#allocation117_spill] sm:$0xff] }
0x1336   :  { %3379 = vmatpush.bf16.msrb.mxu2 %v8326_v16  ;;  %3392 = vmatpush.bf16.msrb.mxu3 %v8327_v17  ;;  %v8378_v16 = vld [vmem:[#allocation183_spill] sm:$0xff]  ;;  %v8379_v17 = vld [vmem:[#allocation57_spill] sm:$0xff] }
0x1337   :  { %3405 = vmatpush.bf16.msra.mxu0 %v8328_v20  ;;  %3418 = vmatpush.bf16.msra.mxu1 %v8329_v21  ;;  %v8380_v20 = vld [vmem:[#allocation119_spill] sm:$0xff]  ;;  %v8381_v21 = vld [vmem:[#allocation185_spill] sm:$0xff] }
0x133a   :  { %3380 = vmatpush.bf16.msrb.mxu2 %v8330_v22  ;;  %3393 = vmatpush.bf16.msrb.mxu3 %v8331_v42  ;;  %v8382_v22 = vld [vmem:[#allocation254_spill] sm:$0xff] }
0x133b   :  { %3406 = vmatpush.bf16.msra.mxu0 %v8332_v46  ;;  %3419 = vmatpush.bf16.msra.mxu1 %v8333_v60  ;;  %v8383_v42 = vld [vmem:[#allocation58_spill] sm:$0xff]  ;;  %v8384_v46 = vld [vmem:[#allocation120_spill] sm:$0xff] }
0x133c   :  { %3333 = vmatmul.bf16.vlgmr.msra.gmra.mxu2 %v7307_v7  ;;  %3346 = vmatmul.bf16.vlgmr.msra.gmra.mxu3 %v7307_v7  ;;  %v8386_v60 = vld [vmem:[#allocation256_spill] sm:$0xff] }
0x133d   :  { %3359 = vmatmul.bf16.vlgmr.msrb.gmra.mxu0 %v7307_v7  ;;  %3372 = vmatmul.bf16.vlgmr.msrb.gmra.mxu1 %v7307_v7 }
0x133e   :  { %3381 = vmatpush.bf16.msrb.mxu2 %v8334_v26  ;;  %3394 = vmatpush.bf16.msrb.mxu3 %v8335_v54  ;;  %v8387_v26 = vld [vmem:[#allocation60_spill] sm:$0xff]  ;;  %v8388_v54 = vld [vmem:[#allocation123_spill] sm:$0xff] }
0x133f   :  { %3407 = vmatpush.bf16.msra.mxu0 %v8336_v59  ;;  %3420 = vmatpush.bf16.msra.mxu1 %v8337_v37  ;;  %v8389_v59 = vld [vmem:[#allocation189_spill] sm:$0xff]  ;;  %v8390_v37 = vld [vmem:[#allocation258_spill] sm:$0xff] }
0x1342   :  { %3382 = vmatpush.bf16.msrb.mxu2 %v8338_v52  ;;  %3395 = vmatpush.bf16.msrb.mxu3 %v8339_v51  ;;  %v8391_v52 = vld [vmem:[#allocation62_spill] sm:$0xff]  ;;  %v8392_v51 = vld [vmem:[#allocation125_spill] sm:$0xff] }
0x1343   :  { %3408 = vmatpush.bf16.msra.mxu0 %v8340_v31  ;;  %3421 = vmatpush.bf16.msra.mxu1 %v8341_v57  ;;  %v8393_v31 = vld [vmem:[#allocation191_spill] sm:$0xff]  ;;  %v8394_v57 = vld [vmem:[#allocation260_spill] sm:$0xff] }
0x1346   :  { %3383 = vmatpush.bf16.msrb.mxu2 %v8342_v30  ;;  %3396 = vmatpush.bf16.msrb.mxu3 %v8343_v24  ;;  %v8395_v30 = vld [vmem:[#allocation64_spill] sm:$0xff]  ;;  %v8396_v24 = vld [vmem:[#allocation127_spill] sm:$0xff] }
0x1347   :  { %3409 = vmatpush.bf16.msra.mxu0 %v8344_v48  ;;  %3422 = vmatpush.bf16.msra.mxu1 %v8345_v53  ;;  %v8397_v48 = vld [vmem:[#allocation193_spill] sm:$0xff]  ;;  %v8398_v53 = vld [vmem:[#allocation262_spill] sm:$0xff] }
0x134a   :  { %3384 = vmatpush.bf16.msrb.mxu2 %v8346_v32  ;;  %3397 = vmatpush.bf16.msrb.mxu3 %v8347_v55  ;;  %v8399_v32 = vld [vmem:[#allocation66_spill] sm:$0xff]  ;;  %v8400_v55 = vld [vmem:[#allocation129_spill] sm:$0xff] }
0x134b   :  { %3410 = vmatpush.bf16.msra.mxu0 %v8348_v58  ;;  %3423 = vmatpush.bf16.msra.mxu1 %v8349_v47  ;;  %v8401_v58 = vld [vmem:[#allocation195_spill] sm:$0xff]  ;;  %v8402_v47 = vld [vmem:[#allocation264_spill] sm:$0xff] }
0x134d   :  { %3385 = vmatmul.bf16.vlgmr.msrb.gmra.mxu2 %v7307_v7  ;;  %3398 = vmatmul.bf16.vlgmr.msrb.gmra.mxu3 %v7307_v7 }
0x134e   :  { %3429 = vmatpush.bf16.msra.mxu2 %v8350_v62  ;;  %3442 = vmatpush.bf16.msra.mxu3 %v8351_v35  ;;  %v8403_v62 = vld [vmem:[#allocation68_spill] sm:$0xff]  ;;  %v8404_v35 = vld [vmem:[#allocation131_spill] sm:$0xff] }
0x134f   :  { %3455 = vmatpush.bf16.msrb.mxu0 %v8352_v40  ;;  %3468 = vmatpush.bf16.msrb.mxu1 %v8353_v28  ;;  %v8405_v40 = vld [vmem:[#allocation197_spill] sm:$0xff]  ;;  %v8406_v28 = vld [vmem:[#allocation70_spill] sm:$0xff] }
0x1350   :  { %3411 = vmatmul.bf16.vlgmr.msra.gmra.mxu0 %v7307_v7  ;;  %3424 = vmatmul.bf16.vlgmr.msra.gmra.mxu1 %v7307_v7 }
0x1352   :  { %3430 = vmatpush.bf16.msra.mxu2 %v8354_v49  ;;  %3443 = vmatpush.bf16.msra.mxu3 %v8355_v25  ;;  %v8407_v49 = vld [vmem:[#allocation133_spill] sm:$0xff]  ;;  %v8408_v25 = vld [vmem:[#allocation199_spill] sm:$0xff] }
0x1353   :  { %3456 = vmatpush.bf16.msrb.mxu0 %v8356_v36  ;;  %3469 = vmatpush.bf16.msrb.mxu1 %v8357_v1  ;;  %v8409_v36 = vld [vmem:[#allocation73_spill] sm:$0xff]  ;;  %v8410_v1 = vld [vmem:[#allocation135_spill] sm:$0xff] }
0x1356   :  { %3431 = vmatpush.bf16.msra.mxu2 %v8358_v33  ;;  %3444 = vmatpush.bf16.msra.mxu3 %v8359_v34  ;;  %v8411_v33 = vld [vmem:[#allocation201_spill] sm:$0xff]  ;;  %v8412_v34 = vld [vmem:[#allocation74_spill] sm:$0xff] }
0x1357   :  { %3457 = vmatpush.bf16.msrb.mxu0 %v8360_v38  ;;  %3470 = vmatpush.bf16.msrb.mxu1 %v8361_v50  ;;  %v8413_v38 = vld [vmem:[#allocation137_spill] sm:$0xff]  ;;  %v8416_v50 = vld [vmem:[#allocation76_spill] sm:$0xff] }
0x135a   :  { %3432 = vmatpush.bf16.msra.mxu2 %v8362_v23  ;;  %3445 = vmatpush.bf16.msra.mxu3 %v8363_v3  ;;  %v8417_v23 = vld [vmem:[#allocation140_spill] sm:$0xff]  ;;  %v8419_v3 = vld [vmem:[#allocation271_spill] sm:$0xff] }
0x135b   :  { %3458 = vmatpush.bf16.msrb.mxu0 %v8364_v19  ;;  %3471 = vmatpush.bf16.msrb.mxu1 %v8365_v5  ;;  %v8420_v19 = vld [vmem:[#allocation78_spill] sm:$0xff] }
0x135c   :  { %v8421_v5 = vld [vmem:[#allocation142_spill] sm:$0xff] }
0x135e   :  { %3433 = vmatpush.bf16.msra.mxu2 %v8366_v44  ;;  %3446 = vmatpush.bf16.msra.mxu3 %v8367_v6  ;;  %v8422_v44 = vld [vmem:[#allocation204_spill] sm:$0xff] }
0x135f   :  { %3459 = vmatpush.bf16.msrb.mxu0 %v8368_v9  ;;  %3472 = vmatpush.bf16.msrb.mxu1 %v8369_v11  ;;  %v8423_v6 = vld [vmem:[#allocation272_spill] sm:$0xff] }
0x1360   :  { %v8424_v9 = vld [vmem:[#allocation80_spill] sm:$0xff] }
0x1361   :  { %v8425_v11 = vld [vmem:[#allocation144_spill] sm:$0xff] }
0x1362   :  { %3434 = vmatpush.bf16.msra.mxu2 %v8370_v13  ;;  %3447 = vmatpush.bf16.msra.mxu3 %v8371_v29  ;;  %v8426_v13 = vld [vmem:[#allocation205_spill] sm:$0xff] }
0x1363   :  { %3460 = vmatpush.bf16.msrb.mxu0 %v8372_v8  ;;  %3473 = vmatpush.bf16.msrb.mxu1 %v8373_v15  ;;  %v8427_v29 = vld [vmem:[#allocation273_spill] sm:$0xff]  ;;  %v8428_v8 = vld [vmem:[#allocation82_spill] sm:$0xff] }
0x1364   :  { %v8429_v15 = vld [vmem:[#allocation146_spill] sm:$0xff] }
0x1366   :  { %3435 = vmatpush.bf16.msra.mxu2 %v8374_v45  ;;  %3448 = vmatpush.bf16.msra.mxu3 %v8375_v10  ;;  %v8430_v45 = vld [vmem:[#allocation206_spill] sm:$0xff] }
0x1367   :  { %3461 = vmatpush.bf16.msrb.mxu0 %v8376_v12  ;;  %3474 = vmatpush.bf16.msrb.mxu1 %v8377_v14  ;;  %v8431_v10 = vld [vmem:[#allocation274_spill] sm:$0xff]  ;;  %v8432_v12 = vld [vmem:[#allocation84_spill] sm:$0xff] }
0x1368   :  { %v8433_v14 = vld [vmem:[#allocation148_spill] sm:$0xff] }
0x136a   :  { %3436 = vmatpush.bf16.msra.mxu2 %v8378_v16  ;;  %3449 = vmatpush.bf16.msra.mxu3 %v6882_v27  ;;  %v8385_v27 = vld [vmem:[#allocation187_spill] sm:$0xff]  ;;  %v8434_v16 = vld [vmem:[#allocation208_spill] sm:$0xff] }
0x136b   :  { %3462 = vmatpush.bf16.msrb.mxu0 %v8379_v17  ;;  %3475 = vmatpush.bf16.msrb.mxu1 %v8380_v20  ;;  %v8435_v17 = vld [vmem:[#allocation275_spill] sm:$0xff]  ;;  %v8436_v20 = vld [vmem:[#allocation86_spill] sm:$0xff] }
0x136d   :  { %3437 = vmatmul.bf16.vlgmr.msra.gmra.mxu2 %v7307_v7  ;;  %3450 = vmatmul.bf16.vlgmr.msra.gmra.mxu3 %v7307_v7 }
0x136e   :  { %3481 = vmatpush.bf16.msrb.mxu2 %v8381_v21  ;;  %3494 = vmatpush.bf16.msrb.mxu3 %v8382_v22  ;;  %v8437_v21 = vld [vmem:[#allocation150_spill] sm:$0xff] }
0x136f   :  { %3507 = vmatpush.bf16.msra.mxu0 %v8383_v42  ;;  %3520 = vmatpush.bf16.msra.mxu1 %v8384_v46  ;;  %v8438_v22 = vld [vmem:[#allocation210_spill] sm:$0xff]  ;;  %v8439_v42 = vld [vmem:[#allocation276_spill] sm:$0xff]  ;;  %v8440_v46 = vld [vmem:[#allocation89_spill] sm:$0xff] }
0x1370   :  { %3463 = vmatmul.bf16.vlgmr.msrb.gmra.mxu0 %v7307_v7  ;;  %3476 = vmatmul.bf16.vlgmr.msrb.gmra.mxu1 %v7307_v7 }
0x1372   :  { %3482 = vmatpush.bf16.msrb.mxu2 %v8385_v27  ;;  %3495 = vmatpush.bf16.msrb.mxu3 %v8386_v60  ;;  %v8441_v27 = vld [vmem:[#allocation152_spill] sm:$0xff] }
0x1373   :  { %3508 = vmatpush.bf16.msra.mxu0 %v8387_v26  ;;  %3521 = vmatpush.bf16.msra.mxu1 %v8388_v54  ;;  %v8442_v60 = vld [vmem:[#allocation212_spill] sm:$0xff]  ;;  %v8443_v26 = vld [vmem:[#allocation277_spill] sm:$0xff]  ;;  %v8444_v54 = vld [vmem:[#allocation90_spill] sm:$0xff] }
0x1376   :  { %3483 = vmatpush.bf16.msrb.mxu2 %v8389_v59  ;;  %3496 = vmatpush.bf16.msrb.mxu3 %v8390_v37  ;;  %v8445_v59 = vld [vmem:[#allocation154_spill] sm:$0xff] }
0x1377   :  { %3509 = vmatpush.bf16.msra.mxu0 %v8391_v52  ;;  %3522 = vmatpush.bf16.msra.mxu1 %v8392_v51  ;;  %v8446_v37 = vld [vmem:[#allocation214_spill] sm:$0xff] }
0x1378   :  { %v8447_v52 = vld [vmem:[#allocation278_spill] sm:$0xff] }
0x137a   :  { %3484 = vmatpush.bf16.msrb.mxu2 %v8393_v31  ;;  %3497 = vmatpush.bf16.msrb.mxu3 %v8394_v57  ;;  %v8448_v57 = vld [vmem:[#allocation92_spill] sm:$0xff] }
0x137b   :  { %3510 = vmatpush.bf16.msra.mxu0 %v8395_v30  ;;  %3523 = vmatpush.bf16.msra.mxu1 %v8396_v24  ;;  %v8449_v30 = vld [vmem:[#allocation156_spill] sm:$0xff]  ;;  %v8450_v24 = vperm.slane %v5784_v0, 2 }
0x137e   :  { %3485 = vmatpush.bf16.msrb.mxu2 %v8397_v48  ;;  %3498 = vmatpush.bf16.msrb.mxu3 %v8398_v53  ;;  %v8451_v53 = vperm.slane %v5784_v0, 3 }
0x137f   :  { %3511 = vmatpush.bf16.msra.mxu0 %v8399_v32  ;;  %3524 = vmatpush.bf16.msra.mxu1 %v8400_v55  ;;  %v8452_v55 = vld [vmem:[#allocation216_spill] sm:$0xff] }
0x1382   :  { %3486 = vmatpush.bf16.msrb.mxu2 %v8401_v58  ;;  %3499 = vmatpush.bf16.msrb.mxu3 %v8402_v47  ;;  %v8453_v58 = vld [vmem:[#allocation279_spill] sm:$0xff]  ;;  %v8454_v47 = vld [vmem:[#allocation94_spill] sm:$0xff] }
0x1383   :  { %3512 = vmatpush.bf16.msra.mxu0 %v8403_v62  ;;  %3525 = vmatpush.bf16.msra.mxu1 %v8404_v35  ;;  %v8455_v62 = vld [vmem:[#allocation158_spill] sm:$0xff] }
0x1386   :  { %3487 = vmatpush.bf16.msrb.mxu2 %v8405_v40  ;;  %3500 = vmatpush.bf16.msrb.mxu3 %v6930_v56  ;;  %v8415_v56 = vld [vmem:[#allocation269_spill] sm:$0xff] }
0x1387   :  { %3513 = vmatpush.bf16.msra.mxu0 %v8406_v28  ;;  %3526 = vmatpush.bf16.msra.mxu1 %v8407_v49  ;;  %v8456_v28 = vperm.slane %v5784_v0, 0 }
0x138a   :  { %3488 = vmatpush.bf16.msrb.mxu2 %v8408_v25  ;;  %3501 = vmatpush.bf16.msrb.mxu3 %v6938_v41  ;;  %v8414_v41 = vld [vmem:[#allocation202_spill] sm:$0xff]  ;;  %v8457_v25 = vperm.slane %v5784_v0, 1 }
0x138b   :  { %3514 = vmatpush.bf16.msra.mxu0 %v8409_v36  ;;  %3527 = vmatpush.bf16.msra.mxu1 %v8410_v1  ;;  %v8458_v1 = vld [vmem:[#allocation218_spill] sm:$0xff] }
0x138d   :  { %3489 = vmatmul.bf16.vlgmr.msrb.gmra.mxu2 %v7307_v7  ;;  %3502 = vmatmul.bf16.vlgmr.msrb.gmra.mxu3 %v7307_v7 }
0x138e   :  { %3533 = vmatpush.bf16.msra.mxu2 %v8411_v33  ;;  %3546 = vmatpush.bf16.msra.mxu3 %v6944_v39  ;;  %v8418_v39 = vld [vmem:[#allocation203_spill] sm:$0xff]  ;;  %v8459_v33 = vld [vmem:[#allocation280_spill] sm:$0xff] }
0x138f   :  { %3559 = vmatpush.bf16.msrb.mxu0 %v8412_v34  ;;  %3572 = vmatpush.bf16.msrb.mxu1 %v8413_v38 }
0x1390   :  { %3515 = vmatmul.bf16.vlgmr.msra.gmra.mxu0 %v7307_v7  ;;  %3528 = vmatmul.bf16.vlgmr.msra.gmra.mxu1 %v7307_v7 }
0x1392   :  { %3534 = vmatpush.bf16.msra.mxu2 %v8414_v41  ;;  %3547 = vmatpush.bf16.msra.mxu3 %v8415_v56  ;;  %v8460_v41 = vld [vmem:[#allocation96_spill] sm:$0xff] }
0x1393   :  { %3560 = vmatpush.bf16.msrb.mxu0 %v8416_v50  ;;  %3573 = vmatpush.bf16.msrb.mxu1 %v8417_v23  ;;  %v8461_v56 = vld [vmem:[#allocation160_spill] sm:$0xff]  ;;  %v8463_v23 = vld [vmem:[#allocation281_spill] sm:$0xff] }
0x1394   :  { %v8462_v50 = vld [vmem:[#allocation220_spill] sm:$0xff] }
0x1396   :  { %3535 = vmatpush.bf16.msra.mxu2 %v8418_v39  ;;  %3548 = vmatpush.bf16.msra.mxu3 %v8419_v3  ;;  %v8464_v39 = vld [vmem:[#allocation98_spill] sm:$0xff] }
0x1397   :  { %3561 = vmatpush.bf16.msrb.mxu0 %v8420_v19  ;;  %3574 = vmatpush.bf16.msrb.mxu1 %v8421_v5  ;;  %v8465_v3 = vld [vmem:[#allocation162_spill] sm:$0xff] }
0x139a   :  { %3536 = vmatpush.bf16.msra.mxu2 %v8422_v44  ;;  %3549 = vmatpush.bf16.msra.mxu3 %v8423_v6  ;;  %v8466_v44 = vld [vmem:[#allocation222_spill] sm:$0xff] }
0x139b   :  { %3562 = vmatpush.bf16.msrb.mxu0 %v8424_v9  ;;  %3575 = vmatpush.bf16.msrb.mxu1 %v8425_v11  ;;  %v8467_v6 = vld [vmem:[#allocation282_spill] sm:$0xff] }
0x139e   :  { %3537 = vmatpush.bf16.msra.mxu2 %v8426_v13  ;;  %3550 = vmatpush.bf16.msra.mxu3 %v8427_v29  ;;  %v8468_v13 = vld [vmem:[#allocation100_spill] sm:$0xff] }
0x139f   :  { %3563 = vmatpush.bf16.msrb.mxu0 %v8428_v8  ;;  %3576 = vmatpush.bf16.msrb.mxu1 %v8429_v15  ;;  %v8469_v29 = vld [vmem:[#allocation164_spill] sm:$0xff]  ;;  %v8470_v8 = vperm.slane %v5784_v0, 6 }
0x13a2   :  { %3538 = vmatpush.bf16.msra.mxu2 %v8430_v45  ;;  %3551 = vmatpush.bf16.msra.mxu3 %v8431_v10  ;;  %v8471_v45 = vperm.slane %v5784_v0, 7 }
0x13a3   :  { %3564 = vmatpush.bf16.msrb.mxu0 %v8432_v12  ;;  %3577 = vmatpush.bf16.msrb.mxu1 %v8433_v14  ;;  %v8472_v12 = vld [vmem:[#allocation224_spill] sm:$0xff]  ;;  %v8473_v14 = vld [vmem:[#allocation102_spill] sm:$0xff] }
0x13a6   :  { %3539 = vmatpush.bf16.msra.mxu2 %v8434_v16  ;;  %3552 = vmatpush.bf16.msra.mxu3 %v8435_v17  ;;  %v8474_v16 = vld [vmem:[#allocation166_spill] sm:$0xff] }
0x13a7   :  { %3565 = vmatpush.bf16.msrb.mxu0 %v8436_v20  ;;  %3578 = vmatpush.bf16.msrb.mxu1 %v8437_v21  ;;  %v8475_v21 = vperm.slane %v5784_v0, 4 }
0x13aa   :  { %3540 = vmatpush.bf16.msra.mxu2 %v8438_v22  ;;  %3553 = vmatpush.bf16.msra.mxu3 %v8439_v42  ;;  %v3308_v51 = vpop.f32.mrf.mxu0  ;;  %v3321_v31 = vpop.f32.mrf.mxu1  ;;  %v8476_v42 = vperm.slane %v5784_v0, 5  ;;  %v8484_v0 = vld [vmem:[#allocation170_spill] sm:$0xff] }
0x13ab   :  { %3566 = vmatpush.bf16.msrb.mxu0 %v8440_v46  ;;  %3579 = vmatpush.bf16.msrb.mxu1 %v8441_v27  ;;  %v3309_v48 = vadd.f32 %v3308_v51, %v8450_v24  ;;  %v3322_v32 = vadd.f32 %v3321_v31, %v8451_v53  ;;  %v8477_v27 = vld [vmem:[#allocation226_spill] sm:$0xff]  ;;  %v8486_v24 = vld [vmem:[#allocation285_spill] sm:$0xff]  ;;  %v8488_v53 = vld [vmem:[#allocation172_spill] sm:$0xff] }
0x13ac   :  { %v8483_v51 = vld [vmem:[#allocation106_spill] sm:$0xff] }
0x13ad   :  { %3541 = vmatmul.bf16.vlgmr.msra.gmra.mxu2 %v7307_v7  ;;  %3554 = vmatmul.bf16.vlgmr.msra.gmra.mxu3 %v7307_v7  ;;  %3769 = vst [vmem:[#allocation15 + $0x140] sm:$0xff] %v3309_v48  ;;  %v8487_v48 = vld [vmem:[#allocation108_spill] sm:$0xff] }
0x13ae   :  { %3585 = vmatpush.bf16.msrb.mxu2 %v8442_v60  ;;  %3598 = vmatpush.bf16.msrb.mxu3 %v8443_v26  ;;  %3770 = vst [vmem:[#allocation15 + $0x148] sm:$0xff] %v3322_v32  ;;  %v8478_v60 = vld [vmem:[#allocation283_spill] sm:$0xff]  ;;  %v8489_v32 = vld [vmem:[#allocation232_spill] sm:$0xff] }
0x13af   :  { %3611 = vmatpush.bf16.msra.mxu0 %v8444_v54  ;;  %3624 = vmatpush.bf16.msra.mxu1 %v8445_v59  ;;  %v3282_v35 = vpop.f32.mrf.mxu2  ;;  %v3295_v40 = vpop.f32.mrf.mxu3  ;;  %v8479_v54 = vld [vmem:[#allocation105_spill] sm:$0xff]  ;;  %v8480_v59 = vld [vmem:[#allocation168_spill] sm:$0xff] }
0x13b0   :  { %3567 = vmatmul.bf16.vlgmr.msrb.gmra.mxu0 %v7307_v7  ;;  %3580 = vmatmul.bf16.vlgmr.msrb.gmra.mxu1 %v7307_v7  ;;  %v3283_v49 = vadd.f32 %v3282_v35, %v8456_v28  ;;  %v3296_v36 = vadd.f32 %v3295_v40, %v8457_v25  ;;  %v8492_v35 = vld [vmem:[#allocation174_spill] sm:$0xff] }
0x13b1   :  { %v8493_v40 = vld [vmem:[#allocation26_spill] sm:$0xff] }
0x13b2   :  { %3586 = vmatpush.bf16.msrb.mxu2 %v8446_v37  ;;  %3599 = vmatpush.bf16.msrb.mxu3 %v8447_v52  ;;  %3767 = vst [vmem:[#allocation15 + $0x130] sm:$0xff] %v3283_v49  ;;  %v3310_v34 = vpop.f32.mrf.mxu0  ;;  %v3323_v38 = vpop.f32.mrf.mxu1  ;;  %v8481_v37 = vld [vmem:[#allocation228_spill] sm:$0xff]  ;;  %v8494_v28 = vperm.slane %v8493_v40, 2  ;;  %v8495_v25 = vperm.slane %v8493_v40, 3 }
0x13b3   :  { %3612 = vmatpush.bf16.msra.mxu0 %v8448_v57  ;;  %3625 = vmatpush.bf16.msra.mxu1 %v8449_v30  ;;  %3768 = vst [vmem:[#allocation15 + $0x138] sm:$0xff] %v3296_v36  ;;  %v8482_v52 = vld [vmem:[#allocation284_spill] sm:$0xff]  ;;  %v8485_v30 = vld [vmem:[#allocation230_spill] sm:$0xff] }
0x13b4   :  { %v8498_v34 = vld [vmem:[#allocation112_spill] sm:$0xff] }
0x13b5   :  { %v8499_v38 = vld [vmem:[#allocation176_spill] sm:$0xff] }
0x13b6   :  { %3587 = vmatpush.bf16.msrb.mxu2 %v8452_v55  ;;  %3600 = vmatpush.bf16.msrb.mxu3 %v8453_v58  ;;  %v8490_v55 = vld [vmem:[#allocation286_spill] sm:$0xff] }
0x13b7   :  { %3613 = vmatpush.bf16.msra.mxu0 %v8454_v47  ;;  %3626 = vmatpush.bf16.msra.mxu1 %v8455_v62  ;;  %v3284_v19 = vpop.f32.mrf.mxu2  ;;  %v3297_v5 = vpop.f32.mrf.mxu3  ;;  %v8491_v62 = vld [vmem:[#allocation110_spill] sm:$0xff] }
0x13b8   :  { %v8502_v19 = vld [vmem:[#allocation236_spill] sm:$0xff] }
0x13b9   :  { %v8503_v5 = vld [vmem:[#allocation288_spill] sm:$0xff] }
0x13ba   :  { %3588 = vmatpush.bf16.msrb.mxu2 %v8458_v1  ;;  %3601 = vmatpush.bf16.msrb.mxu3 %v8459_v33  ;;  %v3360_v9 = vpop.f32.mrf.mxu0  ;;  %v3373_v11 = vpop.f32.mrf.mxu1  ;;  %v8496_v1 = vld [vmem:[#allocation234_spill] sm:$0xff]  ;;  %v8497_v33 = vld [vmem:[#allocation287_spill] sm:$0xff] }
0x13bb   :  { %3614 = vmatpush.bf16.msra.mxu0 %v8460_v41  ;;  %3627 = vmatpush.bf16.msra.mxu1 %v8461_v56  ;;  %v3361_v15 = vadd.f32 %v3360_v9, %v8470_v8  ;;  %v3374_v10 = vadd.f32 %v3373_v11, %v8471_v45  ;;  %v8504_v9 = vld [vmem:[#allocation114_spill] sm:$0xff]  ;;  %v8508_v8 = vld [vmem:[#allocation116_spill] sm:$0xff] }
0x13bc   :  { %v8505_v11 = vld [vmem:[#allocation178_spill] sm:$0xff] }
0x13bd   :  { %3773 = vst [vmem:[#allocation15 + $0x160] sm:$0xff] %v3361_v15  ;;  %v8509_v15 = vld [vmem:[#allocation180_spill] sm:$0xff] }
0x13be   :  { %3589 = vmatpush.bf16.msrb.mxu2 %v8462_v50  ;;  %3602 = vmatpush.bf16.msrb.mxu3 %v8463_v23  ;;  %3774 = vst [vmem:[#allocation15 + $0x168] sm:$0xff] %v3374_v10  ;;  %v8500_v50 = vperm.slane %v8493_v40, 0 }
0x13bf   :  { %3615 = vmatpush.bf16.msra.mxu0 %v8464_v39  ;;  %3628 = vmatpush.bf16.msra.mxu1 %v8465_v3  ;;  %v3334_v17 = vpop.f32.mrf.mxu2  ;;  %v3347_v20 = vpop.f32.mrf.mxu3  ;;  %v8501_v39 = vperm.slane %v8493_v40, 1 }
0x13c0   :  { %v3335_v22 = vadd.f32 %v3334_v17, %v8475_v21  ;;  %v3348_v46 = vadd.f32 %v3347_v20, %v8476_v42  ;;  %v8513_v17 = vld [vmem:[#allocation182_spill] sm:$0xff]  ;;  %v8515_v21 = vld [vmem:[#allocation291_spill] sm:$0xff]  ;;  %v8517_v42 = vld [vmem:[#allocation184_spill] sm:$0xff] }
0x13c1   :  { %v8514_v20 = vld [vmem:[#allocation242_spill] sm:$0xff] }
0x13c2   :  { %3590 = vmatpush.bf16.msrb.mxu2 %v8466_v44  ;;  %3603 = vmatpush.bf16.msrb.mxu3 %v8467_v6  ;;  %3771 = vst [vmem:[#allocation15 + $0x150] sm:$0xff] %v3335_v22  ;;  %v3362_v26 = vpop.f32.mrf.mxu0  ;;  %v8516_v22 = vld [vmem:[#allocation121_spill] sm:$0xff] }
0x13c3   :  { %3616 = vmatpush.bf16.msra.mxu0 %v8468_v13  ;;  %3629 = vmatpush.bf16.msra.mxu1 %v8469_v29  ;;  %3772 = vst [vmem:[#allocation15 + $0x158] sm:$0xff] %v3348_v46  ;;  %v8506_v13 = vld [vmem:[#allocation238_spill] sm:$0xff]  ;;  %v8507_v29 = vld [vmem:[#allocation289_spill] sm:$0xff]  ;;  %v8518_v46 = vld [vmem:[#allocation244_spill] sm:$0xff] }
0x13c4   :  { %v8521_v26 = vld [vmem:[#allocation186_spill] sm:$0xff] }
0x13c6   :  { %3591 = vmatpush.bf16.msrb.mxu2 %v8472_v12  ;;  %3604 = vmatpush.bf16.msrb.mxu3 %v7019_v61  ;;  %v3375_v61 = vpop.f32.mrf.mxu1  ;;  %v8510_v12 = vld [vmem:[#allocation240_spill] sm:$0xff] }
0x13c7   :  { %3617 = vmatpush.bf16.msra.mxu0 %v8473_v14  ;;  %3630 = vmatpush.bf16.msra.mxu1 %v8474_v16  ;;  %v3336_v31 = vpop.f32.mrf.mxu2  ;;  %v3349_v57 = vpop.f32.mrf.mxu3  ;;  %v8511_v14 = vld [vmem:[#allocation290_spill] sm:$0xff] }
0x13c8   :  { %v8512_v16 = vld [vmem:[#allocation118_spill] sm:$0xff] }
0x13c9   :  { %v8522_v61 = vld [vmem:[#allocation246_spill] sm:$0xff] }
0x13ca   :  { %3592 = vmatpush.bf16.msrb.mxu2 %v8477_v27  ;;  %3605 = vmatpush.bf16.msrb.mxu3 %v8478_v60  ;;  %v8519_v27 = vld [vmem:[#allocation292_spill] sm:$0xff]  ;;  %v8520_v60 = vld [vmem:[#allocation122_spill] sm:$0xff] }
0x13cb   :  { %3618 = vmatpush.bf16.msra.mxu0 %v8479_v54  ;;  %3631 = vmatpush.bf16.msra.mxu1 %v8480_v59  ;;  %v8523_v54 = vld [vmem:[#allocation293_spill] sm:$0xff]  ;;  %v8524_v59 = vld [vmem:[#allocation124_spill] sm:$0xff]  ;;  %v8528_v57 = vld [vmem:[#allocation126_spill] sm:$0xff] }
0x13cd   :  { %3593 = vmatmul.bf16.vlgmr.msrb.gmra.mxu2 %v7307_v7  ;;  %3606 = vmatmul.bf16.vlgmr.msrb.gmra.mxu3 %v7307_v7  ;;  %v3412_v58 = vpop.f32.mrf.mxu0 }
0x13ce   :  { %3637 = vmatpush.bf16.msra.mxu2 %v8481_v37  ;;  %3650 = vmatpush.bf16.msra.mxu3 %v8482_v52  ;;  %v3425_v47 = vpop.f32.mrf.mxu1  ;;  %v3413_v49 = vadd.f32 %v3412_v58, %v8494_v28  ;;  %v8525_v37 = vld [vmem:[#allocation188_spill] sm:$0xff]  ;;  %v8533_v58 = vld [vmem:[#allocation295_spill] sm:$0xff] }
0x13cf   :  { %3663 = vmatpush.bf16.msrb.mxu0 %v8483_v51  ;;  %3676 = vmatpush.bf16.msrb.mxu1 %v8484_v0  ;;  %v3426_v36 = vadd.f32 %v3425_v47, %v8495_v25  ;;  %v8526_v52 = vld [vmem:[#allocation248_spill] sm:$0xff]  ;;  %v8527_v51 = vld [vmem:[#allocation294_spill] sm:$0xff] }
0x13d0   :  { %3619 = vmatmul.bf16.vlgmr.msra.gmra.mxu0 %v7307_v7  ;;  %3632 = vmatmul.bf16.vlgmr.msra.gmra.mxu1 %v7307_v7  ;;  %3777 = vst [vmem:[#allocation15 + $0x180] sm:$0xff] %v3413_v49  ;;  %v3386_v41 = vpop.f32.mrf.mxu2  ;;  %v3399_v56 = vpop.f32.mrf.mxu3  ;;  %v8534_v47 = vld [vmem:[#allocation128_spill] sm:$0xff]  ;;  %v8536_v49 = vperm.slane %v8493_v40, 4 }
0x13d1   :  { %3778 = vst [vmem:[#allocation15 + $0x188] sm:$0xff] %v3426_v36  ;;  %v3387_v23 = vadd.f32 %v3386_v41, %v8500_v50  ;;  %v3400_v3 = vadd.f32 %v3399_v56, %v8501_v39  ;;  %v8537_v36 = vperm.slane %v8493_v40, 5  ;;  %v8540_v56 = vld [vmem:[#allocation130_spill] sm:$0xff]  ;;  %v8543_v39 = vld [vmem:[#allocation297_spill] sm:$0xff] }
0x13d2   :  { %3638 = vmatpush.bf16.msra.mxu2 %v8485_v30  ;;  %3651 = vmatpush.bf16.msra.mxu3 %v8486_v24  ;;  %v8529_v30 = vld [vmem:[#allocation190_spill] sm:$0xff]  ;;  %v8530_v24 = vperm.slane %v8493_v40, 6 }
0x13d3   :  { %3664 = vmatpush.bf16.msrb.mxu0 %v8487_v48  ;;  %3677 = vmatpush.bf16.msrb.mxu1 %v8488_v53  ;;  %3775 = vst [vmem:[#allocation15 + $0x170] sm:$0xff] %v3387_v23  ;;  %v8531_v53 = vperm.slane %v8493_v40, 7  ;;  %v8541_v50 = vld [vmem:[#allocation194_spill] sm:$0xff]  ;;  %v8542_v23 = vld [vmem:[#allocation253_spill] sm:$0xff]  ;;  %v8545_v40 = vld [vmem:[#allocation196_spill] sm:$0xff] }
0x13d4   :  { %3776 = vst [vmem:[#allocation15 + $0x178] sm:$0xff] %v3400_v3  ;;  %v8544_v3 = vld [vmem:[#allocation132_spill] sm:$0xff] }
0x13d5   :  { %v3414_v44 = vpop.f32.mrf.mxu0 }
0x13d6   :  { %3639 = vmatpush.bf16.msra.mxu2 %v8489_v32  ;;  %3652 = vmatpush.bf16.msra.mxu3 %v8490_v55  ;;  %v3427_v6 = vpop.f32.mrf.mxu1  ;;  %v8532_v55 = vld [vmem:[#allocation250_spill] sm:$0xff]  ;;  %v8546_v44 = vld [vmem:[#allocation255_spill] sm:$0xff] }
0x13d7   :  { %3665 = vmatpush.bf16.msrb.mxu0 %v8491_v62  ;;  %3678 = vmatpush.bf16.msrb.mxu1 %v8492_v35  ;;  %v8535_v62 = vld [vmem:[#allocation192_spill] sm:$0xff]  ;;  %v8547_v6 = vld [vmem:[#allocation134_spill] sm:$0xff] }
0x13d8   :  { %v3388_v45 = vpop.f32.mrf.mxu2  ;;  %v3401_v10 = vpop.f32.mrf.mxu3 }
0x13d9   :  { %v8554_v45 = vld [vmem:[#allocation299_spill] sm:$0xff]  ;;  %v8556_v10 = vld [vmem:[#allocation300_spill] sm:$0xff] }
0x13da   :  { %3640 = vmatpush.bf16.msra.mxu2 %v8496_v1  ;;  %3653 = vmatpush.bf16.msra.mxu3 %v8497_v33  ;;  %v8538_v33 = vld [vmem:[#allocation252_spill] sm:$0xff] }
0x13db   :  { %3666 = vmatpush.bf16.msrb.mxu0 %v8498_v34  ;;  %3679 = vmatpush.bf16.msrb.mxu1 %v8499_v38  ;;  %v8539_v34 = vld [vmem:[#allocation296_spill] sm:$0xff] }
0x13de   :  { %3641 = vmatpush.bf16.msra.mxu2 %v8502_v19  ;;  %3654 = vmatpush.bf16.msra.mxu3 %v8503_v5 }
0x13df   :  { %3667 = vmatpush.bf16.msrb.mxu0 %v8504_v9  ;;  %3680 = vmatpush.bf16.msrb.mxu1 %v8505_v11  ;;  %v8548_v9 = vld [vmem:[#allocation198_spill] sm:$0xff]  ;;  %v8549_v11 = vld [vmem:[#allocation257_spill] sm:$0xff] }
0x13e2   :  { %3642 = vmatpush.bf16.msra.mxu2 %v8506_v13  ;;  %3655 = vmatpush.bf16.msra.mxu3 %v8507_v29  ;;  %v8550_v13 = vld [vmem:[#allocation298_spill] sm:$0xff] }
0x13e3   :  { %3668 = vmatpush.bf16.msrb.mxu0 %v8508_v8  ;;  %3681 = vmatpush.bf16.msrb.mxu1 %v8509_v15  ;;  %v8551_v29 = vld [vmem:[#allocation138_spill] sm:$0xff]  ;;  %v8552_v8 = vld [vmem:[#allocation200_spill] sm:$0xff]  ;;  %v8553_v15 = vld [vmem:[#allocation259_spill] sm:$0xff] }
0x13e6   :  { %3643 = vmatpush.bf16.msra.mxu2 %v8510_v12  ;;  %3656 = vmatpush.bf16.msra.mxu3 %v8511_v14  ;;  %v8557_v12 = vld [vmem:[#allocation263_spill] sm:$0xff]  ;;  %v8558_v14 = vld [vmem:[#allocation301_spill] sm:$0xff] }
0x13e7   :  { %3669 = vmatpush.bf16.msrb.mxu0 %v8512_v16  ;;  %3682 = vmatpush.bf16.msrb.mxu1 %v8513_v17 }
0x13ea   :  { %3644 = vmatpush.bf16.msra.mxu2 %v8514_v20  ;;  %3657 = vmatpush.bf16.msra.mxu3 %v8515_v21  ;;  %v8559_v20 = vperm.slane %v5788_v2, 2 }
0x13eb   :  { %3670 = vmatpush.bf16.msrb.mxu0 %v8516_v22  ;;  %3683 = vmatpush.bf16.msrb.mxu1 %v8517_v42  ;;  %v8560_v22 = vperm.slane %v5788_v2, 3 }
0x13ed   :  { %3645 = vmatmul.bf16.vlgmr.msra.gmra.mxu2 %v7307_v7  ;;  %3658 = vmatmul.bf16.vlgmr.msra.gmra.mxu3 %v7307_v7  ;;  %v3464_v0 = vpop.f32.mrf.mxu0  ;;  %v3477_v31 = vpop.f32.mrf.mxu1 }
0x13ee   :  { %3689 = vmatpush.bf16.msrb.mxu2 %v8518_v46  ;;  %3702 = vmatpush.bf16.msrb.mxu3 %v8519_v27  ;;  %v3465_v48 = vadd.f32 %v3464_v0, %v8530_v24  ;;  %v3478_v32 = vadd.f32 %v3477_v31, %v8531_v53  ;;  %v8561_v46 = vld [vmem:[#allocation265_spill] sm:$0xff]  ;;  %v8562_v27 = vld [vmem:[#allocation302_spill] sm:$0xff]  ;;  %v8566_v31 = vld [vmem:[#allocation267_spill] sm:$0xff] }
0x13ef   :  { %3715 = vmatpush.bf16.msra.mxu0 %v8520_v60  ;;  %3728 = vmatpush.bf16.msra.mxu1 %v8521_v26  ;;  %v8569_v53 = vld [vmem:[#allocation304_spill] sm:$0xff] }
0x13f0   :  { %3671 = vmatmul.bf16.vlgmr.msrb.gmra.mxu0 %v7307_v7  ;;  %3684 = vmatmul.bf16.vlgmr.msrb.gmra.mxu1 %v7307_v7  ;;  %3781 = vst [vmem:[#allocation15 + $0x1a0] sm:$0xff] %v3465_v48  ;;  %v3438_v35 = vpop.f32.mrf.mxu2  ;;  %v3451_v28 = vpop.f32.mrf.mxu3  ;;  %v8568_v48 = vld [vmem:[#allocation268_spill] sm:$0xff] }
0x13f1   :  { %3782 = vst [vmem:[#allocation15 + $0x1a8] sm:$0xff] %v3478_v32  ;;  %v3439_v25 = vadd.f32 %v3438_v35, %v8536_v49  ;;  %v3452_v1 = vadd.f32 %v3451_v28, %v8537_v36  ;;  %v8570_v32 = vld [vmem:[#allocation270_spill] sm:$0xff]  ;;  %v8573_v35 = vperm.slane %v5788_v2, 7  ;;  %v8574_v36 = vperm.slane %v5788_v2, 4 }
0x13f2   :  { %3690 = vmatpush.bf16.msrb.mxu2 %v8522_v61  ;;  %3703 = vmatpush.bf16.msrb.mxu3 %v8523_v54  ;;  %v8563_v61 = vperm.slane %v5788_v2, 0 }
0x13f3   :  { %3716 = vmatpush.bf16.msra.mxu0 %v8524_v59  ;;  %3729 = vmatpush.bf16.msra.mxu1 %v8525_v37  ;;  %3779 = vst [vmem:[#allocation15 + $0x190] sm:$0xff] %v3439_v25  ;;  %v8564_v59 = vperm.slane %v5788_v2, 1 }
0x13f4   :  { %3780 = vst [vmem:[#allocation15 + $0x198] sm:$0xff] %v3452_v1 }
0x13f5   :  { %v3466_v38 = vpop.f32.mrf.mxu0  ;;  %v3479_v41 = vpop.f32.mrf.mxu1 }
0x13f6   :  { %3691 = vmatpush.bf16.msrb.mxu2 %v8526_v52  ;;  %3704 = vmatpush.bf16.msrb.mxu3 %v8527_v51  ;;  %v8565_v52 = vld [vmem:[#allocation266_spill] sm:$0xff] }
0x13f7   :  { %3717 = vmatpush.bf16.msra.mxu0 %v8528_v57  ;;  %3730 = vmatpush.bf16.msra.mxu1 %v8529_v30  ;;  %v8567_v57 = vld [vmem:[#allocation303_spill] sm:$0xff] }
0x13f8   :  { %v3440_v19 = vpop.f32.mrf.mxu2  ;;  %v3453_v5 = vpop.f32.mrf.mxu3 }
0x13fa   :  { %3692 = vmatpush.bf16.msrb.mxu2 %v8532_v55  ;;  %3705 = vmatpush.bf16.msrb.mxu3 %v8533_v58  ;;  %v8571_v55 = vld [vmem:[#allocation305_spill] sm:$0xff] }
0x13fb   :  { %3718 = vmatpush.bf16.msra.mxu0 %v8534_v47  ;;  %3731 = vmatpush.bf16.msra.mxu1 %v8535_v62  ;;  %v8572_v47 = vperm.slane %v5788_v2, 6 }
0x13fe   :  { %3693 = vmatpush.bf16.msrb.mxu2 %v8538_v33  ;;  %3706 = vmatpush.bf16.msrb.mxu3 %v8539_v34  ;;  %v8575_v33 = vperm.slane %v5788_v2, 5 }
0x13ff   :  { %3719 = vmatpush.bf16.msra.mxu0 %v8540_v56  ;;  %3732 = vmatpush.bf16.msra.mxu1 %v8541_v50 }
0x1402   :  { %3694 = vmatpush.bf16.msrb.mxu2 %v8542_v23  ;;  %3707 = vmatpush.bf16.msrb.mxu3 %v8543_v39  ;;  %v8576_v39 = vld [vmem:[#allocation27_spill] sm:$0xff] }
0x1403   :  { %3720 = vmatpush.bf16.msra.mxu0 %v8544_v3  ;;  %3733 = vmatpush.bf16.msra.mxu1 %v8545_v40  ;;  %v8577_v3 = vperm.slane %v8576_v39, 2  ;;  %v8578_v19 = vperm.slane %v8576_v39, 3  ;;  %v8579_v2 = vperm.slane %v8576_v39, 0 }
0x1406   :  { %3695 = vmatpush.bf16.msrb.mxu2 %v8546_v44  ;;  %3708 = vmatpush.bf16.msrb.mxu3 %v7101_v18  ;;  %v8555_v18 = vld [vmem:[#allocation261_spill] sm:$0xff] }
0x1407   :  { %3721 = vmatpush.bf16.msra.mxu0 %v8547_v6  ;;  %3734 = vmatpush.bf16.msra.mxu1 %v8548_v9 }
0x140a   :  { %3696 = vmatpush.bf16.msrb.mxu2 %v8549_v11  ;;  %3709 = vmatpush.bf16.msrb.mxu3 %v8550_v13  ;;  %v8580_v11 = vperm.slane %v8576_v39, 1 }
0x140b   :  { %3722 = vmatpush.bf16.msra.mxu0 %v8551_v29  ;;  %3735 = vmatpush.bf16.msra.mxu1 %v8552_v8 }
0x140d   :  { %3697 = vmatmul.bf16.vlgmr.msrb.gmra.mxu2 %v7307_v7  ;;  %3710 = vmatmul.bf16.vlgmr.msrb.gmra.mxu3 %v7307_v7  ;;  %v3516_v16 = vpop.f32.mrf.mxu0  ;;  %v3529_v17 = vpop.f32.mrf.mxu1 }
0x140e   :  { %3741 = vmatpush.bf16.msra.mxu2 %v8553_v15  ;;  %3754 = vmatpush.bf16.msra.mxu3 %v8554_v45  ;;  %v3517_v21 = vadd.f32 %v3516_v16, %v8559_v20  ;;  %v3530_v42 = vadd.f32 %v3529_v17, %v8560_v22  ;;  %v8582_v16 = vperm.slane %v8576_v39, 7  ;;  %v8583_v22 = vperm.slane %v8576_v39, 4 }
0x140f   :  { %3723 = vmatmul.bf16.vlgmr.msra.gmra.mxu0 %v7307_v7  ;;  %3736 = vmatmul.bf16.vlgmr.msra.gmra.mxu1 %v7307_v7 }
0x1410   :  { %3785 = vst [vmem:[#allocation15 + $0x1c0] sm:$0xff] %v3517_v21  ;;  %v3490_v60 = vpop.f32.mrf.mxu2  ;;  %v3503_v26 = vpop.f32.mrf.mxu3 }
0x1411   :  { %3786 = vst [vmem:[#allocation15 + $0x1c8] sm:$0xff] %v3530_v42  ;;  %v3491_v54 = vadd.f32 %v3490_v60, %v8563_v61  ;;  %v3504_v37 = vadd.f32 %v3503_v26, %v8564_v59 }
0x1412   :  { %3742 = vmatpush.bf16.msra.mxu2 %v8555_v18  ;;  %3755 = vmatpush.bf16.msra.mxu3 %v8556_v10 }
0x1413   :  { %3783 = vst [vmem:[#allocation15 + $0x1b0] sm:$0xff] %v3491_v54 }
0x1414   :  { %3784 = vst [vmem:[#allocation15 + $0x1b8] sm:$0xff] %v3504_v37 }
0x1415   :  { %v3518_v51 = vpop.f32.mrf.mxu0  ;;  %v3531_v0 = vpop.f32.mrf.mxu1 }
0x1416   :  { %3743 = vmatpush.bf16.msra.mxu2 %v8557_v12  ;;  %3756 = vmatpush.bf16.msra.mxu3 %v8558_v14  ;;  %v8581_v12 = vperm.slane %v8576_v39, 6  ;;  %v8586_v0 = vperm.slane %v5792_v4, 3 }
0x1418   :  { %v3492_v30 = vpop.f32.mrf.mxu2  ;;  %v3505_v24 = vpop.f32.mrf.mxu3 }
0x1419   :  { %v8587_v24 = vperm.slane %v5792_v4, 0 }
0x141a   :  { %3744 = vmatpush.bf16.msra.mxu2 %v8561_v46  ;;  %3757 = vmatpush.bf16.msra.mxu3 %v8562_v27  ;;  %v8584_v46 = vperm.slane %v8576_v39, 5 }
0x141e   :  { %3745 = vmatpush.bf16.msra.mxu2 %v8565_v52  ;;  %3758 = vmatpush.bf16.msra.mxu3 %v7123_v43  ;;  %v8585_v52 = vperm.slane %v5792_v4, 2 }
0x1422   :  { %3746 = vmatpush.bf16.msra.mxu2 %v8566_v31  ;;  %3759 = vmatpush.bf16.msra.mxu3 %v8567_v57 }
0x1426   :  { %3747 = vmatpush.bf16.msra.mxu2 %v8568_v48  ;;  %3760 = vmatpush.bf16.msra.mxu3 %v8569_v53  ;;  %v8588_v53 = vperm.slane %v5792_v4, 1 }
0x142a   :  { %3748 = vmatpush.bf16.msra.mxu2 %v8570_v32  ;;  %3761 = vmatpush.bf16.msra.mxu3 %v8571_v55 }
0x142d   :  { %3749 = vmatmul.bf16.vlgmr.msra.gmra.mxu2 %v7307_v7  ;;  %3762 = vmatmul.bf16.vlgmr.msra.gmra.mxu3 %v7307_v7  ;;  %v3568_v43 = vpop.f32.mrf.mxu0  ;;  %v3581_v58 = vpop.f32.mrf.mxu1 }
0x142e   :  { %v3569_v62 = vadd.f32 %v3568_v43, %v8572_v47  ;;  %v3582_v28 = vadd.f32 %v3581_v58, %v8573_v35 }
0x1430   :  { %3789 = vst [vmem:[#allocation15 + $0x1e0] sm:$0xff] %v3569_v62  ;;  %v3542_v49 = vpop.f32.mrf.mxu2  ;;  %v3555_v25 = vpop.f32.mrf.mxu3 }
0x1431   :  { %3790 = vst [vmem:[#allocation15 + $0x1e8] sm:$0xff] %v3582_v28  ;;  %v3543_v1 = vadd.f32 %v3542_v49, %v8574_v36  ;;  %v3556_v34 = vadd.f32 %v3555_v25, %v8575_v33  ;;  %v8589_v28 = vperm.slane %v5792_v4, 4 }
0x1433   :  { %3787 = vst [vmem:[#allocation15 + $0x1d0] sm:$0xff] %v3543_v1 }
0x1434   :  { %3788 = vst [vmem:[#allocation15 + $0x1d8] sm:$0xff] %v3556_v34 }
0x1435   :  { %v3570_v7 = vpop.f32.mrf.mxu0  ;;  %v3583_v38 = vpop.f32.mrf.mxu1 }
0x1438   :  { %v3544_v41 = vpop.f32.mrf.mxu2  ;;  %v3557_v56 = vpop.f32.mrf.mxu3 }
0x144d   :  { %v3620_v50 = vpop.f32.mrf.mxu0  ;;  %v3633_v23 = vpop.f32.mrf.mxu1 }
0x144e   :  { %v3621_v40 = vadd.f32 %v3620_v50, %v8577_v3  ;;  %v3634_v5 = vadd.f32 %v3633_v23, %v8578_v19 }
0x1450   :  { %3793 = vst [vmem:[#allocation15 + $0x200] sm:$0xff] %v3621_v40  ;;  %v3594_v44 = vpop.f32.mrf.mxu2  ;;  %v3607_v6 = vpop.f32.mrf.mxu3 }
0x1451   :  { %3794 = vst [vmem:[#allocation15 + $0x208] sm:$0xff] %v3634_v5  ;;  %v3595_v9 = vadd.f32 %v3594_v44, %v8579_v2  ;;  %v3608_v13 = vadd.f32 %v3607_v6, %v8580_v11 }
0x1453   :  { %3791 = vst [vmem:[#allocation15 + $0x1f0] sm:$0xff] %v3595_v9 }
0x1454   :  { %3792 = vst [vmem:[#allocation15 + $0x1f8] sm:$0xff] %v3608_v13 }
0x1455   :  { %v3622_v29 = vpop.f32.mrf.mxu0  ;;  %v3635_v8 = vpop.f32.mrf.mxu1 }
0x1458   :  { %v3596_v15 = vpop.f32.mrf.mxu2  ;;  %v3609_v45 = vpop.f32.mrf.mxu3 }
0x146d   :  { %v3672_v18 = vpop.f32.mrf.mxu0  ;;  %v3685_v10 = vpop.f32.mrf.mxu1 }
0x146e   :  { %v3673_v14 = vadd.f32 %v3672_v18, %v8581_v12  ;;  %v3686_v17 = vadd.f32 %v3685_v10, %v8582_v16 }
0x1470   :  { %3797 = vst [vmem:[#allocation15 + $0x220] sm:$0xff] %v3673_v14  ;;  %v3646_v20 = vpop.f32.mrf.mxu2  ;;  %v3659_v21 = vpop.f32.mrf.mxu3 }
0x1471   :  { %3798 = vst [vmem:[#allocation15 + $0x228] sm:$0xff] %v3686_v17  ;;  %v3647_v42 = vadd.f32 %v3646_v20, %v8583_v22  ;;  %v3660_v27 = vadd.f32 %v3659_v21, %v8584_v46 }
0x1473   :  { %3795 = vst [vmem:[#allocation15 + $0x210] sm:$0xff] %v3647_v42 }
0x1474   :  { %3796 = vst [vmem:[#allocation15 + $0x218] sm:$0xff] %v3660_v27 }
0x1475   :  { %v3674_v60 = vpop.f32.mrf.mxu0  ;;  %v3687_v26 = vpop.f32.mrf.mxu1 }
0x1478   :  { %v3648_v61 = vpop.f32.mrf.mxu2  ;;  %v3661_v54 = vpop.f32.mrf.mxu3 }
0x148c   :  { %v3724_v59 = vpop.f32.mrf.mxu0  ;;  %v3737_v37 = vpop.f32.mrf.mxu1 }
0x148d   :  { %v3725_v51 = vadd.f32 %v3724_v59, %v8585_v52  ;;  %v3738_v31 = vadd.f32 %v3737_v37, %v8586_v0 }
0x148f   :  { %3801 = vst [vmem:[#allocation15 + $0x240] sm:$0xff] %v3725_v51 }
0x1490   :  { %3802 = vst [vmem:[#allocation15 + $0x248] sm:$0xff] %v3738_v31  ;;  %v3698_v57 = vpop.f32.mrf.mxu2  ;;  %v3711_v30 = vpop.f32.mrf.mxu3 }
0x1491   :  { %v3699_v48 = vadd.f32 %v3698_v57, %v8587_v24  ;;  %v3712_v32 = vadd.f32 %v3711_v30, %v8588_v53 }
0x1493   :  { %3799 = vst [vmem:[#allocation15 + $0x230] sm:$0xff] %v3699_v48 }
0x1494   :  { %v3726_v55 = vpop.f32.mrf.mxu0  ;;  %v3739_v43 = vpop.f32.mrf.mxu1  ;;  %3800 = vst [vmem:[#allocation15 + $0x238] sm:$0xff] %v3712_v32 }
0x1498   :  { %v3700_v58 = vpop.f32.mrf.mxu2  ;;  %v3713_v47 = vpop.f32.mrf.mxu3 }
0x14b0   :  { %v3750_v62 = vpop.f32.mrf.mxu2  ;;  %v3763_v35 = vpop.f32.mrf.mxu3 }
0x14b1   :  { %v3751_v49 = vadd.f32 %v3750_v62, %v8589_v28  ;;  %v3764_v25 = vadd.f32 %v3763_v35, %v901_v63 }
0x14b3   :  { %3803 = vst [vmem:[#allocation15 + $0x250] sm:$0xff] %v3751_v49 }
0x14b4   :  { %3804 = vst [vmem:[#allocation15 + $0x258] sm:$0xff] %v3764_v25 }
0x14b5   :  { %3817 = dma.vmem_to_hbm [thread:$0]  %s3810_s9, 9728, %s3812_s12, [#allocation6], %s5724_s13, %s5724_s13, %s5725_s14  }
0x14b8   :  { %v3752_v36 = vpop.f32.mrf.mxu2  ;;  %v3765_v1 = vpop.f32.mrf.mxu3 }
0x14b9   :  { %5712 = dma.done.wait [#allocation6], 9728  }
0x14ba   :  { %5713 = vsyncadd [#allocation6], 4294957568 }
0x14bb   :  { %3822 = vsyncpa [#allocation5], 1 }
0x14bc   :  { %3823 = vsyncpa [#allocation8], 1 }
0x14bd   :  { %3824 = vsyncpa [#allocation11], 1 }
0x14be   :  { %3825 = vsyncpa [#allocation14], 1 }
0x14bf   :  { %3826 = vsyncpa [#allocation6], 1 }
0x14c0   :  { %3827 = vsyncmov [#allocation3] }
0x14c3   :  { %s3828_s7 = vpop.sfrf %3827 }
0x14c4   :  { %p5113_p0 = scmp.ne.s32.totalorder %s3828_s7, 0 }
0x14c6   :  { %3832 = shalt.err (%p5113_p0)  }

</bundles_post_ra>
